<compile_context>
chip_gen: v7x
topology: tpu7x:2x2x1
jax: 0.10.0
libtpu: 0.0.40
codegen_flags: <defaults>
</compile_context>

<pallas_src>
import math

import jax
import jax.numpy as jnp
from jax.experimental import pallas as pl
from jax.experimental.pallas import tpu as pltpu

VMEM_SPEC = pl.BlockSpec(memory_space=pltpu.MemorySpace.VMEM)
SMEM_SPEC = pl.BlockSpec(memory_space=pltpu.MemorySpace.SMEM)
LN_EPS = 1e-5

ENC_KEYS = ('wq', 'wk', 'wv', 'fcwt', 'fcb', 'g1', 'b1',
            'c1wt', 'c1b', 'c2wt', 'c2b', 'g2', 'b2')
DEC_KEYS = ('s_wq', 's_wk', 's_wv', 's_fcwt', 's_fcb', 'g1', 'b1',
            'c_wq', 'c_wk', 'c_wv', 'c_fcwt', 'c_fcb', 'g2', 'b2',
            'c1wt', 'c1b', 'c2wt', 'c2b', 'g3', 'b3')


# ----------------------------------------------------------------------------
# Fully fused forward kernel
# ----------------------------------------------------------------------------
def build_kernel(names, cfg):
    H = cfg['horizon']
    D = cfg['out_dim']
    in_dim = cfg['in_dim']
    R = cfg['num_relations']
    K = cfg['K']
    num_nodes = cfg['num_nodes']
    B = cfg['batch_size']
    n_total = num_nodes * B
    Le = cfg['en_layers']
    Ld = cfg['de_layers']
    scale = 1.0 / math.sqrt(D)
    bf16 = jnp.bfloat16

    def kernel(*refs):
        n_in = len(names)
        p = dict(zip(names, refs[:n_in]))
        out_ref = refs[n_in]
        src_scr = refs[n_in + 1]
        tgt_scr = refs[n_in + 2]

        # hoist grid-invariant reads (no re-broadcast / re-load per use site)
        adj = [p['adj'][rl] for rl in range(R)]        # each (n_total, n_total) bf16
        hm = p['headmask'][...]                        # (D, D) bf16 block-diagonal

        def layernorm(x, g, b):
            mu = jnp.mean(x, axis=-1, keepdims=True)
            var = jnp.mean((x - mu) ** 2, axis=-1, keepdims=True)
            return (x - mu) * jax.lax.rsqrt(var + LN_EPS) * g + b

        def mha(xq, xkv, wq, wk, wv, fcwt, fcb):
            # Torch MultiHeadAttentionLayer: elementwise q*k, softmax over head_dim,
            # elementwise-scaled values, then Linear.  Per-head softmax via a (D, D)
            # block-diagonal head-mask matmul (MXU segment-sum).
            qb = xq.astype(bf16)
            kvb = xkv.astype(bf16)
            q = jnp.dot(qb, wq, preferred_element_type=jnp.float32)
            k = jnp.dot(kvb, wk, preferred_element_type=jnp.float32)
            v = jnp.dot(kvb, wv, preferred_element_type=jnp.float32)
            s = q * k * scale
            # row-wide max is the same constant within each head -> per-head softmax ok
            s = s - jnp.max(s, axis=-1, keepdims=True)
            e = jnp.exp(s)
            denom = jnp.dot(e.astype(bf16), hm, preferred_element_type=jnp.float32)
            prob = e * pl.reciprocal(denom, approx=True)
            return jnp.dot((v * prob).astype(bf16), fcwt,
                           preferred_element_type=jnp.float32) + fcb

        def ffn(x, c1wt, c1b, c2wt, c2b):
            y = jnp.dot(x.astype(bf16), c1wt,
                        preferred_element_type=jnp.float32) + c1b
            y = jnp.maximum(y, 0.0)
            return jnp.dot(y.astype(bf16), c2wt,
                           preferred_element_type=jnp.float32) + c2b

        def gcn_and_pe(x_ref, tidx_ref, wroot0, wrel0, wroot_rest, wrel_rest, dst):
            # K-step RGCN (sum aggregation, no bias) + time positional embedding.
            for i in range(H):
                x = x_ref[i]                                   # (n_total, in_dim) f32
                # ---- layer 0: in_dim is tiny -> per-channel VPU FMA (skip MXU) ----
                w0 = wroot0[i]                                 # (in_dim, D) f32
                h = x[:, 0:1] * w0[0:1, :]
                for c in range(1, in_dim):
                    h = h + x[:, c:c + 1] * w0[c:c + 1, :]
                for rl in range(R):
                    wr = wrel0[i, rl]                          # (in_dim, D) f32
                    xr = x[:, 0:1] * wr[0:1, :]
                    for c in range(1, in_dim):
                        xr = xr + x[:, c:c + 1] * wr[c:c + 1, :]
                    h = h + jnp.dot(adj[rl], xr.astype(bf16),
                                    preferred_element_type=jnp.float32)
                # ---- layers 1..K-1: bf16 MXU, per-relation unrolled (no repack) ----
                for kk in range(K - 1):
                    hb = jnp.maximum(h, 0.0).astype(bf16)
                    hn = jnp.dot(hb, wroot_rest[i, kk],
                                 preferred_element_type=jnp.float32)
                    for rl in range(R):
                        hr = jnp.dot(hb, wrel_rest[i, kk, rl],
                                     preferred_element_type=jnp.float32)
                        hn = hn + jnp.dot(adj[rl], hr.astype(bf16),
                                          preferred_element_type=jnp.float32)
                    h = hn
                # ---- add pe[time_idx[i, b]] to batch element b's node rows ----
                for b in range(B):
                    pe_row = p['pe'][pl.ds(tidx_ref[i, b], 1), :]      # (1, D) f32
                    r0 = i * n_total + b * num_nodes
                    dst[r0:r0 + num_nodes, :] = (
                        h[b * num_nodes:(b + 1) * num_nodes, :] + pe_row)

        # ---------------- encoder GCN stack + time embedding ----------------
        gcn_and_pe(p['enc_x'], p['tidx_x'], p['e_wroot0'], p['e_wrel0'],
                   p.get('e_wroot_rest'), p.get('e_wrel_rest'), src_scr)
        src = src_scr[...]

        # ---------------- transformer encoder ----------------
        for l in range(Le):
            att = mha(src, src, p['enc_wq'][l], p['enc_wk'][l], p['enc_wv'][l],
                      p['enc_fcwt'][l], p['enc_fcb'][l])
            src = layernorm(src + att, p['enc_g1'][l], p['enc_b1'][l])
            y = ffn(src, p['enc_c1wt'][l], p['enc_c1b'][l],
                    p['enc_c2wt'][l], p['enc_c2b'][l])
            src = layernorm(src + y, p['enc_g2'][l], p['enc_b2'][l])
        enc_out = src

        # ---------------- decoder GCN stack + time embedding ----------------
        gcn_and_pe(p['hist_x'], p['tidx_y'], p['d_wroot0'], p['d_wrel0'],
                   p.get('d_wroot_rest'), p.get('d_wrel_rest'), tgt_scr)
        tgt = tgt_scr[...]

        # ---------------- transformer decoder ----------------
        for l in range(Ld):
            att = mha(tgt, tgt, p['dec_s_wq'][l], p['dec_s_wk'][l], p['dec_s_wv'][l],
                      p['dec_s_fcwt'][l], p['dec_s_fcb'][l])
            tgt = layernorm(tgt + att, p['dec_g1'][l], p['dec_b1'][l])
            att = mha(tgt, enc_out, p['dec_c_wq'][l], p['dec_c_wk'][l], p['dec_c_wv'][l],
                      p['dec_c_fcwt'][l], p['dec_c_fcb'][l])
            tgt = layernorm(tgt + att, p['dec_g2'][l], p['dec_b2'][l])
            y = ffn(tgt, p['dec_c1wt'][l], p['dec_c1b'][l],
                    p['dec_c2wt'][l], p['dec_c2b'][l])
            tgt = layernorm(tgt + y, p['dec_g3'][l], p['dec_b3'][l])

        # ---------------- output linear (lane-dense 128-wide padded slab) ----------------
        out_ref[...] = (jnp.dot(tgt.astype(bf16), p['out_wt'][...],
                                preferred_element_type=jnp.float32)
                        + p['out_b'][...])

    return kernel


# ----------------------------------------------------------------------------
# Forward wrapper — one pallas_call for the whole model
# ----------------------------------------------------------------------------
def tsesc_forward(params, enc_x, hist_x, adj, time_idx_x, time_idx_y, cfg):
    # TODO(synk): batch.xtime datetime-string parsing, scaler.transform and
    # get_all_date are host-side preprocessing with no Pallas equivalent; the
    # 15-minute time-slot indices and scaled history features are supplied directly.
    H, n_total, in_dim = enc_x.shape
    D = cfg['out_dim']
    M = H * n_total

    items = [
        ('tidx_x', time_idx_x, SMEM_SPEC),
        ('tidx_y', time_idx_y, SMEM_SPEC),
        ('enc_x', enc_x, VMEM_SPEC),
        ('hist_x', hist_x, VMEM_SPEC),
        ('adj', adj, VMEM_SPEC),
        ('pe', params['pe'], VMEM_SPEC),
        ('headmask', params['headmask'], VMEM_SPEC),
    ]
    for pref, gcn in (('e_', params['encoder_gcn']), ('d_', params['decoder_gcn'])):
        items.append((pref + 'wroot0', gcn['wroot0'], VMEM_SPEC))
        items.append((pref + 'wrel0', gcn['wrel0'], VMEM_SPEC))
        if cfg['K'] > 1:
            items.append((pref + 'wroot_rest', gcn['wroot_rest'], VMEM_SPEC))
            items.append((pref + 'wrel_rest', gcn['wrel_rest'], VMEM_SPEC))
    for k in ENC_KEYS:
        items.append(('enc_' + k, params['encoder'][k], VMEM_SPEC))
    for k in DEC_KEYS:
        items.append(('dec_' + k, params['decoder'][k], VMEM_SPEC))
    items.append(('out_wt', params['out_wt_pad'], VMEM_SPEC))
    items.append(('out_b', params['out_b_pad'], VMEM_SPEC))

    names = tuple(n for n, _, _ in items)
    args = [a for _, a, _ in items]
    in_specs = [s for _, _, s in items]

    out_pad = pl.pallas_call(
        build_kernel(names, cfg),
        out_shape=jax.ShapeDtypeStruct((M, 128), jnp.float32),
        in_specs=in_specs,
        out_specs=VMEM_SPEC,
        scratch_shapes=[pltpu.VMEM((M, D), jnp.float32),
                        pltpu.VMEM((M, D), jnp.float32)],
        compiler_params=pltpu.CompilerParams(vmem_limit_bytes=32 * 1024 * 1024),
    )(*args)

    out = out_pad[:, :in_dim].reshape(H, n_total, in_dim)
    if H == 1:                     # torch.squeeze(dim=0) in Decoder
        out = out[0]
    return out


# ----------------------------------------------------------------------------
# Parameter init (deterministic, in-script).  Weights are stored pre-transposed /
# pre-stacked / bf16-cast in exactly the layout the kernel consumes.
# ----------------------------------------------------------------------------
def make_pe(max_len, d_model):
    pos = jnp.arange(max_len, dtype=jnp.float32)[:, None]
    div = jnp.exp(jnp.arange(0, d_model, 2, dtype=jnp.float32)
                  * (-math.log(10000.0) / d_model))
    pe = jnp.zeros((max_len, d_model), jnp.float32)
    pe = pe.at[:, 0::2].set(jnp.sin(pos * div))
    pe = pe.at[:, 1::2].set(jnp.cos(pos * div))
    return pe


def init_params(key, cfg):
    D, in_dim = cfg['out_dim'], cfg['in_dim']
    pf = 4 * D
    R, nb, K, H = cfg['num_relations'], cfg['num_bases'], cfg['K'], cfg['horizon']
    Le, Ld = cfg['en_layers'], cfg['de_layers']
    bf16 = jnp.bfloat16
    keys = iter(jax.random.split(key, 4096))
    nk = lambda: next(keys)

    def xavier(shape):
        fan_in, fan_out = shape[-2], shape[-1]
        lim = math.sqrt(6.0 / (fan_in + fan_out))
        return jax.random.uniform(nk(), shape, jnp.float32, -lim, lim)

    def rgcn_layer(cin, cout):
        basis = xavier((nb, cin, cout))
        comp = xavier((R, nb))
        wrel = jnp.einsum('rb,bio->rio', comp, basis)        # (R, cin, cout)
        return wrel, xavier((cin, cout))

    def gcn_stack():
        wrel0, wroot0, wrel_rest, wroot_rest = [], [], [], []
        for _ in range(H):
            wrel, wroot = rgcn_layer(in_dim, D)
            wrel0.append(wrel)
            wroot0.append(wroot)
            if K > 1:
                ws, rs = [], []
                for _ in range(K - 1):
                    wrel, wroot = rgcn_layer(D, D)
                    ws.append(wrel)
                    rs.append(wroot)
                wrel_rest.append(jnp.stack(ws))
                wroot_rest.append(jnp.stack(rs))
        out = {'wrel0': jnp.stack(wrel0),                     # (H, R, in_dim, D) f32 (VPU path)
               'wroot0': jnp.stack(wroot0)}                   # (H, in_dim, D)    f32
        if K > 1:
            out['wrel_rest'] = jnp.stack(wrel_rest).astype(bf16)    # (H, K-1, R, D, D)
            out['wroot_rest'] = jnp.stack(wroot_rest).astype(bf16)  # (H, K-1, D, D)
        return out

    ones = lambda: jnp.ones((1, D), jnp.float32)
    zeros = lambda: jnp.zeros((1, D), jnp.float32)

    def mha_p():
        return {'wq': xavier((D, D)), 'wk': xavier((D, D)), 'wv': xavier((D, D)),
                # nn.Linear weight is (out,in); stored pre-transposed for x @ W
                'fcwt': xavier((D, D)).T,
                'fcb': jnp.zeros((1, D), jnp.float32)}

    def ffn_p():
        return {'c1wt': xavier((pf, D)).T, 'c1b': jnp.zeros((1, pf), jnp.float32),
                'c2wt': xavier((D, pf)).T, 'c2b': jnp.zeros((1, D), jnp.float32)}

    def enc_layer_p():
        m = mha_p()
        d = {'wq': m['wq'], 'wk': m['wk'], 'wv': m['wv'],
             'fcwt': m['fcwt'], 'fcb': m['fcb'],
             'g1': ones(), 'b1': zeros(), 'g2': ones(), 'b2': zeros()}
        d.update(ffn_p())
        return d

    def dec_layer_p():
        s, c = mha_p(), mha_p()
        d = {'s_wq': s['wq'], 's_wk': s['wk'], 's_wv': s['wv'],
             's_fcwt': s['fcwt'], 's_fcb': s['fcb'],
             'c_wq': c['wq'], 'c_wk': c['wk'], 'c_wv': c['wv'],
             'c_fcwt': c['fcwt'], 'c_fcb': c['fcb'],
             'g1': ones(), 'b1': zeros(), 'g2': ones(), 'b2': zeros(),
             'g3': ones(), 'b3': zeros()}
        d.update(ffn_p())
        return d

    def stack_layers(layers, bf16_keys):
        out = {}
        for k in layers[0]:
            arr = jnp.stack([lp[k] for lp in layers])         # leading layer axis
            out[k] = arr.astype(bf16) if k in bf16_keys else arr
        return out

    enc_bf16 = {'wq', 'wk', 'wv', 'fcwt', 'c1wt', 'c2wt'}
    dec_bf16 = {'s_wq', 's_wk', 's_wv', 's_fcwt',
                'c_wq', 'c_wk', 'c_wv', 'c_fcwt', 'c1wt', 'c2wt'}

    # output linear padded to a lane-dense 128-wide slab (unmasked stores)
    pad_dim = max(128, ((in_dim + 127) // 128) * 128)
    out_w = xavier((D, in_dim))
    out_wt_pad = jnp.zeros((D, pad_dim), jnp.float32).at[:, :in_dim].set(out_w)
    out_b_pad = jnp.zeros((1, pad_dim), jnp.float32)

    head_dim = D // cfg['n_heads']
    hid = jnp.arange(D) // head_dim
    headmask = (hid[:, None] == hid[None, :]).astype(jnp.float32)     # (D, D)

    return {
        'encoder_gcn': gcn_stack(),
        'decoder_gcn': gcn_stack(),
        'encoder': stack_layers([enc_layer_p() for _ in range(Le)], enc_bf16),
        'decoder': stack_layers([dec_layer_p() for _ in range(Ld)], dec_bf16),
        'out_wt_pad': out_wt_pad.astype(bf16),
        'out_b_pad': out_b_pad,
        'pe': make_pe(24 * 4, D),
        'headmask': headmask.astype(bf16),
    }


# ----------------------------------------------------------------------------
# Main
# ----------------------------------------------------------------------------
if __name__ == "__main__":
    cfg = {
        'in_dim': 2, 'out_dim': 32, 'n_heads': 4,
        'num_nodes': 8, 'batch_size': 2, 'horizon': 3,
        'en_layers': 1, 'de_layers': 1,
        'num_relations': 2, 'num_bases': 2, 'K': 2,
    }
    n_total = cfg['num_nodes'] * cfg['batch_size']
    R = cfg['num_relations']

    key = jax.random.PRNGKey(0)
    kp, kx, kh, ks, kd, ke, ktx, kty = jax.random.split(key, 8)
    params = init_params(kp, cfg)

    enc_x = jax.random.normal(kx, (cfg['horizon'], n_total, cfg['in_dim']), jnp.float32)
    hist_x = jax.random.normal(kh, (cfg['horizon'], n_total, cfg['in_dim']), jnp.float32)

    # synthetic batched graph: edge_index [2, E], edge relation type [E]
    E = 40
    src_n = jax.random.randint(ks, (E,), 0, n_total)
    dst_n = jax.random.randint(kd, (E,), 0, n_total)
    etype = jax.random.randint(ke, (E,), 0, R)
    adj = jnp.zeros((R, n_total, n_total), jnp.float32)
    adj = adj.at[etype, dst_n, src_n].add(1.0)
    adj = adj.astype(jnp.bfloat16)           # small integer counts -> exact in bf16

    # 15-minute slot indices (what the datetime parsing would have produced)
    time_idx_x = jax.random.randint(ktx, (cfg['horizon'], cfg['batch_size']), 0, 96,
                                    dtype=jnp.int32)
    time_idx_y = jax.random.randint(kty, (cfg['horizon'], cfg['batch_size']), 0, 96,
                                    dtype=jnp.int32)

    out = tsesc_forward(params, enc_x, hist_x, adj, time_idx_x, time_idx_y, cfg)
    out = jax.block_until_ready(out)
    assert out.shape == (cfg['horizon'], n_total, cfg['in_dim'])
    assert bool(jnp.all(jnp.isfinite(out)))
    print("KERNEL_OK")
</pallas_src>

<mosaic_0001>
module attributes {stable_mosaic.version = 11 : i64} {
  func.func @kernel(%arg0: memref<3x2xi32, #tpu.memory_space<smem>>, %arg1: memref<3x2xi32, #tpu.memory_space<smem>>, %arg2: memref<3x16x2xf32, #tpu.memory_space<vmem>>, %arg3: memref<3x16x2xf32, #tpu.memory_space<vmem>>, %arg4: memref<2x16x16xbf16, #tpu.memory_space<vmem>>, %arg5: memref<96x32xf32, #tpu.memory_space<vmem>>, %arg6: memref<32x32xbf16, #tpu.memory_space<vmem>>, %arg7: memref<3x2x32xf32, #tpu.memory_space<vmem>>, %arg8: memref<3x2x2x32xf32, #tpu.memory_space<vmem>>, %arg9: memref<3x1x32x32xbf16, #tpu.memory_space<vmem>>, %arg10: memref<3x1x2x32x32xbf16, #tpu.memory_space<vmem>>, %arg11: memref<3x2x32xf32, #tpu.memory_space<vmem>>, %arg12: memref<3x2x2x32xf32, #tpu.memory_space<vmem>>, %arg13: memref<3x1x32x32xbf16, #tpu.memory_space<vmem>>, %arg14: memref<3x1x2x32x32xbf16, #tpu.memory_space<vmem>>, %arg15: memref<1x32x32xbf16, #tpu.memory_space<vmem>>, %arg16: memref<1x32x32xbf16, #tpu.memory_space<vmem>>, %arg17: memref<1x32x32xbf16, #tpu.memory_space<vmem>>, %arg18: memref<1x32x32xbf16, #tpu.memory_space<vmem>>, %arg19: memref<1x1x32xf32, #tpu.memory_space<vmem>>, %arg20: memref<1x1x32xf32, #tpu.memory_space<vmem>>, %arg21: memref<1x1x32xf32, #tpu.memory_space<vmem>>, %arg22: memref<1x32x128xbf16, #tpu.memory_space<vmem>>, %arg23: memref<1x1x128xf32, #tpu.memory_space<vmem>>, %arg24: memref<1x128x32xbf16, #tpu.memory_space<vmem>>, %arg25: memref<1x1x32xf32, #tpu.memory_space<vmem>>, %arg26: memref<1x1x32xf32, #tpu.memory_space<vmem>>, %arg27: memref<1x1x32xf32, #tpu.memory_space<vmem>>, %arg28: memref<1x32x32xbf16, #tpu.memory_space<vmem>>, %arg29: memref<1x32x32xbf16, #tpu.memory_space<vmem>>, %arg30: memref<1x32x32xbf16, #tpu.memory_space<vmem>>, %arg31: memref<1x32x32xbf16, #tpu.memory_space<vmem>>, %arg32: memref<1x1x32xf32, #tpu.memory_space<vmem>>, %arg33: memref<1x1x32xf32, #tpu.memory_space<vmem>>, %arg34: memref<1x1x32xf32, #tpu.memory_space<vmem>>, %arg35: memref<1x32x32xbf16, #tpu.memory_space<vmem>>, %arg36: memref<1x32x32xbf16, #tpu.memory_space<vmem>>, %arg37: memref<1x32x32xbf16, #tpu.memory_space<vmem>>, %arg38: memref<1x32x32xbf16, #tpu.memory_space<vmem>>, %arg39: memref<1x1x32xf32, #tpu.memory_space<vmem>>, %arg40: memref<1x1x32xf32, #tpu.memory_space<vmem>>, %arg41: memref<1x1x32xf32, #tpu.memory_space<vmem>>, %arg42: memref<1x32x128xbf16, #tpu.memory_space<vmem>>, %arg43: memref<1x1x128xf32, #tpu.memory_space<vmem>>, %arg44: memref<1x128x32xbf16, #tpu.memory_space<vmem>>, %arg45: memref<1x1x32xf32, #tpu.memory_space<vmem>>, %arg46: memref<1x1x32xf32, #tpu.memory_space<vmem>>, %arg47: memref<1x1x32xf32, #tpu.memory_space<vmem>>, %arg48: memref<32x128xbf16, #tpu.memory_space<vmem>>, %arg49: memref<1x128xf32, #tpu.memory_space<vmem>>, %arg50: memref<48x128xf32, #tpu.memory_space<vmem>>, %arg51: memref<48x32xf32, #tpu.memory_space<vmem>>, %arg52: memref<48x32xf32, #tpu.memory_space<vmem>>) attributes {dimension_semantics = [], scalar_prefetch = 0 : i64, scratch_operands = 2 : i64, tpu.core_type = #tpu.core_type<tc>} {
    %c0 = arith.constant 0 : index
    %c0_0 = arith.constant 0 : index
    %c0_1 = arith.constant 0 : index
    %0 = vector.load %arg4[%c0, %c0_0, %c0_1] : memref<2x16x16xbf16, #tpu.memory_space<vmem>>, vector<1x16x16xbf16>
    %1 = vector.shape_cast %0 : vector<1x16x16xbf16> to vector<16x16xbf16>
    %c1 = arith.constant 1 : index
    %c0_2 = arith.constant 0 : index
    %c0_3 = arith.constant 0 : index
    %2 = vector.load %arg4[%c1, %c0_2, %c0_3] : memref<2x16x16xbf16, #tpu.memory_space<vmem>>, vector<1x16x16xbf16>
    %3 = vector.shape_cast %2 : vector<1x16x16xbf16> to vector<16x16xbf16>
    %c0_4 = arith.constant 0 : index
    %c0_5 = arith.constant 0 : index
    %4 = vector.load %arg6[%c0_4, %c0_5] : memref<32x32xbf16, #tpu.memory_space<vmem>>, vector<32x32xbf16>
    %c0_6 = arith.constant 0 : index
    %c0_7 = arith.constant 0 : index
    %c0_8 = arith.constant 0 : index
    %5 = vector.load %arg2[%c0_6, %c0_7, %c0_8] : memref<3x16x2xf32, #tpu.memory_space<vmem>>, vector<1x16x2xf32>
    %6 = vector.shape_cast %5 : vector<1x16x2xf32> to vector<16x2xf32>
    %c0_9 = arith.constant 0 : index
    %c0_10 = arith.constant 0 : index
    %c0_11 = arith.constant 0 : index
    %7 = vector.load %arg7[%c0_9, %c0_10, %c0_11] : memref<3x2x32xf32, #tpu.memory_space<vmem>>, vector<1x2x32xf32>
    %8 = vector.shape_cast %7 : vector<1x2x32xf32> to vector<2x32xf32>
    %9 = vector.extract_strided_slice %6 {offsets = [0, 0], sizes = [16, 1], strides = [1, 1]} : vector<16x2xf32> to vector<16x1xf32>
    %10 = vector.extract_strided_slice %8 {offsets = [0, 0], sizes = [1, 32], strides = [1, 1]} : vector<2x32xf32> to vector<1x32xf32>
    %11 = vector.broadcast %9 : vector<16x1xf32> to vector<16x32xf32>
    %12 = vector.broadcast %10 : vector<1x32xf32> to vector<16x32xf32>
    %13 = arith.mulf %11, %12 : vector<16x32xf32>
    %14 = vector.extract_strided_slice %6 {offsets = [0, 1], sizes = [16, 1], strides = [1, 1]} : vector<16x2xf32> to vector<16x1xf32>
    %15 = vector.extract_strided_slice %8 {offsets = [1, 0], sizes = [1, 32], strides = [1, 1]} : vector<2x32xf32> to vector<1x32xf32>
    %16 = vector.broadcast %14 : vector<16x1xf32> to vector<16x32xf32>
    %17 = vector.broadcast %15 : vector<1x32xf32> to vector<16x32xf32>
    %18 = arith.mulf %16, %17 : vector<16x32xf32>
    %19 = arith.addf %13, %18 : vector<16x32xf32>
    %c0_12 = arith.constant 0 : index
    %c0_13 = arith.constant 0 : index
    %c0_14 = arith.constant 0 : index
    %c0_15 = arith.constant 0 : index
    %20 = vector.load %arg8[%c0_12, %c0_13, %c0_14, %c0_15] : memref<3x2x2x32xf32, #tpu.memory_space<vmem>>, vector<1x1x2x32xf32>
    %21 = vector.shape_cast %20 : vector<1x1x2x32xf32> to vector<2x32xf32>
    %22 = vector.extract_strided_slice %6 {offsets = [0, 0], sizes = [16, 1], strides = [1, 1]} : vector<16x2xf32> to vector<16x1xf32>
    %23 = vector.extract_strided_slice %21 {offsets = [0, 0], sizes = [1, 32], strides = [1, 1]} : vector<2x32xf32> to vector<1x32xf32>
    %24 = vector.broadcast %22 : vector<16x1xf32> to vector<16x32xf32>
    %25 = vector.broadcast %23 : vector<1x32xf32> to vector<16x32xf32>
    %26 = arith.mulf %24, %25 : vector<16x32xf32>
    %27 = vector.extract_strided_slice %6 {offsets = [0, 1], sizes = [16, 1], strides = [1, 1]} : vector<16x2xf32> to vector<16x1xf32>
    %28 = vector.extract_strided_slice %21 {offsets = [1, 0], sizes = [1, 32], strides = [1, 1]} : vector<2x32xf32> to vector<1x32xf32>
    %29 = vector.broadcast %27 : vector<16x1xf32> to vector<16x32xf32>
    %30 = vector.broadcast %28 : vector<1x32xf32> to vector<16x32xf32>
    %31 = arith.mulf %29, %30 : vector<16x32xf32>
    %32 = arith.addf %26, %31 : vector<16x32xf32>
    %33 = arith.truncf %32 : vector<16x32xf32> to vector<16x32xbf16>
    %cst = arith.constant dense<0.000000e+00> : vector<16x32xf32>
    %34 = tpu.matmul %1, %33, %cst {dimension_numbers = #tpu.dot_dimension_numbers<[1], [0], [0], [1], [0, 0, 1, 1], [], []>} : vector<16x16xbf16>, vector<16x32xbf16>, vector<16x32xf32> -> vector<16x32xf32>
    %35 = arith.addf %19, %34 : vector<16x32xf32>
    %c0_16 = arith.constant 0 : index
    %c1_17 = arith.constant 1 : index
    %c0_18 = arith.constant 0 : index
    %c0_19 = arith.constant 0 : index
    %36 = vector.load %arg8[%c0_16, %c1_17, %c0_18, %c0_19] : memref<3x2x2x32xf32, #tpu.memory_space<vmem>>, vector<1x1x2x32xf32>
    %37 = vector.shape_cast %36 : vector<1x1x2x32xf32> to vector<2x32xf32>
    %38 = vector.extract_strided_slice %6 {offsets = [0, 0], sizes = [16, 1], strides = [1, 1]} : vector<16x2xf32> to vector<16x1xf32>
    %39 = vector.extract_strided_slice %37 {offsets = [0, 0], sizes = [1, 32], strides = [1, 1]} : vector<2x32xf32> to vector<1x32xf32>
    %40 = vector.broadcast %38 : vector<16x1xf32> to vector<16x32xf32>
    %41 = vector.broadcast %39 : vector<1x32xf32> to vector<16x32xf32>
    %42 = arith.mulf %40, %41 : vector<16x32xf32>
    %43 = vector.extract_strided_slice %6 {offsets = [0, 1], sizes = [16, 1], strides = [1, 1]} : vector<16x2xf32> to vector<16x1xf32>
    %44 = vector.extract_strided_slice %37 {offsets = [1, 0], sizes = [1, 32], strides = [1, 1]} : vector<2x32xf32> to vector<1x32xf32>
    %45 = vector.broadcast %43 : vector<16x1xf32> to vector<16x32xf32>
    %46 = vector.broadcast %44 : vector<1x32xf32> to vector<16x32xf32>
    %47 = arith.mulf %45, %46 : vector<16x32xf32>
    %48 = arith.addf %42, %47 : vector<16x32xf32>
    %49 = arith.truncf %48 : vector<16x32xf32> to vector<16x32xbf16>
    %cst_20 = arith.constant dense<0.000000e+00> : vector<16x32xf32>
    %50 = tpu.matmul %3, %49, %cst_20 {dimension_numbers = #tpu.dot_dimension_numbers<[1], [0], [0], [1], [0, 0, 1, 1], [], []>} : vector<16x16xbf16>, vector<16x32xbf16>, vector<16x32xf32> -> vector<16x32xf32>
    %51 = arith.addf %35, %50 : vector<16x32xf32>
    %cst_21 = arith.constant 0.000000e+00 : f32
    %52 = vector.broadcast %cst_21 : f32 to vector<16x32xf32>
    %53 = arith.maximumf %51, %52 : vector<16x32xf32>
    %54 = arith.truncf %53 : vector<16x32xf32> to vector<16x32xbf16>
    %c0_22 = arith.constant 0 : index
    %c0_23 = arith.constant 0 : index
    %c0_24 = arith.constant 0 : index
    %c0_25 = arith.constant 0 : index
    %55 = vector.load %arg9[%c0_22, %c0_23, %c0_24, %c0_25] : memref<3x1x32x32xbf16, #tpu.memory_space<vmem>>, vector<1x1x32x32xbf16>
    %56 = vector.shape_cast %55 : vector<1x1x32x32xbf16> to vector<32x32xbf16>
    %cst_26 = arith.constant dense<0.000000e+00> : vector<16x32xf32>
    %57 = tpu.matmul %54, %56, %cst_26 {dimension_numbers = #tpu.dot_dimension_numbers<[1], [0], [0], [1], [0, 0, 1, 1], [], []>} : vector<16x32xbf16>, vector<32x32xbf16>, vector<16x32xf32> -> vector<16x32xf32>
    %c0_27 = arith.constant 0 : index
    %c0_28 = arith.constant 0 : index
    %c0_29 = arith.constant 0 : index
    %c0_30 = arith.constant 0 : index
    %c0_31 = arith.constant 0 : index
    %58 = vector.load %arg10[%c0_27, %c0_28, %c0_29, %c0_30, %c0_31] : memref<3x1x2x32x32xbf16, #tpu.memory_space<vmem>>, vector<1x1x1x32x32xbf16>
    %59 = vector.shape_cast %58 : vector<1x1x1x32x32xbf16> to vector<32x32xbf16>
    %cst_32 = arith.constant dense<0.000000e+00> : vector<16x32xf32>
    %60 = tpu.matmul %54, %59, %cst_32 {dimension_numbers = #tpu.dot_dimension_numbers<[1], [0], [0], [1], [0, 0, 1, 1], [], []>} : vector<16x32xbf16>, vector<32x32xbf16>, vector<16x32xf32> -> vector<16x32xf32>
    %61 = arith.truncf %60 : vector<16x32xf32> to vector<16x32xbf16>
    %cst_33 = arith.constant dense<0.000000e+00> : vector<16x32xf32>
    %62 = tpu.matmul %1, %61, %cst_33 {dimension_numbers = #tpu.dot_dimension_numbers<[1], [0], [0], [1], [0, 0, 1, 1], [], []>} : vector<16x16xbf16>, vector<16x32xbf16>, vector<16x32xf32> -> vector<16x32xf32>
    %63 = arith.addf %57, %62 : vector<16x32xf32>
    %c0_34 = arith.constant 0 : index
    %c0_35 = arith.constant 0 : index
    %c1_36 = arith.constant 1 : index
    %c0_37 = arith.constant 0 : index
    %c0_38 = arith.constant 0 : index
    %64 = vector.load %arg10[%c0_34, %c0_35, %c1_36, %c0_37, %c0_38] : memref<3x1x2x32x32xbf16, #tpu.memory_space<vmem>>, vector<1x1x1x32x32xbf16>
    %65 = vector.shape_cast %64 : vector<1x1x1x32x32xbf16> to vector<32x32xbf16>
    %cst_39 = arith.constant dense<0.000000e+00> : vector<16x32xf32>
    %66 = tpu.matmul %54, %65, %cst_39 {dimension_numbers = #tpu.dot_dimension_numbers<[1], [0], [0], [1], [0, 0, 1, 1], [], []>} : vector<16x32xbf16>, vector<32x32xbf16>, vector<16x32xf32> -> vector<16x32xf32>
    %67 = arith.truncf %66 : vector<16x32xf32> to vector<16x32xbf16>
    %cst_40 = arith.constant dense<0.000000e+00> : vector<16x32xf32>
    %68 = tpu.matmul %3, %67, %cst_40 {dimension_numbers = #tpu.dot_dimension_numbers<[1], [0], [0], [1], [0, 0, 1, 1], [], []>} : vector<16x16xbf16>, vector<16x32xbf16>, vector<16x32xf32> -> vector<16x32xf32>
    %69 = arith.addf %63, %68 : vector<16x32xf32>
    %c0_41 = arith.constant 0 : index
    %c0_42 = arith.constant 0 : index
    %70 = memref.load %arg0[%c0_41, %c0_42] : memref<3x2xi32, #tpu.memory_space<smem>>
    %71 = arith.index_cast %70 : i32 to index
    %c0_43 = arith.constant 0 : index
    %72 = vector.load %arg5[%71, %c0_43] : memref<96x32xf32, #tpu.memory_space<vmem>>, vector<1x32xf32>
    %73 = vector.extract_strided_slice %69 {offsets = [0, 0], sizes = [8, 32], strides = [1, 1]} : vector<16x32xf32> to vector<8x32xf32>
    %74 = vector.broadcast %72 : vector<1x32xf32> to vector<8x32xf32>
    %75 = arith.addf %73, %74 : vector<8x32xf32>
    %c0_44 = arith.constant 0 : index
    %c0_45 = arith.constant 0 : index
    %76 = vector.load %arg51[%c0_44, %c0_45] : memref<48x32xf32, #tpu.memory_space<vmem>>, vector<8x32xf32>
    tpu.vector_store %arg51[%c0_44, %c0_45], %75 {strides = array<i32>} : memref<48x32xf32, #tpu.memory_space<vmem>>, vector<8x32xf32>,
    %c0_46 = arith.constant 0 : index
    %c1_47 = arith.constant 1 : index
    %77 = memref.load %arg0[%c0_46, %c1_47] : memref<3x2xi32, #tpu.memory_space<smem>>
    %78 = arith.index_cast %77 : i32 to index
    %c0_48 = arith.constant 0 : index
    %79 = vector.load %arg5[%78, %c0_48] : memref<96x32xf32, #tpu.memory_space<vmem>>, vector<1x32xf32>
    %80 = vector.extract_strided_slice %69 {offsets = [8, 0], sizes = [8, 32], strides = [1, 1]} : vector<16x32xf32> to vector<8x32xf32>
    %81 = vector.broadcast %79 : vector<1x32xf32> to vector<8x32xf32>
    %82 = arith.addf %80, %81 : vector<8x32xf32>
    %c8 = arith.constant 8 : index
    %c0_49 = arith.constant 0 : index
    %83 = vector.load %arg51[%c8, %c0_49] : memref<48x32xf32, #tpu.memory_space<vmem>>, vector<8x32xf32>
    tpu.vector_store %arg51[%c8, %c0_49], %82 {strides = array<i32>} : memref<48x32xf32, #tpu.memory_space<vmem>>, vector<8x32xf32>,
    %c1_50 = arith.constant 1 : index
    %c0_51 = arith.constant 0 : index
    %c0_52 = arith.constant 0 : index
    %84 = vector.load %arg2[%c1_50, %c0_51, %c0_52] : memref<3x16x2xf32, #tpu.memory_space<vmem>>, vector<1x16x2xf32>
    %85 = vector.shape_cast %84 : vector<1x16x2xf32> to vector<16x2xf32>
    %c1_53 = arith.constant 1 : index
    %c0_54 = arith.constant 0 : index
    %c0_55 = arith.constant 0 : index
    %86 = vector.load %arg7[%c1_53, %c0_54, %c0_55] : memref<3x2x32xf32, #tpu.memory_space<vmem>>, vector<1x2x32xf32>
    %87 = vector.shape_cast %86 : vector<1x2x32xf32> to vector<2x32xf32>
    %88 = vector.extract_strided_slice %85 {offsets = [0, 0], sizes = [16, 1], strides = [1, 1]} : vector<16x2xf32> to vector<16x1xf32>
    %89 = vector.extract_strided_slice %87 {offsets = [0, 0], sizes = [1, 32], strides = [1, 1]} : vector<2x32xf32> to vector<1x32xf32>
    %90 = vector.broadcast %88 : vector<16x1xf32> to vector<16x32xf32>
    %91 = vector.broadcast %89 : vector<1x32xf32> to vector<16x32xf32>
    %92 = arith.mulf %90, %91 : vector<16x32xf32>
    %93 = vector.extract_strided_slice %85 {offsets = [0, 1], sizes = [16, 1], strides = [1, 1]} : vector<16x2xf32> to vector<16x1xf32>
    %94 = vector.extract_strided_slice %87 {offsets = [1, 0], sizes = [1, 32], strides = [1, 1]} : vector<2x32xf32> to vector<1x32xf32>
    %95 = vector.broadcast %93 : vector<16x1xf32> to vector<16x32xf32>
    %96 = vector.broadcast %94 : vector<1x32xf32> to vector<16x32xf32>
    %97 = arith.mulf %95, %96 : vector<16x32xf32>
    %98 = arith.addf %92, %97 : vector<16x32xf32>
    %c1_56 = arith.constant 1 : index
    %c0_57 = arith.constant 0 : index
    %c0_58 = arith.constant 0 : index
    %c0_59 = arith.constant 0 : index
    %99 = vector.load %arg8[%c1_56, %c0_57, %c0_58, %c0_59] : memref<3x2x2x32xf32, #tpu.memory_space<vmem>>, vector<1x1x2x32xf32>
    %100 = vector.shape_cast %99 : vector<1x1x2x32xf32> to vector<2x32xf32>
    %101 = vector.extract_strided_slice %85 {offsets = [0, 0], sizes = [16, 1], strides = [1, 1]} : vector<16x2xf32> to vector<16x1xf32>
    %102 = vector.extract_strided_slice %100 {offsets = [0, 0], sizes = [1, 32], strides = [1, 1]} : vector<2x32xf32> to vector<1x32xf32>
    %103 = vector.broadcast %101 : vector<16x1xf32> to vector<16x32xf32>
    %104 = vector.broadcast %102 : vector<1x32xf32> to vector<16x32xf32>
    %105 = arith.mulf %103, %104 : vector<16x32xf32>
    %106 = vector.extract_strided_slice %85 {offsets = [0, 1], sizes = [16, 1], strides = [1, 1]} : vector<16x2xf32> to vector<16x1xf32>
    %107 = vector.extract_strided_slice %100 {offsets = [1, 0], sizes = [1, 32], strides = [1, 1]} : vector<2x32xf32> to vector<1x32xf32>
    %108 = vector.broadcast %106 : vector<16x1xf32> to vector<16x32xf32>
    %109 = vector.broadcast %107 : vector<1x32xf32> to vector<16x32xf32>
    %110 = arith.mulf %108, %109 : vector<16x32xf32>
    %111 = arith.addf %105, %110 : vector<16x32xf32>
    %112 = arith.truncf %111 : vector<16x32xf32> to vector<16x32xbf16>
    %cst_60 = arith.constant dense<0.000000e+00> : vector<16x32xf32>
    %113 = tpu.matmul %1, %112, %cst_60 {dimension_numbers = #tpu.dot_dimension_numbers<[1], [0], [0], [1], [0, 0, 1, 1], [], []>} : vector<16x16xbf16>, vector<16x32xbf16>, vector<16x32xf32> -> vector<16x32xf32>
    %114 = arith.addf %98, %113 : vector<16x32xf32>
    %c1_61 = arith.constant 1 : index
    %c1_62 = arith.constant 1 : index
    %c0_63 = arith.constant 0 : index
    %c0_64 = arith.constant 0 : index
    %115 = vector.load %arg8[%c1_61, %c1_62, %c0_63, %c0_64] : memref<3x2x2x32xf32, #tpu.memory_space<vmem>>, vector<1x1x2x32xf32>
    %116 = vector.shape_cast %115 : vector<1x1x2x32xf32> to vector<2x32xf32>
    %117 = vector.extract_strided_slice %85 {offsets = [0, 0], sizes = [16, 1], strides = [1, 1]} : vector<16x2xf32> to vector<16x1xf32>
    %118 = vector.extract_strided_slice %116 {offsets = [0, 0], sizes = [1, 32], strides = [1, 1]} : vector<2x32xf32> to vector<1x32xf32>
    %119 = vector.broadcast %117 : vector<16x1xf32> to vector<16x32xf32>
    %120 = vector.broadcast %118 : vector<1x32xf32> to vector<16x32xf32>
    %121 = arith.mulf %119, %120 : vector<16x32xf32>
    %122 = vector.extract_strided_slice %85 {offsets = [0, 1], sizes = [16, 1], strides = [1, 1]} : vector<16x2xf32> to vector<16x1xf32>
    %123 = vector.extract_strided_slice %116 {offsets = [1, 0], sizes = [1, 32], strides = [1, 1]} : vector<2x32xf32> to vector<1x32xf32>
    %124 = vector.broadcast %122 : vector<16x1xf32> to vector<16x32xf32>
    %125 = vector.broadcast %123 : vector<1x32xf32> to vector<16x32xf32>
    %126 = arith.mulf %124, %125 : vector<16x32xf32>
    %127 = arith.addf %121, %126 : vector<16x32xf32>
    %128 = arith.truncf %127 : vector<16x32xf32> to vector<16x32xbf16>
    %cst_65 = arith.constant dense<0.000000e+00> : vector<16x32xf32>
    %129 = tpu.matmul %3, %128, %cst_65 {dimension_numbers = #tpu.dot_dimension_numbers<[1], [0], [0], [1], [0, 0, 1, 1], [], []>} : vector<16x16xbf16>, vector<16x32xbf16>, vector<16x32xf32> -> vector<16x32xf32>
    %130 = arith.addf %114, %129 : vector<16x32xf32>
    %cst_66 = arith.constant 0.000000e+00 : f32
    %131 = vector.broadcast %cst_66 : f32 to vector<16x32xf32>
    %132 = arith.maximumf %130, %131 : vector<16x32xf32>
    %133 = arith.truncf %132 : vector<16x32xf32> to vector<16x32xbf16>
    %c1_67 = arith.constant 1 : index
    %c0_68 = arith.constant 0 : index
    %c0_69 = arith.constant 0 : index
    %c0_70 = arith.constant 0 : index
    %134 = vector.load %arg9[%c1_67, %c0_68, %c0_69, %c0_70] : memref<3x1x32x32xbf16, #tpu.memory_space<vmem>>, vector<1x1x32x32xbf16>
    %135 = vector.shape_cast %134 : vector<1x1x32x32xbf16> to vector<32x32xbf16>
    %cst_71 = arith.constant dense<0.000000e+00> : vector<16x32xf32>
    %136 = tpu.matmul %133, %135, %cst_71 {dimension_numbers = #tpu.dot_dimension_numbers<[1], [0], [0], [1], [0, 0, 1, 1], [], []>} : vector<16x32xbf16>, vector<32x32xbf16>, vector<16x32xf32> -> vector<16x32xf32>
    %c1_72 = arith.constant 1 : index
    %c0_73 = arith.constant 0 : index
    %c0_74 = arith.constant 0 : index
    %c0_75 = arith.constant 0 : index
    %c0_76 = arith.constant 0 : index
    %137 = vector.load %arg10[%c1_72, %c0_73, %c0_74, %c0_75, %c0_76] : memref<3x1x2x32x32xbf16, #tpu.memory_space<vmem>>, vector<1x1x1x32x32xbf16>
    %138 = vector.shape_cast %137 : vector<1x1x1x32x32xbf16> to vector<32x32xbf16>
    %cst_77 = arith.constant dense<0.000000e+00> : vector<16x32xf32>
    %139 = tpu.matmul %133, %138, %cst_77 {dimension_numbers = #tpu.dot_dimension_numbers<[1], [0], [0], [1], [0, 0, 1, 1], [], []>} : vector<16x32xbf16>, vector<32x32xbf16>, vector<16x32xf32> -> vector<16x32xf32>
    %140 = arith.truncf %139 : vector<16x32xf32> to vector<16x32xbf16>
    %cst_78 = arith.constant dense<0.000000e+00> : vector<16x32xf32>
    %141 = tpu.matmul %1, %140, %cst_78 {dimension_numbers = #tpu.dot_dimension_numbers<[1], [0], [0], [1], [0, 0, 1, 1], [], []>} : vector<16x16xbf16>, vector<16x32xbf16>, vector<16x32xf32> -> vector<16x32xf32>
    %142 = arith.addf %136, %141 : vector<16x32xf32>
    %c1_79 = arith.constant 1 : index
    %c0_80 = arith.constant 0 : index
    %c1_81 = arith.constant 1 : index
    %c0_82 = arith.constant 0 : index
    %c0_83 = arith.constant 0 : index
    %143 = vector.load %arg10[%c1_79, %c0_80, %c1_81, %c0_82, %c0_83] : memref<3x1x2x32x32xbf16, #tpu.memory_space<vmem>>, vector<1x1x1x32x32xbf16>
    %144 = vector.shape_cast %143 : vector<1x1x1x32x32xbf16> to vector<32x32xbf16>
    %cst_84 = arith.constant dense<0.000000e+00> : vector<16x32xf32>
    %145 = tpu.matmul %133, %144, %cst_84 {dimension_numbers = #tpu.dot_dimension_numbers<[1], [0], [0], [1], [0, 0, 1, 1], [], []>} : vector<16x32xbf16>, vector<32x32xbf16>, vector<16x32xf32> -> vector<16x32xf32>
    %146 = arith.truncf %145 : vector<16x32xf32> to vector<16x32xbf16>
    %cst_85 = arith.constant dense<0.000000e+00> : vector<16x32xf32>
    %147 = tpu.matmul %3, %146, %cst_85 {dimension_numbers = #tpu.dot_dimension_numbers<[1], [0], [0], [1], [0, 0, 1, 1], [], []>} : vector<16x16xbf16>, vector<16x32xbf16>, vector<16x32xf32> -> vector<16x32xf32>
    %148 = arith.addf %142, %147 : vector<16x32xf32>
    %c1_86 = arith.constant 1 : index
    %c0_87 = arith.constant 0 : index
    %149 = memref.load %arg0[%c1_86, %c0_87] : memref<3x2xi32, #tpu.memory_space<smem>>
    %150 = arith.index_cast %149 : i32 to index
    %c0_88 = arith.constant 0 : index
    %151 = vector.load %arg5[%150, %c0_88] : memref<96x32xf32, #tpu.memory_space<vmem>>, vector<1x32xf32>
    %152 = vector.extract_strided_slice %148 {offsets = [0, 0], sizes = [8, 32], strides = [1, 1]} : vector<16x32xf32> to vector<8x32xf32>
    %153 = vector.broadcast %151 : vector<1x32xf32> to vector<8x32xf32>
    %154 = arith.addf %152, %153 : vector<8x32xf32>
    %c16 = arith.constant 16 : index
    %c0_89 = arith.constant 0 : index
    %155 = vector.load %arg51[%c16, %c0_89] : memref<48x32xf32, #tpu.memory_space<vmem>>, vector<8x32xf32>
    tpu.vector_store %arg51[%c16, %c0_89], %154 {strides = array<i32>} : memref<48x32xf32, #tpu.memory_space<vmem>>, vector<8x32xf32>,
    %c1_90 = arith.constant 1 : index
    %c1_91 = arith.constant 1 : index
    %156 = memref.load %arg0[%c1_90, %c1_91] : memref<3x2xi32, #tpu.memory_space<smem>>
    %157 = arith.index_cast %156 : i32 to index
    %c0_92 = arith.constant 0 : index
    %158 = vector.load %arg5[%157, %c0_92] : memref<96x32xf32, #tpu.memory_space<vmem>>, vector<1x32xf32>
    %159 = vector.extract_strided_slice %148 {offsets = [8, 0], sizes = [8, 32], strides = [1, 1]} : vector<16x32xf32> to vector<8x32xf32>
    %160 = vector.broadcast %158 : vector<1x32xf32> to vector<8x32xf32>
    %161 = arith.addf %159, %160 : vector<8x32xf32>
    %c24 = arith.constant 24 : index
    %c0_93 = arith.constant 0 : index
    %162 = vector.load %arg51[%c24, %c0_93] : memref<48x32xf32, #tpu.memory_space<vmem>>, vector<8x32xf32>
    tpu.vector_store %arg51[%c24, %c0_93], %161 {strides = array<i32>} : memref<48x32xf32, #tpu.memory_space<vmem>>, vector<8x32xf32>,
    %c2 = arith.constant 2 : index
    %c0_94 = arith.constant 0 : index
    %c0_95 = arith.constant 0 : index
    %163 = vector.load %arg2[%c2, %c0_94, %c0_95] : memref<3x16x2xf32, #tpu.memory_space<vmem>>, vector<1x16x2xf32>
    %164 = vector.shape_cast %163 : vector<1x16x2xf32> to vector<16x2xf32>
    %c2_96 = arith.constant 2 : index
    %c0_97 = arith.constant 0 : index
    %c0_98 = arith.constant 0 : index
    %165 = vector.load %arg7[%c2_96, %c0_97, %c0_98] : memref<3x2x32xf32, #tpu.memory_space<vmem>>, vector<1x2x32xf32>
    %166 = vector.shape_cast %165 : vector<1x2x32xf32> to vector<2x32xf32>
    %167 = vector.extract_strided_slice %164 {offsets = [0, 0], sizes = [16, 1], strides = [1, 1]} : vector<16x2xf32> to vector<16x1xf32>
    %168 = vector.extract_strided_slice %166 {offsets = [0, 0], sizes = [1, 32], strides = [1, 1]} : vector<2x32xf32> to vector<1x32xf32>
    %169 = vector.broadcast %167 : vector<16x1xf32> to vector<16x32xf32>
    %170 = vector.broadcast %168 : vector<1x32xf32> to vector<16x32xf32>
    %171 = arith.mulf %169, %170 : vector<16x32xf32>
    %172 = vector.extract_strided_slice %164 {offsets = [0, 1], sizes = [16, 1], strides = [1, 1]} : vector<16x2xf32> to vector<16x1xf32>
    %173 = vector.extract_strided_slice %166 {offsets = [1, 0], sizes = [1, 32], strides = [1, 1]} : vector<2x32xf32> to vector<1x32xf32>
    %174 = vector.broadcast %172 : vector<16x1xf32> to vector<16x32xf32>
    %175 = vector.broadcast %173 : vector<1x32xf32> to vector<16x32xf32>
    %176 = arith.mulf %174, %175 : vector<16x32xf32>
    %177 = arith.addf %171, %176 : vector<16x32xf32>
    %c2_99 = arith.constant 2 : index
    %c0_100 = arith.constant 0 : index
    %c0_101 = arith.constant 0 : index
    %c0_102 = arith.constant 0 : index
    %178 = vector.load %arg8[%c2_99, %c0_100, %c0_101, %c0_102] : memref<3x2x2x32xf32, #tpu.memory_space<vmem>>, vector<1x1x2x32xf32>
    %179 = vector.shape_cast %178 : vector<1x1x2x32xf32> to vector<2x32xf32>
    %180 = vector.extract_strided_slice %164 {offsets = [0, 0], sizes = [16, 1], strides = [1, 1]} : vector<16x2xf32> to vector<16x1xf32>
    %181 = vector.extract_strided_slice %179 {offsets = [0, 0], sizes = [1, 32], strides = [1, 1]} : vector<2x32xf32> to vector<1x32xf32>
    %182 = vector.broadcast %180 : vector<16x1xf32> to vector<16x32xf32>
    %183 = vector.broadcast %181 : vector<1x32xf32> to vector<16x32xf32>
    %184 = arith.mulf %182, %183 : vector<16x32xf32>
    %185 = vector.extract_strided_slice %164 {offsets = [0, 1], sizes = [16, 1], strides = [1, 1]} : vector<16x2xf32> to vector<16x1xf32>
    %186 = vector.extract_strided_slice %179 {offsets = [1, 0], sizes = [1, 32], strides = [1, 1]} : vector<2x32xf32> to vector<1x32xf32>
    %187 = vector.broadcast %185 : vector<16x1xf32> to vector<16x32xf32>
    %188 = vector.broadcast %186 : vector<1x32xf32> to vector<16x32xf32>
    %189 = arith.mulf %187, %188 : vector<16x32xf32>
    %190 = arith.addf %184, %189 : vector<16x32xf32>
    %191 = arith.truncf %190 : vector<16x32xf32> to vector<16x32xbf16>
    %cst_103 = arith.constant dense<0.000000e+00> : vector<16x32xf32>
    %192 = tpu.matmul %1, %191, %cst_103 {dimension_numbers = #tpu.dot_dimension_numbers<[1], [0], [0], [1], [0, 0, 1, 1], [], []>} : vector<16x16xbf16>, vector<16x32xbf16>, vector<16x32xf32> -> vector<16x32xf32>
    %193 = arith.addf %177, %192 : vector<16x32xf32>
    %c2_104 = arith.constant 2 : index
    %c1_105 = arith.constant 1 : index
    %c0_106 = arith.constant 0 : index
    %c0_107 = arith.constant 0 : index
    %194 = vector.load %arg8[%c2_104, %c1_105, %c0_106, %c0_107] : memref<3x2x2x32xf32, #tpu.memory_space<vmem>>, vector<1x1x2x32xf32>
    %195 = vector.shape_cast %194 : vector<1x1x2x32xf32> to vector<2x32xf32>
    %196 = vector.extract_strided_slice %164 {offsets = [0, 0], sizes = [16, 1], strides = [1, 1]} : vector<16x2xf32> to vector<16x1xf32>
    %197 = vector.extract_strided_slice %195 {offsets = [0, 0], sizes = [1, 32], strides = [1, 1]} : vector<2x32xf32> to vector<1x32xf32>
    %198 = vector.broadcast %196 : vector<16x1xf32> to vector<16x32xf32>
    %199 = vector.broadcast %197 : vector<1x32xf32> to vector<16x32xf32>
    %200 = arith.mulf %198, %199 : vector<16x32xf32>
    %201 = vector.extract_strided_slice %164 {offsets = [0, 1], sizes = [16, 1], strides = [1, 1]} : vector<16x2xf32> to vector<16x1xf32>
    %202 = vector.extract_strided_slice %195 {offsets = [1, 0], sizes = [1, 32], strides = [1, 1]} : vector<2x32xf32> to vector<1x32xf32>
    %203 = vector.broadcast %201 : vector<16x1xf32> to vector<16x32xf32>
    %204 = vector.broadcast %202 : vector<1x32xf32> to vector<16x32xf32>
    %205 = arith.mulf %203, %204 : vector<16x32xf32>
    %206 = arith.addf %200, %205 : vector<16x32xf32>
    %207 = arith.truncf %206 : vector<16x32xf32> to vector<16x32xbf16>
    %cst_108 = arith.constant dense<0.000000e+00> : vector<16x32xf32>
    %208 = tpu.matmul %3, %207, %cst_108 {dimension_numbers = #tpu.dot_dimension_numbers<[1], [0], [0], [1], [0, 0, 1, 1], [], []>} : vector<16x16xbf16>, vector<16x32xbf16>, vector<16x32xf32> -> vector<16x32xf32>
    %209 = arith.addf %193, %208 : vector<16x32xf32>
    %cst_109 = arith.constant 0.000000e+00 : f32
    %210 = vector.broadcast %cst_109 : f32 to vector<16x32xf32>
    %211 = arith.maximumf %209, %210 : vector<16x32xf32>
    %212 = arith.truncf %211 : vector<16x32xf32> to vector<16x32xbf16>
    %c2_110 = arith.constant 2 : index
    %c0_111 = arith.constant 0 : index
    %c0_112 = arith.constant 0 : index
    %c0_113 = arith.constant 0 : index
    %213 = vector.load %arg9[%c2_110, %c0_111, %c0_112, %c0_113] : memref<3x1x32x32xbf16, #tpu.memory_space<vmem>>, vector<1x1x32x32xbf16>
    %214 = vector.shape_cast %213 : vector<1x1x32x32xbf16> to vector<32x32xbf16>
    %cst_114 = arith.constant dense<0.000000e+00> : vector<16x32xf32>
    %215 = tpu.matmul %212, %214, %cst_114 {dimension_numbers = #tpu.dot_dimension_numbers<[1], [0], [0], [1], [0, 0, 1, 1], [], []>} : vector<16x32xbf16>, vector<32x32xbf16>, vector<16x32xf32> -> vector<16x32xf32>
    %c2_115 = arith.constant 2 : index
    %c0_116 = arith.constant 0 : index
    %c0_117 = arith.constant 0 : index
    %c0_118 = arith.constant 0 : index
    %c0_119 = arith.constant 0 : index
    %216 = vector.load %arg10[%c2_115, %c0_116, %c0_117, %c0_118, %c0_119] : memref<3x1x2x32x32xbf16, #tpu.memory_space<vmem>>, vector<1x1x1x32x32xbf16>
    %217 = vector.shape_cast %216 : vector<1x1x1x32x32xbf16> to vector<32x32xbf16>
    %cst_120 = arith.constant dense<0.000000e+00> : vector<16x32xf32>
    %218 = tpu.matmul %212, %217, %cst_120 {dimension_numbers = #tpu.dot_dimension_numbers<[1], [0], [0], [1], [0, 0, 1, 1], [], []>} : vector<16x32xbf16>, vector<32x32xbf16>, vector<16x32xf32> -> vector<16x32xf32>
    %219 = arith.truncf %218 : vector<16x32xf32> to vector<16x32xbf16>
    %cst_121 = arith.constant dense<0.000000e+00> : vector<16x32xf32>
    %220 = tpu.matmul %1, %219, %cst_121 {dimension_numbers = #tpu.dot_dimension_numbers<[1], [0], [0], [1], [0, 0, 1, 1], [], []>} : vector<16x16xbf16>, vector<16x32xbf16>, vector<16x32xf32> -> vector<16x32xf32>
    %221 = arith.addf %215, %220 : vector<16x32xf32>
    %c2_122 = arith.constant 2 : index
    %c0_123 = arith.constant 0 : index
    %c1_124 = arith.constant 1 : index
    %c0_125 = arith.constant 0 : index
    %c0_126 = arith.constant 0 : index
    %222 = vector.load %arg10[%c2_122, %c0_123, %c1_124, %c0_125, %c0_126] : memref<3x1x2x32x32xbf16, #tpu.memory_space<vmem>>, vector<1x1x1x32x32xbf16>
    %223 = vector.shape_cast %222 : vector<1x1x1x32x32xbf16> to vector<32x32xbf16>
    %cst_127 = arith.constant dense<0.000000e+00> : vector<16x32xf32>
    %224 = tpu.matmul %212, %223, %cst_127 {dimension_numbers = #tpu.dot_dimension_numbers<[1], [0], [0], [1], [0, 0, 1, 1], [], []>} : vector<16x32xbf16>, vector<32x32xbf16>, vector<16x32xf32> -> vector<16x32xf32>
    %225 = arith.truncf %224 : vector<16x32xf32> to vector<16x32xbf16>
    %cst_128 = arith.constant dense<0.000000e+00> : vector<16x32xf32>
    %226 = tpu.matmul %3, %225, %cst_128 {dimension_numbers = #tpu.dot_dimension_numbers<[1], [0], [0], [1], [0, 0, 1, 1], [], []>} : vector<16x16xbf16>, vector<16x32xbf16>, vector<16x32xf32> -> vector<16x32xf32>
    %227 = arith.addf %221, %226 : vector<16x32xf32>
    %c2_129 = arith.constant 2 : index
    %c0_130 = arith.constant 0 : index
    %228 = memref.load %arg0[%c2_129, %c0_130] : memref<3x2xi32, #tpu.memory_space<smem>>
    %229 = arith.index_cast %228 : i32 to index
    %c0_131 = arith.constant 0 : index
    %230 = vector.load %arg5[%229, %c0_131] : memref<96x32xf32, #tpu.memory_space<vmem>>, vector<1x32xf32>
    %231 = vector.extract_strided_slice %227 {offsets = [0, 0], sizes = [8, 32], strides = [1, 1]} : vector<16x32xf32> to vector<8x32xf32>
    %232 = vector.broadcast %230 : vector<1x32xf32> to vector<8x32xf32>
    %233 = arith.addf %231, %232 : vector<8x32xf32>
    %c32 = arith.constant 32 : index
    %c0_132 = arith.constant 0 : index
    %234 = vector.load %arg51[%c32, %c0_132] : memref<48x32xf32, #tpu.memory_space<vmem>>, vector<8x32xf32>
    tpu.vector_store %arg51[%c32, %c0_132], %233 {strides = array<i32>} : memref<48x32xf32, #tpu.memory_space<vmem>>, vector<8x32xf32>,
    %c2_133 = arith.constant 2 : index
    %c1_134 = arith.constant 1 : index
    %235 = memref.load %arg0[%c2_133, %c1_134] : memref<3x2xi32, #tpu.memory_space<smem>>
    %236 = arith.index_cast %235 : i32 to index
    %c0_135 = arith.constant 0 : index
    %237 = vector.load %arg5[%236, %c0_135] : memref<96x32xf32, #tpu.memory_space<vmem>>, vector<1x32xf32>
    %238 = vector.extract_strided_slice %227 {offsets = [8, 0], sizes = [8, 32], strides = [1, 1]} : vector<16x32xf32> to vector<8x32xf32>
    %239 = vector.broadcast %237 : vector<1x32xf32> to vector<8x32xf32>
    %240 = arith.addf %238, %239 : vector<8x32xf32>
    %c40 = arith.constant 40 : index
    %c0_136 = arith.constant 0 : index
    %241 = vector.load %arg51[%c40, %c0_136] : memref<48x32xf32, #tpu.memory_space<vmem>>, vector<8x32xf32>
    tpu.vector_store %arg51[%c40, %c0_136], %240 {strides = array<i32>} : memref<48x32xf32, #tpu.memory_space<vmem>>, vector<8x32xf32>,
    %c0_137 = arith.constant 0 : index
    %c0_138 = arith.constant 0 : index
    %242 = vector.load %arg51[%c0_137, %c0_138] : memref<48x32xf32, #tpu.memory_space<vmem>>, vector<48x32xf32>
    %c0_139 = arith.constant 0 : index
    %c0_140 = arith.constant 0 : index
    %c0_141 = arith.constant 0 : index
    %243 = vector.load %arg15[%c0_139, %c0_140, %c0_141] : memref<1x32x32xbf16, #tpu.memory_space<vmem>>, vector<1x32x32xbf16>
    %244 = vector.shape_cast %243 : vector<1x32x32xbf16> to vector<32x32xbf16>
    %c0_142 = arith.constant 0 : index
    %c0_143 = arith.constant 0 : index
    %c0_144 = arith.constant 0 : index
    %245 = vector.load %arg16[%c0_142, %c0_143, %c0_144] : memref<1x32x32xbf16, #tpu.memory_space<vmem>>, vector<1x32x32xbf16>
    %246 = vector.shape_cast %245 : vector<1x32x32xbf16> to vector<32x32xbf16>
    %c0_145 = arith.constant 0 : index
    %c0_146 = arith.constant 0 : index
    %c0_147 = arith.constant 0 : index
    %247 = vector.load %arg17[%c0_145, %c0_146, %c0_147] : memref<1x32x32xbf16, #tpu.memory_space<vmem>>, vector<1x32x32xbf16>
    %248 = vector.shape_cast %247 : vector<1x32x32xbf16> to vector<32x32xbf16>
    %c0_148 = arith.constant 0 : index
    %c0_149 = arith.constant 0 : index
    %c0_150 = arith.constant 0 : index
    %249 = vector.load %arg18[%c0_148, %c0_149, %c0_150] : memref<1x32x32xbf16, #tpu.memory_space<vmem>>, vector<1x32x32xbf16>
    %250 = vector.shape_cast %249 : vector<1x32x32xbf16> to vector<32x32xbf16>
    %c0_151 = arith.constant 0 : index
    %c0_152 = arith.constant 0 : index
    %c0_153 = arith.constant 0 : index
    %251 = vector.load %arg19[%c0_151, %c0_152, %c0_153] : memref<1x1x32xf32, #tpu.memory_space<vmem>>, vector<1x1x32xf32>
    %252 = vector.shape_cast %251 : vector<1x1x32xf32> to vector<1x32xf32>
    %253 = arith.truncf %242 : vector<48x32xf32> to vector<48x32xbf16>
    %254 = arith.truncf %242 : vector<48x32xf32> to vector<48x32xbf16>
    %cst_154 = arith.constant dense<0.000000e+00> : vector<48x32xf32>
    %255 = tpu.matmul %253, %244, %cst_154 {dimension_numbers = #tpu.dot_dimension_numbers<[1], [0], [0], [1], [0, 0, 1, 1], [], []>} : vector<48x32xbf16>, vector<32x32xbf16>, vector<48x32xf32> -> vector<48x32xf32>
    %cst_155 = arith.constant dense<0.000000e+00> : vector<48x32xf32>
    %256 = tpu.matmul %254, %246, %cst_155 {dimension_numbers = #tpu.dot_dimension_numbers<[1], [0], [0], [1], [0, 0, 1, 1], [], []>} : vector<48x32xbf16>, vector<32x32xbf16>, vector<48x32xf32> -> vector<48x32xf32>
    %cst_156 = arith.constant dense<0.000000e+00> : vector<48x32xf32>
    %257 = tpu.matmul %254, %248, %cst_156 {dimension_numbers = #tpu.dot_dimension_numbers<[1], [0], [0], [1], [0, 0, 1, 1], [], []>} : vector<48x32xbf16>, vector<32x32xbf16>, vector<48x32xf32> -> vector<48x32xf32>
    %258 = arith.mulf %255, %256 : vector<48x32xf32>
    %cst_157 = arith.constant 0.176776692 : f32
    %259 = vector.broadcast %cst_157 : f32 to vector<48x32xf32>
    %260 = arith.mulf %258, %259 : vector<48x32xf32>
    %cst_158 = arith.constant dense<0xFF800000> : vector<48xf32>
    %261 = vector.multi_reduction <maximumf>, %260, %cst_158 [1] : vector<48x32xf32> to vector<48xf32>
    %262 = vector.shape_cast %261 : vector<48xf32> to vector<48x1xf32>
    %263 = vector.broadcast %262 : vector<48x1xf32> to vector<48x32xf32>
    %264 = arith.subf %260, %263 : vector<48x32xf32>
    %265 = math.exp %264 : vector<48x32xf32>
    %266 = arith.truncf %265 : vector<48x32xf32> to vector<48x32xbf16>
    %cst_159 = arith.constant dense<0.000000e+00> : vector<48x32xf32>
    %267 = tpu.matmul %266, %4, %cst_159 {dimension_numbers = #tpu.dot_dimension_numbers<[1], [0], [0], [1], [0, 0, 1, 1], [], []>} : vector<48x32xbf16>, vector<32x32xbf16>, vector<48x32xf32> -> vector<48x32xf32>
    %268 = tpu.reciprocal %267 {approx = true} : vector<48x32xf32> -> vector<48x32xf32>
    %269 = arith.mulf %265, %268 : vector<48x32xf32>
    %270 = arith.mulf %257, %269 : vector<48x32xf32>
    %271 = arith.truncf %270 : vector<48x32xf32> to vector<48x32xbf16>
    %cst_160 = arith.constant dense<0.000000e+00> : vector<48x32xf32>
    %272 = tpu.matmul %271, %250, %cst_160 {dimension_numbers = #tpu.dot_dimension_numbers<[1], [0], [0], [1], [0, 0, 1, 1], [], []>} : vector<48x32xbf16>, vector<32x32xbf16>, vector<48x32xf32> -> vector<48x32xf32>
    %273 = vector.broadcast %252 : vector<1x32xf32> to vector<48x32xf32>
    %274 = arith.addf %272, %273 : vector<48x32xf32>
    %275 = arith.addf %242, %274 : vector<48x32xf32>
    %c0_161 = arith.constant 0 : index
    %c0_162 = arith.constant 0 : index
    %c0_163 = arith.constant 0 : index
    %276 = vector.load %arg20[%c0_161, %c0_162, %c0_163] : memref<1x1x32xf32, #tpu.memory_space<vmem>>, vector<1x1x32xf32>
    %277 = vector.shape_cast %276 : vector<1x1x32xf32> to vector<1x32xf32>
    %c0_164 = arith.constant 0 : index
    %c0_165 = arith.constant 0 : index
    %c0_166 = arith.constant 0 : index
    %278 = vector.load %arg21[%c0_164, %c0_165, %c0_166] : memref<1x1x32xf32, #tpu.memory_space<vmem>>, vector<1x1x32xf32>
    %279 = vector.shape_cast %278 : vector<1x1x32xf32> to vector<1x32xf32>
    %cst_167 = arith.constant dense<0.000000e+00> : vector<48xf32>
    %280 = vector.multi_reduction <add>, %275, %cst_167 [1] : vector<48x32xf32> to vector<48xf32>
    %281 = vector.shape_cast %280 : vector<48xf32> to vector<48x1xf32>
    %cst_168 = arith.constant 3.200000e+01 : f32
    %282 = vector.broadcast %cst_168 : f32 to vector<48x1xf32>
    %283 = arith.divf %281, %282 : vector<48x1xf32>
    %284 = vector.broadcast %283 : vector<48x1xf32> to vector<48x32xf32>
    %285 = arith.subf %275, %284 : vector<48x32xf32>
    %286 = arith.mulf %285, %285 : vector<48x32xf32>
    %cst_169 = arith.constant dense<0.000000e+00> : vector<48xf32>
    %287 = vector.multi_reduction <add>, %286, %cst_169 [1] : vector<48x32xf32> to vector<48xf32>
    %288 = vector.shape_cast %287 : vector<48xf32> to vector<48x1xf32>
    %cst_170 = arith.constant 3.200000e+01 : f32
    %289 = vector.broadcast %cst_170 : f32 to vector<48x1xf32>
    %290 = arith.divf %288, %289 : vector<48x1xf32>
    %291 = vector.broadcast %283 : vector<48x1xf32> to vector<48x32xf32>
    %292 = arith.subf %275, %291 : vector<48x32xf32>
    %cst_171 = arith.constant 9.99999974E-6 : f32
    %293 = vector.broadcast %cst_171 : f32 to vector<48x1xf32>
    %294 = arith.addf %290, %293 : vector<48x1xf32>
    %295 = math.rsqrt %294 : vector<48x1xf32>
    %296 = vector.broadcast %295 : vector<48x1xf32> to vector<48x32xf32>
    %297 = arith.mulf %292, %296 : vector<48x32xf32>
    %298 = vector.broadcast %277 : vector<1x32xf32> to vector<48x32xf32>
    %299 = arith.mulf %297, %298 : vector<48x32xf32>
    %300 = vector.broadcast %279 : vector<1x32xf32> to vector<48x32xf32>
    %301 = arith.addf %299, %300 : vector<48x32xf32>
    %c0_172 = arith.constant 0 : index
    %c0_173 = arith.constant 0 : index
    %c0_174 = arith.constant 0 : index
    %302 = vector.load %arg22[%c0_172, %c0_173, %c0_174] : memref<1x32x128xbf16, #tpu.memory_space<vmem>>, vector<1x32x128xbf16>
    %303 = vector.shape_cast %302 : vector<1x32x128xbf16> to vector<32x128xbf16>
    %c0_175 = arith.constant 0 : index
    %c0_176 = arith.constant 0 : index
    %c0_177 = arith.constant 0 : index
    %304 = vector.load %arg23[%c0_175, %c0_176, %c0_177] : memref<1x1x128xf32, #tpu.memory_space<vmem>>, vector<1x1x128xf32>
    %305 = vector.shape_cast %304 : vector<1x1x128xf32> to vector<1x128xf32>
    %c0_178 = arith.constant 0 : index
    %c0_179 = arith.constant 0 : index
    %c0_180 = arith.constant 0 : index
    %306 = vector.load %arg24[%c0_178, %c0_179, %c0_180] : memref<1x128x32xbf16, #tpu.memory_space<vmem>>, vector<1x128x32xbf16>
    %307 = vector.shape_cast %306 : vector<1x128x32xbf16> to vector<128x32xbf16>
    %c0_181 = arith.constant 0 : index
    %c0_182 = arith.constant 0 : index
    %c0_183 = arith.constant 0 : index
    %308 = vector.load %arg25[%c0_181, %c0_182, %c0_183] : memref<1x1x32xf32, #tpu.memory_space<vmem>>, vector<1x1x32xf32>
    %309 = vector.shape_cast %308 : vector<1x1x32xf32> to vector<1x32xf32>
    %310 = arith.truncf %301 : vector<48x32xf32> to vector<48x32xbf16>
    %cst_184 = arith.constant dense<0.000000e+00> : vector<48x128xf32>
    %311 = tpu.matmul %310, %303, %cst_184 {dimension_numbers = #tpu.dot_dimension_numbers<[1], [0], [0], [1], [0, 0, 1, 1], [], []>} : vector<48x32xbf16>, vector<32x128xbf16>, vector<48x128xf32> -> vector<48x128xf32>
    %312 = vector.broadcast %305 : vector<1x128xf32> to vector<48x128xf32>
    %313 = arith.addf %311, %312 : vector<48x128xf32>
    %cst_185 = arith.constant 0.000000e+00 : f32
    %314 = vector.broadcast %cst_185 : f32 to vector<48x128xf32>
    %315 = arith.maximumf %313, %314 : vector<48x128xf32>
    %316 = arith.truncf %315 : vector<48x128xf32> to vector<48x128xbf16>
    %cst_186 = arith.constant dense<0.000000e+00> : vector<48x32xf32>
    %317 = tpu.matmul %316, %307, %cst_186 {dimension_numbers = #tpu.dot_dimension_numbers<[1], [0], [0], [1], [0, 0, 1, 1], [], []>} : vector<48x128xbf16>, vector<128x32xbf16>, vector<48x32xf32> -> vector<48x32xf32>
    %318 = vector.broadcast %309 : vector<1x32xf32> to vector<48x32xf32>
    %319 = arith.addf %317, %318 : vector<48x32xf32>
    %320 = arith.addf %301, %319 : vector<48x32xf32>
    %c0_187 = arith.constant 0 : index
    %c0_188 = arith.constant 0 : index
    %c0_189 = arith.constant 0 : index
    %321 = vector.load %arg26[%c0_187, %c0_188, %c0_189] : memref<1x1x32xf32, #tpu.memory_space<vmem>>, vector<1x1x32xf32>
    %322 = vector.shape_cast %321 : vector<1x1x32xf32> to vector<1x32xf32>
    %c0_190 = arith.constant 0 : index
    %c0_191 = arith.constant 0 : index
    %c0_192 = arith.constant 0 : index
    %323 = vector.load %arg27[%c0_190, %c0_191, %c0_192] : memref<1x1x32xf32, #tpu.memory_space<vmem>>, vector<1x1x32xf32>
    %324 = vector.shape_cast %323 : vector<1x1x32xf32> to vector<1x32xf32>
    %cst_193 = arith.constant dense<0.000000e+00> : vector<48xf32>
    %325 = vector.multi_reduction <add>, %320, %cst_193 [1] : vector<48x32xf32> to vector<48xf32>
    %326 = vector.shape_cast %325 : vector<48xf32> to vector<48x1xf32>
    %cst_194 = arith.constant 3.200000e+01 : f32
    %327 = vector.broadcast %cst_194 : f32 to vector<48x1xf32>
    %328 = arith.divf %326, %327 : vector<48x1xf32>
    %329 = vector.broadcast %328 : vector<48x1xf32> to vector<48x32xf32>
    %330 = arith.subf %320, %329 : vector<48x32xf32>
    %331 = arith.mulf %330, %330 : vector<48x32xf32>
    %cst_195 = arith.constant dense<0.000000e+00> : vector<48xf32>
    %332 = vector.multi_reduction <add>, %331, %cst_195 [1] : vector<48x32xf32> to vector<48xf32>
    %333 = vector.shape_cast %332 : vector<48xf32> to vector<48x1xf32>
    %cst_196 = arith.constant 3.200000e+01 : f32
    %334 = vector.broadcast %cst_196 : f32 to vector<48x1xf32>
    %335 = arith.divf %333, %334 : vector<48x1xf32>
    %336 = vector.broadcast %328 : vector<48x1xf32> to vector<48x32xf32>
    %337 = arith.subf %320, %336 : vector<48x32xf32>
    %cst_197 = arith.constant 9.99999974E-6 : f32
    %338 = vector.broadcast %cst_197 : f32 to vector<48x1xf32>
    %339 = arith.addf %335, %338 : vector<48x1xf32>
    %340 = math.rsqrt %339 : vector<48x1xf32>
    %341 = vector.broadcast %340 : vector<48x1xf32> to vector<48x32xf32>
    %342 = arith.mulf %337, %341 : vector<48x32xf32>
    %343 = vector.broadcast %322 : vector<1x32xf32> to vector<48x32xf32>
    %344 = arith.mulf %342, %343 : vector<48x32xf32>
    %345 = vector.broadcast %324 : vector<1x32xf32> to vector<48x32xf32>
    %346 = arith.addf %344, %345 : vector<48x32xf32>
    %c0_198 = arith.constant 0 : index
    %c0_199 = arith.constant 0 : index
    %c0_200 = arith.constant 0 : index
    %347 = vector.load %arg3[%c0_198, %c0_199, %c0_200] : memref<3x16x2xf32, #tpu.memory_space<vmem>>, vector<1x16x2xf32>
    %348 = vector.shape_cast %347 : vector<1x16x2xf32> to vector<16x2xf32>
    %c0_201 = arith.constant 0 : index
    %c0_202 = arith.constant 0 : index
    %c0_203 = arith.constant 0 : index
    %349 = vector.load %arg11[%c0_201, %c0_202, %c0_203] : memref<3x2x32xf32, #tpu.memory_space<vmem>>, vector<1x2x32xf32>
    %350 = vector.shape_cast %349 : vector<1x2x32xf32> to vector<2x32xf32>
    %351 = vector.extract_strided_slice %348 {offsets = [0, 0], sizes = [16, 1], strides = [1, 1]} : vector<16x2xf32> to vector<16x1xf32>
    %352 = vector.extract_strided_slice %350 {offsets = [0, 0], sizes = [1, 32], strides = [1, 1]} : vector<2x32xf32> to vector<1x32xf32>
    %353 = vector.broadcast %351 : vector<16x1xf32> to vector<16x32xf32>
    %354 = vector.broadcast %352 : vector<1x32xf32> to vector<16x32xf32>
    %355 = arith.mulf %353, %354 : vector<16x32xf32>
    %356 = vector.extract_strided_slice %348 {offsets = [0, 1], sizes = [16, 1], strides = [1, 1]} : vector<16x2xf32> to vector<16x1xf32>
    %357 = vector.extract_strided_slice %350 {offsets = [1, 0], sizes = [1, 32], strides = [1, 1]} : vector<2x32xf32> to vector<1x32xf32>
    %358 = vector.broadcast %356 : vector<16x1xf32> to vector<16x32xf32>
    %359 = vector.broadcast %357 : vector<1x32xf32> to vector<16x32xf32>
    %360 = arith.mulf %358, %359 : vector<16x32xf32>
    %361 = arith.addf %355, %360 : vector<16x32xf32>
    %c0_204 = arith.constant 0 : index
    %c0_205 = arith.constant 0 : index
    %c0_206 = arith.constant 0 : index
    %c0_207 = arith.constant 0 : index
    %362 = vector.load %arg12[%c0_204, %c0_205, %c0_206, %c0_207] : memref<3x2x2x32xf32, #tpu.memory_space<vmem>>, vector<1x1x2x32xf32>
    %363 = vector.shape_cast %362 : vector<1x1x2x32xf32> to vector<2x32xf32>
    %364 = vector.extract_strided_slice %348 {offsets = [0, 0], sizes = [16, 1], strides = [1, 1]} : vector<16x2xf32> to vector<16x1xf32>
    %365 = vector.extract_strided_slice %363 {offsets = [0, 0], sizes = [1, 32], strides = [1, 1]} : vector<2x32xf32> to vector<1x32xf32>
    %366 = vector.broadcast %364 : vector<16x1xf32> to vector<16x32xf32>
    %367 = vector.broadcast %365 : vector<1x32xf32> to vector<16x32xf32>
    %368 = arith.mulf %366, %367 : vector<16x32xf32>
    %369 = vector.extract_strided_slice %348 {offsets = [0, 1], sizes = [16, 1], strides = [1, 1]} : vector<16x2xf32> to vector<16x1xf32>
    %370 = vector.extract_strided_slice %363 {offsets = [1, 0], sizes = [1, 32], strides = [1, 1]} : vector<2x32xf32> to vector<1x32xf32>
    %371 = vector.broadcast %369 : vector<16x1xf32> to vector<16x32xf32>
    %372 = vector.broadcast %370 : vector<1x32xf32> to vector<16x32xf32>
    %373 = arith.mulf %371, %372 : vector<16x32xf32>
    %374 = arith.addf %368, %373 : vector<16x32xf32>
    %375 = arith.truncf %374 : vector<16x32xf32> to vector<16x32xbf16>
    %cst_208 = arith.constant dense<0.000000e+00> : vector<16x32xf32>
    %376 = tpu.matmul %1, %375, %cst_208 {dimension_numbers = #tpu.dot_dimension_numbers<[1], [0], [0], [1], [0, 0, 1, 1], [], []>} : vector<16x16xbf16>, vector<16x32xbf16>, vector<16x32xf32> -> vector<16x32xf32>
    %377 = arith.addf %361, %376 : vector<16x32xf32>
    %c0_209 = arith.constant 0 : index
    %c1_210 = arith.constant 1 : index
    %c0_211 = arith.constant 0 : index
    %c0_212 = arith.constant 0 : index
    %378 = vector.load %arg12[%c0_209, %c1_210, %c0_211, %c0_212] : memref<3x2x2x32xf32, #tpu.memory_space<vmem>>, vector<1x1x2x32xf32>
    %379 = vector.shape_cast %378 : vector<1x1x2x32xf32> to vector<2x32xf32>
    %380 = vector.extract_strided_slice %348 {offsets = [0, 0], sizes = [16, 1], strides = [1, 1]} : vector<16x2xf32> to vector<16x1xf32>
    %381 = vector.extract_strided_slice %379 {offsets = [0, 0], sizes = [1, 32], strides = [1, 1]} : vector<2x32xf32> to vector<1x32xf32>
    %382 = vector.broadcast %380 : vector<16x1xf32> to vector<16x32xf32>
    %383 = vector.broadcast %381 : vector<1x32xf32> to vector<16x32xf32>
    %384 = arith.mulf %382, %383 : vector<16x32xf32>
    %385 = vector.extract_strided_slice %348 {offsets = [0, 1], sizes = [16, 1], strides = [1, 1]} : vector<16x2xf32> to vector<16x1xf32>
    %386 = vector.extract_strided_slice %379 {offsets = [1, 0], sizes = [1, 32], strides = [1, 1]} : vector<2x32xf32> to vector<1x32xf32>
    %387 = vector.broadcast %385 : vector<16x1xf32> to vector<16x32xf32>
    %388 = vector.broadcast %386 : vector<1x32xf32> to vector<16x32xf32>
    %389 = arith.mulf %387, %388 : vector<16x32xf32>
    %390 = arith.addf %384, %389 : vector<16x32xf32>
    %391 = arith.truncf %390 : vector<16x32xf32> to vector<16x32xbf16>
    %cst_213 = arith.constant dense<0.000000e+00> : vector<16x32xf32>
    %392 = tpu.matmul %3, %391, %cst_213 {dimension_numbers = #tpu.dot_dimension_numbers<[1], [0], [0], [1], [0, 0, 1, 1], [], []>} : vector<16x16xbf16>, vector<16x32xbf16>, vector<16x32xf32> -> vector<16x32xf32>
    %393 = arith.addf %377, %392 : vector<16x32xf32>
    %cst_214 = arith.constant 0.000000e+00 : f32
    %394 = vector.broadcast %cst_214 : f32 to vector<16x32xf32>
    %395 = arith.maximumf %393, %394 : vector<16x32xf32>
    %396 = arith.truncf %395 : vector<16x32xf32> to vector<16x32xbf16>
    %c0_215 = arith.constant 0 : index
    %c0_216 = arith.constant 0 : index
    %c0_217 = arith.constant 0 : index
    %c0_218 = arith.constant 0 : index
    %397 = vector.load %arg13[%c0_215, %c0_216, %c0_217, %c0_218] : memref<3x1x32x32xbf16, #tpu.memory_space<vmem>>, vector<1x1x32x32xbf16>
    %398 = vector.shape_cast %397 : vector<1x1x32x32xbf16> to vector<32x32xbf16>
    %cst_219 = arith.constant dense<0.000000e+00> : vector<16x32xf32>
    %399 = tpu.matmul %396, %398, %cst_219 {dimension_numbers = #tpu.dot_dimension_numbers<[1], [0], [0], [1], [0, 0, 1, 1], [], []>} : vector<16x32xbf16>, vector<32x32xbf16>, vector<16x32xf32> -> vector<16x32xf32>
    %c0_220 = arith.constant 0 : index
    %c0_221 = arith.constant 0 : index
    %c0_222 = arith.constant 0 : index
    %c0_223 = arith.constant 0 : index
    %c0_224 = arith.constant 0 : index
    %400 = vector.load %arg14[%c0_220, %c0_221, %c0_222, %c0_223, %c0_224] : memref<3x1x2x32x32xbf16, #tpu.memory_space<vmem>>, vector<1x1x1x32x32xbf16>
    %401 = vector.shape_cast %400 : vector<1x1x1x32x32xbf16> to vector<32x32xbf16>
    %cst_225 = arith.constant dense<0.000000e+00> : vector<16x32xf32>
    %402 = tpu.matmul %396, %401, %cst_225 {dimension_numbers = #tpu.dot_dimension_numbers<[1], [0], [0], [1], [0, 0, 1, 1], [], []>} : vector<16x32xbf16>, vector<32x32xbf16>, vector<16x32xf32> -> vector<16x32xf32>
    %403 = arith.truncf %402 : vector<16x32xf32> to vector<16x32xbf16>
    %cst_226 = arith.constant dense<0.000000e+00> : vector<16x32xf32>
    %404 = tpu.matmul %1, %403, %cst_226 {dimension_numbers = #tpu.dot_dimension_numbers<[1], [0], [0], [1], [0, 0, 1, 1], [], []>} : vector<16x16xbf16>, vector<16x32xbf16>, vector<16x32xf32> -> vector<16x32xf32>
    %405 = arith.addf %399, %404 : vector<16x32xf32>
    %c0_227 = arith.constant 0 : index
    %c0_228 = arith.constant 0 : index
    %c1_229 = arith.constant 1 : index
    %c0_230 = arith.constant 0 : index
    %c0_231 = arith.constant 0 : index
    %406 = vector.load %arg14[%c0_227, %c0_228, %c1_229, %c0_230, %c0_231] : memref<3x1x2x32x32xbf16, #tpu.memory_space<vmem>>, vector<1x1x1x32x32xbf16>
    %407 = vector.shape_cast %406 : vector<1x1x1x32x32xbf16> to vector<32x32xbf16>
    %cst_232 = arith.constant dense<0.000000e+00> : vector<16x32xf32>
    %408 = tpu.matmul %396, %407, %cst_232 {dimension_numbers = #tpu.dot_dimension_numbers<[1], [0], [0], [1], [0, 0, 1, 1], [], []>} : vector<16x32xbf16>, vector<32x32xbf16>, vector<16x32xf32> -> vector<16x32xf32>
    %409 = arith.truncf %408 : vector<16x32xf32> to vector<16x32xbf16>
    %cst_233 = arith.constant dense<0.000000e+00> : vector<16x32xf32>
    %410 = tpu.matmul %3, %409, %cst_233 {dimension_numbers = #tpu.dot_dimension_numbers<[1], [0], [0], [1], [0, 0, 1, 1], [], []>} : vector<16x16xbf16>, vector<16x32xbf16>, vector<16x32xf32> -> vector<16x32xf32>
    %411 = arith.addf %405, %410 : vector<16x32xf32>
    %c0_234 = arith.constant 0 : index
    %c0_235 = arith.constant 0 : index
    %412 = memref.load %arg1[%c0_234, %c0_235] : memref<3x2xi32, #tpu.memory_space<smem>>
    %413 = arith.index_cast %412 : i32 to index
    %c0_236 = arith.constant 0 : index
    %414 = vector.load %arg5[%413, %c0_236] : memref<96x32xf32, #tpu.memory_space<vmem>>, vector<1x32xf32>
    %415 = vector.extract_strided_slice %411 {offsets = [0, 0], sizes = [8, 32], strides = [1, 1]} : vector<16x32xf32> to vector<8x32xf32>
    %416 = vector.broadcast %414 : vector<1x32xf32> to vector<8x32xf32>
    %417 = arith.addf %415, %416 : vector<8x32xf32>
    %c0_237 = arith.constant 0 : index
    %c0_238 = arith.constant 0 : index
    %418 = vector.load %arg52[%c0_237, %c0_238] : memref<48x32xf32, #tpu.memory_space<vmem>>, vector<8x32xf32>
    tpu.vector_store %arg52[%c0_237, %c0_238], %417 {strides = array<i32>} : memref<48x32xf32, #tpu.memory_space<vmem>>, vector<8x32xf32>,
    %c0_239 = arith.constant 0 : index
    %c1_240 = arith.constant 1 : index
    %419 = memref.load %arg1[%c0_239, %c1_240] : memref<3x2xi32, #tpu.memory_space<smem>>
    %420 = arith.index_cast %419 : i32 to index
    %c0_241 = arith.constant 0 : index
    %421 = vector.load %arg5[%420, %c0_241] : memref<96x32xf32, #tpu.memory_space<vmem>>, vector<1x32xf32>
    %422 = vector.extract_strided_slice %411 {offsets = [8, 0], sizes = [8, 32], strides = [1, 1]} : vector<16x32xf32> to vector<8x32xf32>
    %423 = vector.broadcast %421 : vector<1x32xf32> to vector<8x32xf32>
    %424 = arith.addf %422, %423 : vector<8x32xf32>
    %c8_242 = arith.constant 8 : index
    %c0_243 = arith.constant 0 : index
    %425 = vector.load %arg52[%c8_242, %c0_243] : memref<48x32xf32, #tpu.memory_space<vmem>>, vector<8x32xf32>
    tpu.vector_store %arg52[%c8_242, %c0_243], %424 {strides = array<i32>} : memref<48x32xf32, #tpu.memory_space<vmem>>, vector<8x32xf32>,
    %c1_244 = arith.constant 1 : index
    %c0_245 = arith.constant 0 : index
    %c0_246 = arith.constant 0 : index
    %426 = vector.load %arg3[%c1_244, %c0_245, %c0_246] : memref<3x16x2xf32, #tpu.memory_space<vmem>>, vector<1x16x2xf32>
    %427 = vector.shape_cast %426 : vector<1x16x2xf32> to vector<16x2xf32>
    %c1_247 = arith.constant 1 : index
    %c0_248 = arith.constant 0 : index
    %c0_249 = arith.constant 0 : index
    %428 = vector.load %arg11[%c1_247, %c0_248, %c0_249] : memref<3x2x32xf32, #tpu.memory_space<vmem>>, vector<1x2x32xf32>
    %429 = vector.shape_cast %428 : vector<1x2x32xf32> to vector<2x32xf32>
    %430 = vector.extract_strided_slice %427 {offsets = [0, 0], sizes = [16, 1], strides = [1, 1]} : vector<16x2xf32> to vector<16x1xf32>
    %431 = vector.extract_strided_slice %429 {offsets = [0, 0], sizes = [1, 32], strides = [1, 1]} : vector<2x32xf32> to vector<1x32xf32>
    %432 = vector.broadcast %430 : vector<16x1xf32> to vector<16x32xf32>
    %433 = vector.broadcast %431 : vector<1x32xf32> to vector<16x32xf32>
    %434 = arith.mulf %432, %433 : vector<16x32xf32>
    %435 = vector.extract_strided_slice %427 {offsets = [0, 1], sizes = [16, 1], strides = [1, 1]} : vector<16x2xf32> to vector<16x1xf32>
    %436 = vector.extract_strided_slice %429 {offsets = [1, 0], sizes = [1, 32], strides = [1, 1]} : vector<2x32xf32> to vector<1x32xf32>
    %437 = vector.broadcast %435 : vector<16x1xf32> to vector<16x32xf32>
    %438 = vector.broadcast %436 : vector<1x32xf32> to vector<16x32xf32>
    %439 = arith.mulf %437, %438 : vector<16x32xf32>
    %440 = arith.addf %434, %439 : vector<16x32xf32>
    %c1_250 = arith.constant 1 : index
    %c0_251 = arith.constant 0 : index
    %c0_252 = arith.constant 0 : index
    %c0_253 = arith.constant 0 : index
    %441 = vector.load %arg12[%c1_250, %c0_251, %c0_252, %c0_253] : memref<3x2x2x32xf32, #tpu.memory_space<vmem>>, vector<1x1x2x32xf32>
    %442 = vector.shape_cast %441 : vector<1x1x2x32xf32> to vector<2x32xf32>
    %443 = vector.extract_strided_slice %427 {offsets = [0, 0], sizes = [16, 1], strides = [1, 1]} : vector<16x2xf32> to vector<16x1xf32>
    %444 = vector.extract_strided_slice %442 {offsets = [0, 0], sizes = [1, 32], strides = [1, 1]} : vector<2x32xf32> to vector<1x32xf32>
    %445 = vector.broadcast %443 : vector<16x1xf32> to vector<16x32xf32>
    %446 = vector.broadcast %444 : vector<1x32xf32> to vector<16x32xf32>
    %447 = arith.mulf %445, %446 : vector<16x32xf32>
    %448 = vector.extract_strided_slice %427 {offsets = [0, 1], sizes = [16, 1], strides = [1, 1]} : vector<16x2xf32> to vector<16x1xf32>
    %449 = vector.extract_strided_slice %442 {offsets = [1, 0], sizes = [1, 32], strides = [1, 1]} : vector<2x32xf32> to vector<1x32xf32>
    %450 = vector.broadcast %448 : vector<16x1xf32> to vector<16x32xf32>
    %451 = vector.broadcast %449 : vector<1x32xf32> to vector<16x32xf32>
    %452 = arith.mulf %450, %451 : vector<16x32xf32>
    %453 = arith.addf %447, %452 : vector<16x32xf32>
    %454 = arith.truncf %453 : vector<16x32xf32> to vector<16x32xbf16>
    %cst_254 = arith.constant dense<0.000000e+00> : vector<16x32xf32>
    %455 = tpu.matmul %1, %454, %cst_254 {dimension_numbers = #tpu.dot_dimension_numbers<[1], [0], [0], [1], [0, 0, 1, 1], [], []>} : vector<16x16xbf16>, vector<16x32xbf16>, vector<16x32xf32> -> vector<16x32xf32>
    %456 = arith.addf %440, %455 : vector<16x32xf32>
    %c1_255 = arith.constant 1 : index
    %c1_256 = arith.constant 1 : index
    %c0_257 = arith.constant 0 : index
    %c0_258 = arith.constant 0 : index
    %457 = vector.load %arg12[%c1_255, %c1_256, %c0_257, %c0_258] : memref<3x2x2x32xf32, #tpu.memory_space<vmem>>, vector<1x1x2x32xf32>
    %458 = vector.shape_cast %457 : vector<1x1x2x32xf32> to vector<2x32xf32>
    %459 = vector.extract_strided_slice %427 {offsets = [0, 0], sizes = [16, 1], strides = [1, 1]} : vector<16x2xf32> to vector<16x1xf32>
    %460 = vector.extract_strided_slice %458 {offsets = [0, 0], sizes = [1, 32], strides = [1, 1]} : vector<2x32xf32> to vector<1x32xf32>
    %461 = vector.broadcast %459 : vector<16x1xf32> to vector<16x32xf32>
    %462 = vector.broadcast %460 : vector<1x32xf32> to vector<16x32xf32>
    %463 = arith.mulf %461, %462 : vector<16x32xf32>
    %464 = vector.extract_strided_slice %427 {offsets = [0, 1], sizes = [16, 1], strides = [1, 1]} : vector<16x2xf32> to vector<16x1xf32>
    %465 = vector.extract_strided_slice %458 {offsets = [1, 0], sizes = [1, 32], strides = [1, 1]} : vector<2x32xf32> to vector<1x32xf32>
    %466 = vector.broadcast %464 : vector<16x1xf32> to vector<16x32xf32>
    %467 = vector.broadcast %465 : vector<1x32xf32> to vector<16x32xf32>
    %468 = arith.mulf %466, %467 : vector<16x32xf32>
    %469 = arith.addf %463, %468 : vector<16x32xf32>
    %470 = arith.truncf %469 : vector<16x32xf32> to vector<16x32xbf16>
    %cst_259 = arith.constant dense<0.000000e+00> : vector<16x32xf32>
    %471 = tpu.matmul %3, %470, %cst_259 {dimension_numbers = #tpu.dot_dimension_numbers<[1], [0], [0], [1], [0, 0, 1, 1], [], []>} : vector<16x16xbf16>, vector<16x32xbf16>, vector<16x32xf32> -> vector<16x32xf32>
    %472 = arith.addf %456, %471 : vector<16x32xf32>
    %cst_260 = arith.constant 0.000000e+00 : f32
    %473 = vector.broadcast %cst_260 : f32 to vector<16x32xf32>
    %474 = arith.maximumf %472, %473 : vector<16x32xf32>
    %475 = arith.truncf %474 : vector<16x32xf32> to vector<16x32xbf16>
    %c1_261 = arith.constant 1 : index
    %c0_262 = arith.constant 0 : index
    %c0_263 = arith.constant 0 : index
    %c0_264 = arith.constant 0 : index
    %476 = vector.load %arg13[%c1_261, %c0_262, %c0_263, %c0_264] : memref<3x1x32x32xbf16, #tpu.memory_space<vmem>>, vector<1x1x32x32xbf16>
    %477 = vector.shape_cast %476 : vector<1x1x32x32xbf16> to vector<32x32xbf16>
    %cst_265 = arith.constant dense<0.000000e+00> : vector<16x32xf32>
    %478 = tpu.matmul %475, %477, %cst_265 {dimension_numbers = #tpu.dot_dimension_numbers<[1], [0], [0], [1], [0, 0, 1, 1], [], []>} : vector<16x32xbf16>, vector<32x32xbf16>, vector<16x32xf32> -> vector<16x32xf32>
    %c1_266 = arith.constant 1 : index
    %c0_267 = arith.constant 0 : index
    %c0_268 = arith.constant 0 : index
    %c0_269 = arith.constant 0 : index
    %c0_270 = arith.constant 0 : index
    %479 = vector.load %arg14[%c1_266, %c0_267, %c0_268, %c0_269, %c0_270] : memref<3x1x2x32x32xbf16, #tpu.memory_space<vmem>>, vector<1x1x1x32x32xbf16>
    %480 = vector.shape_cast %479 : vector<1x1x1x32x32xbf16> to vector<32x32xbf16>
    %cst_271 = arith.constant dense<0.000000e+00> : vector<16x32xf32>
    %481 = tpu.matmul %475, %480, %cst_271 {dimension_numbers = #tpu.dot_dimension_numbers<[1], [0], [0], [1], [0, 0, 1, 1], [], []>} : vector<16x32xbf16>, vector<32x32xbf16>, vector<16x32xf32> -> vector<16x32xf32>
    %482 = arith.truncf %481 : vector<16x32xf32> to vector<16x32xbf16>
    %cst_272 = arith.constant dense<0.000000e+00> : vector<16x32xf32>
    %483 = tpu.matmul %1, %482, %cst_272 {dimension_numbers = #tpu.dot_dimension_numbers<[1], [0], [0], [1], [0, 0, 1, 1], [], []>} : vector<16x16xbf16>, vector<16x32xbf16>, vector<16x32xf32> -> vector<16x32xf32>
    %484 = arith.addf %478, %483 : vector<16x32xf32>
    %c1_273 = arith.constant 1 : index
    %c0_274 = arith.constant 0 : index
    %c1_275 = arith.constant 1 : index
    %c0_276 = arith.constant 0 : index
    %c0_277 = arith.constant 0 : index
    %485 = vector.load %arg14[%c1_273, %c0_274, %c1_275, %c0_276, %c0_277] : memref<3x1x2x32x32xbf16, #tpu.memory_space<vmem>>, vector<1x1x1x32x32xbf16>
    %486 = vector.shape_cast %485 : vector<1x1x1x32x32xbf16> to vector<32x32xbf16>
    %cst_278 = arith.constant dense<0.000000e+00> : vector<16x32xf32>
    %487 = tpu.matmul %475, %486, %cst_278 {dimension_numbers = #tpu.dot_dimension_numbers<[1], [0], [0], [1], [0, 0, 1, 1], [], []>} : vector<16x32xbf16>, vector<32x32xbf16>, vector<16x32xf32> -> vector<16x32xf32>
    %488 = arith.truncf %487 : vector<16x32xf32> to vector<16x32xbf16>
    %cst_279 = arith.constant dense<0.000000e+00> : vector<16x32xf32>
    %489 = tpu.matmul %3, %488, %cst_279 {dimension_numbers = #tpu.dot_dimension_numbers<[1], [0], [0], [1], [0, 0, 1, 1], [], []>} : vector<16x16xbf16>, vector<16x32xbf16>, vector<16x32xf32> -> vector<16x32xf32>
    %490 = arith.addf %484, %489 : vector<16x32xf32>
    %c1_280 = arith.constant 1 : index
    %c0_281 = arith.constant 0 : index
    %491 = memref.load %arg1[%c1_280, %c0_281] : memref<3x2xi32, #tpu.memory_space<smem>>
    %492 = arith.index_cast %491 : i32 to index
    %c0_282 = arith.constant 0 : index
    %493 = vector.load %arg5[%492, %c0_282] : memref<96x32xf32, #tpu.memory_space<vmem>>, vector<1x32xf32>
    %494 = vector.extract_strided_slice %490 {offsets = [0, 0], sizes = [8, 32], strides = [1, 1]} : vector<16x32xf32> to vector<8x32xf32>
    %495 = vector.broadcast %493 : vector<1x32xf32> to vector<8x32xf32>
    %496 = arith.addf %494, %495 : vector<8x32xf32>
    %c16_283 = arith.constant 16 : index
    %c0_284 = arith.constant 0 : index
    %497 = vector.load %arg52[%c16_283, %c0_284] : memref<48x32xf32, #tpu.memory_space<vmem>>, vector<8x32xf32>
    tpu.vector_store %arg52[%c16_283, %c0_284], %496 {strides = array<i32>} : memref<48x32xf32, #tpu.memory_space<vmem>>, vector<8x32xf32>,
    %c1_285 = arith.constant 1 : index
    %c1_286 = arith.constant 1 : index
    %498 = memref.load %arg1[%c1_285, %c1_286] : memref<3x2xi32, #tpu.memory_space<smem>>
    %499 = arith.index_cast %498 : i32 to index
    %c0_287 = arith.constant 0 : index
    %500 = vector.load %arg5[%499, %c0_287] : memref<96x32xf32, #tpu.memory_space<vmem>>, vector<1x32xf32>
    %501 = vector.extract_strided_slice %490 {offsets = [8, 0], sizes = [8, 32], strides = [1, 1]} : vector<16x32xf32> to vector<8x32xf32>
    %502 = vector.broadcast %500 : vector<1x32xf32> to vector<8x32xf32>
    %503 = arith.addf %501, %502 : vector<8x32xf32>
    %c24_288 = arith.constant 24 : index
    %c0_289 = arith.constant 0 : index
    %504 = vector.load %arg52[%c24_288, %c0_289] : memref<48x32xf32, #tpu.memory_space<vmem>>, vector<8x32xf32>
    tpu.vector_store %arg52[%c24_288, %c0_289], %503 {strides = array<i32>} : memref<48x32xf32, #tpu.memory_space<vmem>>, vector<8x32xf32>,
    %c2_290 = arith.constant 2 : index
    %c0_291 = arith.constant 0 : index
    %c0_292 = arith.constant 0 : index
    %505 = vector.load %arg3[%c2_290, %c0_291, %c0_292] : memref<3x16x2xf32, #tpu.memory_space<vmem>>, vector<1x16x2xf32>
    %506 = vector.shape_cast %505 : vector<1x16x2xf32> to vector<16x2xf32>
    %c2_293 = arith.constant 2 : index
    %c0_294 = arith.constant 0 : index
    %c0_295 = arith.constant 0 : index
    %507 = vector.load %arg11[%c2_293, %c0_294, %c0_295] : memref<3x2x32xf32, #tpu.memory_space<vmem>>, vector<1x2x32xf32>
    %508 = vector.shape_cast %507 : vector<1x2x32xf32> to vector<2x32xf32>
    %509 = vector.extract_strided_slice %506 {offsets = [0, 0], sizes = [16, 1], strides = [1, 1]} : vector<16x2xf32> to vector<16x1xf32>
    %510 = vector.extract_strided_slice %508 {offsets = [0, 0], sizes = [1, 32], strides = [1, 1]} : vector<2x32xf32> to vector<1x32xf32>
    %511 = vector.broadcast %509 : vector<16x1xf32> to vector<16x32xf32>
    %512 = vector.broadcast %510 : vector<1x32xf32> to vector<16x32xf32>
    %513 = arith.mulf %511, %512 : vector<16x32xf32>
    %514 = vector.extract_strided_slice %506 {offsets = [0, 1], sizes = [16, 1], strides = [1, 1]} : vector<16x2xf32> to vector<16x1xf32>
    %515 = vector.extract_strided_slice %508 {offsets = [1, 0], sizes = [1, 32], strides = [1, 1]} : vector<2x32xf32> to vector<1x32xf32>
    %516 = vector.broadcast %514 : vector<16x1xf32> to vector<16x32xf32>
    %517 = vector.broadcast %515 : vector<1x32xf32> to vector<16x32xf32>
    %518 = arith.mulf %516, %517 : vector<16x32xf32>
    %519 = arith.addf %513, %518 : vector<16x32xf32>
    %c2_296 = arith.constant 2 : index
    %c0_297 = arith.constant 0 : index
    %c0_298 = arith.constant 0 : index
    %c0_299 = arith.constant 0 : index
    %520 = vector.load %arg12[%c2_296, %c0_297, %c0_298, %c0_299] : memref<3x2x2x32xf32, #tpu.memory_space<vmem>>, vector<1x1x2x32xf32>
    %521 = vector.shape_cast %520 : vector<1x1x2x32xf32> to vector<2x32xf32>
    %522 = vector.extract_strided_slice %506 {offsets = [0, 0], sizes = [16, 1], strides = [1, 1]} : vector<16x2xf32> to vector<16x1xf32>
    %523 = vector.extract_strided_slice %521 {offsets = [0, 0], sizes = [1, 32], strides = [1, 1]} : vector<2x32xf32> to vector<1x32xf32>
    %524 = vector.broadcast %522 : vector<16x1xf32> to vector<16x32xf32>
    %525 = vector.broadcast %523 : vector<1x32xf32> to vector<16x32xf32>
    %526 = arith.mulf %524, %525 : vector<16x32xf32>
    %527 = vector.extract_strided_slice %506 {offsets = [0, 1], sizes = [16, 1], strides = [1, 1]} : vector<16x2xf32> to vector<16x1xf32>
    %528 = vector.extract_strided_slice %521 {offsets = [1, 0], sizes = [1, 32], strides = [1, 1]} : vector<2x32xf32> to vector<1x32xf32>
    %529 = vector.broadcast %527 : vector<16x1xf32> to vector<16x32xf32>
    %530 = vector.broadcast %528 : vector<1x32xf32> to vector<16x32xf32>
    %531 = arith.mulf %529, %530 : vector<16x32xf32>
    %532 = arith.addf %526, %531 : vector<16x32xf32>
    %533 = arith.truncf %532 : vector<16x32xf32> to vector<16x32xbf16>
    %cst_300 = arith.constant dense<0.000000e+00> : vector<16x32xf32>
    %534 = tpu.matmul %1, %533, %cst_300 {dimension_numbers = #tpu.dot_dimension_numbers<[1], [0], [0], [1], [0, 0, 1, 1], [], []>} : vector<16x16xbf16>, vector<16x32xbf16>, vector<16x32xf32> -> vector<16x32xf32>
    %535 = arith.addf %519, %534 : vector<16x32xf32>
    %c2_301 = arith.constant 2 : index
    %c1_302 = arith.constant 1 : index
    %c0_303 = arith.constant 0 : index
    %c0_304 = arith.constant 0 : index
    %536 = vector.load %arg12[%c2_301, %c1_302, %c0_303, %c0_304] : memref<3x2x2x32xf32, #tpu.memory_space<vmem>>, vector<1x1x2x32xf32>
    %537 = vector.shape_cast %536 : vector<1x1x2x32xf32> to vector<2x32xf32>
    %538 = vector.extract_strided_slice %506 {offsets = [0, 0], sizes = [16, 1], strides = [1, 1]} : vector<16x2xf32> to vector<16x1xf32>
    %539 = vector.extract_strided_slice %537 {offsets = [0, 0], sizes = [1, 32], strides = [1, 1]} : vector<2x32xf32> to vector<1x32xf32>
    %540 = vector.broadcast %538 : vector<16x1xf32> to vector<16x32xf32>
    %541 = vector.broadcast %539 : vector<1x32xf32> to vector<16x32xf32>
    %542 = arith.mulf %540, %541 : vector<16x32xf32>
    %543 = vector.extract_strided_slice %506 {offsets = [0, 1], sizes = [16, 1], strides = [1, 1]} : vector<16x2xf32> to vector<16x1xf32>
    %544 = vector.extract_strided_slice %537 {offsets = [1, 0], sizes = [1, 32], strides = [1, 1]} : vector<2x32xf32> to vector<1x32xf32>
    %545 = vector.broadcast %543 : vector<16x1xf32> to vector<16x32xf32>
    %546 = vector.broadcast %544 : vector<1x32xf32> to vector<16x32xf32>
    %547 = arith.mulf %545, %546 : vector<16x32xf32>
    %548 = arith.addf %542, %547 : vector<16x32xf32>
    %549 = arith.truncf %548 : vector<16x32xf32> to vector<16x32xbf16>
    %cst_305 = arith.constant dense<0.000000e+00> : vector<16x32xf32>
    %550 = tpu.matmul %3, %549, %cst_305 {dimension_numbers = #tpu.dot_dimension_numbers<[1], [0], [0], [1], [0, 0, 1, 1], [], []>} : vector<16x16xbf16>, vector<16x32xbf16>, vector<16x32xf32> -> vector<16x32xf32>
    %551 = arith.addf %535, %550 : vector<16x32xf32>
    %cst_306 = arith.constant 0.000000e+00 : f32
    %552 = vector.broadcast %cst_306 : f32 to vector<16x32xf32>
    %553 = arith.maximumf %551, %552 : vector<16x32xf32>
    %554 = arith.truncf %553 : vector<16x32xf32> to vector<16x32xbf16>
    %c2_307 = arith.constant 2 : index
    %c0_308 = arith.constant 0 : index
    %c0_309 = arith.constant 0 : index
    %c0_310 = arith.constant 0 : index
    %555 = vector.load %arg13[%c2_307, %c0_308, %c0_309, %c0_310] : memref<3x1x32x32xbf16, #tpu.memory_space<vmem>>, vector<1x1x32x32xbf16>
    %556 = vector.shape_cast %555 : vector<1x1x32x32xbf16> to vector<32x32xbf16>
    %cst_311 = arith.constant dense<0.000000e+00> : vector<16x32xf32>
    %557 = tpu.matmul %554, %556, %cst_311 {dimension_numbers = #tpu.dot_dimension_numbers<[1], [0], [0], [1], [0, 0, 1, 1], [], []>} : vector<16x32xbf16>, vector<32x32xbf16>, vector<16x32xf32> -> vector<16x32xf32>
    %c2_312 = arith.constant 2 : index
    %c0_313 = arith.constant 0 : index
    %c0_314 = arith.constant 0 : index
    %c0_315 = arith.constant 0 : index
    %c0_316 = arith.constant 0 : index
    %558 = vector.load %arg14[%c2_312, %c0_313, %c0_314, %c0_315, %c0_316] : memref<3x1x2x32x32xbf16, #tpu.memory_space<vmem>>, vector<1x1x1x32x32xbf16>
    %559 = vector.shape_cast %558 : vector<1x1x1x32x32xbf16> to vector<32x32xbf16>
    %cst_317 = arith.constant dense<0.000000e+00> : vector<16x32xf32>
    %560 = tpu.matmul %554, %559, %cst_317 {dimension_numbers = #tpu.dot_dimension_numbers<[1], [0], [0], [1], [0, 0, 1, 1], [], []>} : vector<16x32xbf16>, vector<32x32xbf16>, vector<16x32xf32> -> vector<16x32xf32>
    %561 = arith.truncf %560 : vector<16x32xf32> to vector<16x32xbf16>
    %cst_318 = arith.constant dense<0.000000e+00> : vector<16x32xf32>
    %562 = tpu.matmul %1, %561, %cst_318 {dimension_numbers = #tpu.dot_dimension_numbers<[1], [0], [0], [1], [0, 0, 1, 1], [], []>} : vector<16x16xbf16>, vector<16x32xbf16>, vector<16x32xf32> -> vector<16x32xf32>
    %563 = arith.addf %557, %562 : vector<16x32xf32>
    %c2_319 = arith.constant 2 : index
    %c0_320 = arith.constant 0 : index
    %c1_321 = arith.constant 1 : index
    %c0_322 = arith.constant 0 : index
    %c0_323 = arith.constant 0 : index
    %564 = vector.load %arg14[%c2_319, %c0_320, %c1_321, %c0_322, %c0_323] : memref<3x1x2x32x32xbf16, #tpu.memory_space<vmem>>, vector<1x1x1x32x32xbf16>
    %565 = vector.shape_cast %564 : vector<1x1x1x32x32xbf16> to vector<32x32xbf16>
    %cst_324 = arith.constant dense<0.000000e+00> : vector<16x32xf32>
    %566 = tpu.matmul %554, %565, %cst_324 {dimension_numbers = #tpu.dot_dimension_numbers<[1], [0], [0], [1], [0, 0, 1, 1], [], []>} : vector<16x32xbf16>, vector<32x32xbf16>, vector<16x32xf32> -> vector<16x32xf32>
    %567 = arith.truncf %566 : vector<16x32xf32> to vector<16x32xbf16>
    %cst_325 = arith.constant dense<0.000000e+00> : vector<16x32xf32>
    %568 = tpu.matmul %3, %567, %cst_325 {dimension_numbers = #tpu.dot_dimension_numbers<[1], [0], [0], [1], [0, 0, 1, 1], [], []>} : vector<16x16xbf16>, vector<16x32xbf16>, vector<16x32xf32> -> vector<16x32xf32>
    %569 = arith.addf %563, %568 : vector<16x32xf32>
    %c2_326 = arith.constant 2 : index
    %c0_327 = arith.constant 0 : index
    %570 = memref.load %arg1[%c2_326, %c0_327] : memref<3x2xi32, #tpu.memory_space<smem>>
    %571 = arith.index_cast %570 : i32 to index
    %c0_328 = arith.constant 0 : index
    %572 = vector.load %arg5[%571, %c0_328] : memref<96x32xf32, #tpu.memory_space<vmem>>, vector<1x32xf32>
    %573 = vector.extract_strided_slice %569 {offsets = [0, 0], sizes = [8, 32], strides = [1, 1]} : vector<16x32xf32> to vector<8x32xf32>
    %574 = vector.broadcast %572 : vector<1x32xf32> to vector<8x32xf32>
    %575 = arith.addf %573, %574 : vector<8x32xf32>
    %c32_329 = arith.constant 32 : index
    %c0_330 = arith.constant 0 : index
    %576 = vector.load %arg52[%c32_329, %c0_330] : memref<48x32xf32, #tpu.memory_space<vmem>>, vector<8x32xf32>
    tpu.vector_store %arg52[%c32_329, %c0_330], %575 {strides = array<i32>} : memref<48x32xf32, #tpu.memory_space<vmem>>, vector<8x32xf32>,
    %c2_331 = arith.constant 2 : index
    %c1_332 = arith.constant 1 : index
    %577 = memref.load %arg1[%c2_331, %c1_332] : memref<3x2xi32, #tpu.memory_space<smem>>
    %578 = arith.index_cast %577 : i32 to index
    %c0_333 = arith.constant 0 : index
    %579 = vector.load %arg5[%578, %c0_333] : memref<96x32xf32, #tpu.memory_space<vmem>>, vector<1x32xf32>
    %580 = vector.extract_strided_slice %569 {offsets = [8, 0], sizes = [8, 32], strides = [1, 1]} : vector<16x32xf32> to vector<8x32xf32>
    %581 = vector.broadcast %579 : vector<1x32xf32> to vector<8x32xf32>
    %582 = arith.addf %580, %581 : vector<8x32xf32>
    %c40_334 = arith.constant 40 : index
    %c0_335 = arith.constant 0 : index
    %583 = vector.load %arg52[%c40_334, %c0_335] : memref<48x32xf32, #tpu.memory_space<vmem>>, vector<8x32xf32>
    tpu.vector_store %arg52[%c40_334, %c0_335], %582 {strides = array<i32>} : memref<48x32xf32, #tpu.memory_space<vmem>>, vector<8x32xf32>,
    %c0_336 = arith.constant 0 : index
    %c0_337 = arith.constant 0 : index
    %584 = vector.load %arg52[%c0_336, %c0_337] : memref<48x32xf32, #tpu.memory_space<vmem>>, vector<48x32xf32>
    %c0_338 = arith.constant 0 : index
    %c0_339 = arith.constant 0 : index
    %c0_340 = arith.constant 0 : index
    %585 = vector.load %arg28[%c0_338, %c0_339, %c0_340] : memref<1x32x32xbf16, #tpu.memory_space<vmem>>, vector<1x32x32xbf16>
    %586 = vector.shape_cast %585 : vector<1x32x32xbf16> to vector<32x32xbf16>
    %c0_341 = arith.constant 0 : index
    %c0_342 = arith.constant 0 : index
    %c0_343 = arith.constant 0 : index
    %587 = vector.load %arg29[%c0_341, %c0_342, %c0_343] : memref<1x32x32xbf16, #tpu.memory_space<vmem>>, vector<1x32x32xbf16>
    %588 = vector.shape_cast %587 : vector<1x32x32xbf16> to vector<32x32xbf16>
    %c0_344 = arith.constant 0 : index
    %c0_345 = arith.constant 0 : index
    %c0_346 = arith.constant 0 : index
    %589 = vector.load %arg30[%c0_344, %c0_345, %c0_346] : memref<1x32x32xbf16, #tpu.memory_space<vmem>>, vector<1x32x32xbf16>
    %590 = vector.shape_cast %589 : vector<1x32x32xbf16> to vector<32x32xbf16>
    %c0_347 = arith.constant 0 : index
    %c0_348 = arith.constant 0 : index
    %c0_349 = arith.constant 0 : index
    %591 = vector.load %arg31[%c0_347, %c0_348, %c0_349] : memref<1x32x32xbf16, #tpu.memory_space<vmem>>, vector<1x32x32xbf16>
    %592 = vector.shape_cast %591 : vector<1x32x32xbf16> to vector<32x32xbf16>
    %c0_350 = arith.constant 0 : index
    %c0_351 = arith.constant 0 : index
    %c0_352 = arith.constant 0 : index
    %593 = vector.load %arg32[%c0_350, %c0_351, %c0_352] : memref<1x1x32xf32, #tpu.memory_space<vmem>>, vector<1x1x32xf32>
    %594 = vector.shape_cast %593 : vector<1x1x32xf32> to vector<1x32xf32>
    %595 = arith.truncf %584 : vector<48x32xf32> to vector<48x32xbf16>
    %596 = arith.truncf %584 : vector<48x32xf32> to vector<48x32xbf16>
    %cst_353 = arith.constant dense<0.000000e+00> : vector<48x32xf32>
    %597 = tpu.matmul %595, %586, %cst_353 {dimension_numbers = #tpu.dot_dimension_numbers<[1], [0], [0], [1], [0, 0, 1, 1], [], []>} : vector<48x32xbf16>, vector<32x32xbf16>, vector<48x32xf32> -> vector<48x32xf32>
    %cst_354 = arith.constant dense<0.000000e+00> : vector<48x32xf32>
    %598 = tpu.matmul %596, %588, %cst_354 {dimension_numbers = #tpu.dot_dimension_numbers<[1], [0], [0], [1], [0, 0, 1, 1], [], []>} : vector<48x32xbf16>, vector<32x32xbf16>, vector<48x32xf32> -> vector<48x32xf32>
    %cst_355 = arith.constant dense<0.000000e+00> : vector<48x32xf32>
    %599 = tpu.matmul %596, %590, %cst_355 {dimension_numbers = #tpu.dot_dimension_numbers<[1], [0], [0], [1], [0, 0, 1, 1], [], []>} : vector<48x32xbf16>, vector<32x32xbf16>, vector<48x32xf32> -> vector<48x32xf32>
    %600 = arith.mulf %597, %598 : vector<48x32xf32>
    %cst_356 = arith.constant 0.176776692 : f32
    %601 = vector.broadcast %cst_356 : f32 to vector<48x32xf32>
    %602 = arith.mulf %600, %601 : vector<48x32xf32>
    %cst_357 = arith.constant dense<0xFF800000> : vector<48xf32>
    %603 = vector.multi_reduction <maximumf>, %602, %cst_357 [1] : vector<48x32xf32> to vector<48xf32>
    %604 = vector.shape_cast %603 : vector<48xf32> to vector<48x1xf32>
    %605 = vector.broadcast %604 : vector<48x1xf32> to vector<48x32xf32>
    %606 = arith.subf %602, %605 : vector<48x32xf32>
    %607 = math.exp %606 : vector<48x32xf32>
    %608 = arith.truncf %607 : vector<48x32xf32> to vector<48x32xbf16>
    %cst_358 = arith.constant dense<0.000000e+00> : vector<48x32xf32>
    %609 = tpu.matmul %608, %4, %cst_358 {dimension_numbers = #tpu.dot_dimension_numbers<[1], [0], [0], [1], [0, 0, 1, 1], [], []>} : vector<48x32xbf16>, vector<32x32xbf16>, vector<48x32xf32> -> vector<48x32xf32>
    %610 = tpu.reciprocal %609 {approx = true} : vector<48x32xf32> -> vector<48x32xf32>
    %611 = arith.mulf %607, %610 : vector<48x32xf32>
    %612 = arith.mulf %599, %611 : vector<48x32xf32>
    %613 = arith.truncf %612 : vector<48x32xf32> to vector<48x32xbf16>
    %cst_359 = arith.constant dense<0.000000e+00> : vector<48x32xf32>
    %614 = tpu.matmul %613, %592, %cst_359 {dimension_numbers = #tpu.dot_dimension_numbers<[1], [0], [0], [1], [0, 0, 1, 1], [], []>} : vector<48x32xbf16>, vector<32x32xbf16>, vector<48x32xf32> -> vector<48x32xf32>
    %615 = vector.broadcast %594 : vector<1x32xf32> to vector<48x32xf32>
    %616 = arith.addf %614, %615 : vector<48x32xf32>
    %617 = arith.addf %584, %616 : vector<48x32xf32>
    %c0_360 = arith.constant 0 : index
    %c0_361 = arith.constant 0 : index
    %c0_362 = arith.constant 0 : index
    %618 = vector.load %arg33[%c0_360, %c0_361, %c0_362] : memref<1x1x32xf32, #tpu.memory_space<vmem>>, vector<1x1x32xf32>
    %619 = vector.shape_cast %618 : vector<1x1x32xf32> to vector<1x32xf32>
    %c0_363 = arith.constant 0 : index
    %c0_364 = arith.constant 0 : index
    %c0_365 = arith.constant 0 : index
    %620 = vector.load %arg34[%c0_363, %c0_364, %c0_365] : memref<1x1x32xf32, #tpu.memory_space<vmem>>, vector<1x1x32xf32>
    %621 = vector.shape_cast %620 : vector<1x1x32xf32> to vector<1x32xf32>
    %cst_366 = arith.constant dense<0.000000e+00> : vector<48xf32>
    %622 = vector.multi_reduction <add>, %617, %cst_366 [1] : vector<48x32xf32> to vector<48xf32>
    %623 = vector.shape_cast %622 : vector<48xf32> to vector<48x1xf32>
    %cst_367 = arith.constant 3.200000e+01 : f32
    %624 = vector.broadcast %cst_367 : f32 to vector<48x1xf32>
    %625 = arith.divf %623, %624 : vector<48x1xf32>
    %626 = vector.broadcast %625 : vector<48x1xf32> to vector<48x32xf32>
    %627 = arith.subf %617, %626 : vector<48x32xf32>
    %628 = arith.mulf %627, %627 : vector<48x32xf32>
    %cst_368 = arith.constant dense<0.000000e+00> : vector<48xf32>
    %629 = vector.multi_reduction <add>, %628, %cst_368 [1] : vector<48x32xf32> to vector<48xf32>
    %630 = vector.shape_cast %629 : vector<48xf32> to vector<48x1xf32>
    %cst_369 = arith.constant 3.200000e+01 : f32
    %631 = vector.broadcast %cst_369 : f32 to vector<48x1xf32>
    %632 = arith.divf %630, %631 : vector<48x1xf32>
    %633 = vector.broadcast %625 : vector<48x1xf32> to vector<48x32xf32>
    %634 = arith.subf %617, %633 : vector<48x32xf32>
    %cst_370 = arith.constant 9.99999974E-6 : f32
    %635 = vector.broadcast %cst_370 : f32 to vector<48x1xf32>
    %636 = arith.addf %632, %635 : vector<48x1xf32>
    %637 = math.rsqrt %636 : vector<48x1xf32>
    %638 = vector.broadcast %637 : vector<48x1xf32> to vector<48x32xf32>
    %639 = arith.mulf %634, %638 : vector<48x32xf32>
    %640 = vector.broadcast %619 : vector<1x32xf32> to vector<48x32xf32>
    %641 = arith.mulf %639, %640 : vector<48x32xf32>
    %642 = vector.broadcast %621 : vector<1x32xf32> to vector<48x32xf32>
    %643 = arith.addf %641, %642 : vector<48x32xf32>
    %c0_371 = arith.constant 0 : index
    %c0_372 = arith.constant 0 : index
    %c0_373 = arith.constant 0 : index
    %644 = vector.load %arg35[%c0_371, %c0_372, %c0_373] : memref<1x32x32xbf16, #tpu.memory_space<vmem>>, vector<1x32x32xbf16>
    %645 = vector.shape_cast %644 : vector<1x32x32xbf16> to vector<32x32xbf16>
    %c0_374 = arith.constant 0 : index
    %c0_375 = arith.constant 0 : index
    %c0_376 = arith.constant 0 : index
    %646 = vector.load %arg36[%c0_374, %c0_375, %c0_376] : memref<1x32x32xbf16, #tpu.memory_space<vmem>>, vector<1x32x32xbf16>
    %647 = vector.shape_cast %646 : vector<1x32x32xbf16> to vector<32x32xbf16>
    %c0_377 = arith.constant 0 : index
    %c0_378 = arith.constant 0 : index
    %c0_379 = arith.constant 0 : index
    %648 = vector.load %arg37[%c0_377, %c0_378, %c0_379] : memref<1x32x32xbf16, #tpu.memory_space<vmem>>, vector<1x32x32xbf16>
    %649 = vector.shape_cast %648 : vector<1x32x32xbf16> to vector<32x32xbf16>
    %c0_380 = arith.constant 0 : index
    %c0_381 = arith.constant 0 : index
    %c0_382 = arith.constant 0 : index
    %650 = vector.load %arg38[%c0_380, %c0_381, %c0_382] : memref<1x32x32xbf16, #tpu.memory_space<vmem>>, vector<1x32x32xbf16>
    %651 = vector.shape_cast %650 : vector<1x32x32xbf16> to vector<32x32xbf16>
    %c0_383 = arith.constant 0 : index
    %c0_384 = arith.constant 0 : index
    %c0_385 = arith.constant 0 : index
    %652 = vector.load %arg39[%c0_383, %c0_384, %c0_385] : memref<1x1x32xf32, #tpu.memory_space<vmem>>, vector<1x1x32xf32>
    %653 = vector.shape_cast %652 : vector<1x1x32xf32> to vector<1x32xf32>
    %654 = arith.truncf %643 : vector<48x32xf32> to vector<48x32xbf16>
    %655 = arith.truncf %346 : vector<48x32xf32> to vector<48x32xbf16>
    %cst_386 = arith.constant dense<0.000000e+00> : vector<48x32xf32>
    %656 = tpu.matmul %654, %645, %cst_386 {dimension_numbers = #tpu.dot_dimension_numbers<[1], [0], [0], [1], [0, 0, 1, 1], [], []>} : vector<48x32xbf16>, vector<32x32xbf16>, vector<48x32xf32> -> vector<48x32xf32>
    %cst_387 = arith.constant dense<0.000000e+00> : vector<48x32xf32>
    %657 = tpu.matmul %655, %647, %cst_387 {dimension_numbers = #tpu.dot_dimension_numbers<[1], [0], [0], [1], [0, 0, 1, 1], [], []>} : vector<48x32xbf16>, vector<32x32xbf16>, vector<48x32xf32> -> vector<48x32xf32>
    %cst_388 = arith.constant dense<0.000000e+00> : vector<48x32xf32>
    %658 = tpu.matmul %655, %649, %cst_388 {dimension_numbers = #tpu.dot_dimension_numbers<[1], [0], [0], [1], [0, 0, 1, 1], [], []>} : vector<48x32xbf16>, vector<32x32xbf16>, vector<48x32xf32> -> vector<48x32xf32>
    %659 = arith.mulf %656, %657 : vector<48x32xf32>
    %cst_389 = arith.constant 0.176776692 : f32
    %660 = vector.broadcast %cst_389 : f32 to vector<48x32xf32>
    %661 = arith.mulf %659, %660 : vector<48x32xf32>
    %cst_390 = arith.constant dense<0xFF800000> : vector<48xf32>
    %662 = vector.multi_reduction <maximumf>, %661, %cst_390 [1] : vector<48x32xf32> to vector<48xf32>
    %663 = vector.shape_cast %662 : vector<48xf32> to vector<48x1xf32>
    %664 = vector.broadcast %663 : vector<48x1xf32> to vector<48x32xf32>
    %665 = arith.subf %661, %664 : vector<48x32xf32>
    %666 = math.exp %665 : vector<48x32xf32>
    %667 = arith.truncf %666 : vector<48x32xf32> to vector<48x32xbf16>
    %cst_391 = arith.constant dense<0.000000e+00> : vector<48x32xf32>
    %668 = tpu.matmul %667, %4, %cst_391 {dimension_numbers = #tpu.dot_dimension_numbers<[1], [0], [0], [1], [0, 0, 1, 1], [], []>} : vector<48x32xbf16>, vector<32x32xbf16>, vector<48x32xf32> -> vector<48x32xf32>
    %669 = tpu.reciprocal %668 {approx = true} : vector<48x32xf32> -> vector<48x32xf32>
    %670 = arith.mulf %666, %669 : vector<48x32xf32>
    %671 = arith.mulf %658, %670 : vector<48x32xf32>
    %672 = arith.truncf %671 : vector<48x32xf32> to vector<48x32xbf16>
    %cst_392 = arith.constant dense<0.000000e+00> : vector<48x32xf32>
    %673 = tpu.matmul %672, %651, %cst_392 {dimension_numbers = #tpu.dot_dimension_numbers<[1], [0], [0], [1], [0, 0, 1, 1], [], []>} : vector<48x32xbf16>, vector<32x32xbf16>, vector<48x32xf32> -> vector<48x32xf32>
    %674 = vector.broadcast %653 : vector<1x32xf32> to vector<48x32xf32>
    %675 = arith.addf %673, %674 : vector<48x32xf32>
    %676 = arith.addf %643, %675 : vector<48x32xf32>
    %c0_393 = arith.constant 0 : index
    %c0_394 = arith.constant 0 : index
    %c0_395 = arith.constant 0 : index
    %677 = vector.load %arg40[%c0_393, %c0_394, %c0_395] : memref<1x1x32xf32, #tpu.memory_space<vmem>>, vector<1x1x32xf32>
    %678 = vector.shape_cast %677 : vector<1x1x32xf32> to vector<1x32xf32>
    %c0_396 = arith.constant 0 : index
    %c0_397 = arith.constant 0 : index
    %c0_398 = arith.constant 0 : index
    %679 = vector.load %arg41[%c0_396, %c0_397, %c0_398] : memref<1x1x32xf32, #tpu.memory_space<vmem>>, vector<1x1x32xf32>
    %680 = vector.shape_cast %679 : vector<1x1x32xf32> to vector<1x32xf32>
    %cst_399 = arith.constant dense<0.000000e+00> : vector<48xf32>
    %681 = vector.multi_reduction <add>, %676, %cst_399 [1] : vector<48x32xf32> to vector<48xf32>
    %682 = vector.shape_cast %681 : vector<48xf32> to vector<48x1xf32>
    %cst_400 = arith.constant 3.200000e+01 : f32
    %683 = vector.broadcast %cst_400 : f32 to vector<48x1xf32>
    %684 = arith.divf %682, %683 : vector<48x1xf32>
    %685 = vector.broadcast %684 : vector<48x1xf32> to vector<48x32xf32>
    %686 = arith.subf %676, %685 : vector<48x32xf32>
    %687 = arith.mulf %686, %686 : vector<48x32xf32>
    %cst_401 = arith.constant dense<0.000000e+00> : vector<48xf32>
    %688 = vector.multi_reduction <add>, %687, %cst_401 [1] : vector<48x32xf32> to vector<48xf32>
    %689 = vector.shape_cast %688 : vector<48xf32> to vector<48x1xf32>
    %cst_402 = arith.constant 3.200000e+01 : f32
    %690 = vector.broadcast %cst_402 : f32 to vector<48x1xf32>
    %691 = arith.divf %689, %690 : vector<48x1xf32>
    %692 = vector.broadcast %684 : vector<48x1xf32> to vector<48x32xf32>
    %693 = arith.subf %676, %692 : vector<48x32xf32>
    %cst_403 = arith.constant 9.99999974E-6 : f32
    %694 = vector.broadcast %cst_403 : f32 to vector<48x1xf32>
    %695 = arith.addf %691, %694 : vector<48x1xf32>
    %696 = math.rsqrt %695 : vector<48x1xf32>
    %697 = vector.broadcast %696 : vector<48x1xf32> to vector<48x32xf32>
    %698 = arith.mulf %693, %697 : vector<48x32xf32>
    %699 = vector.broadcast %678 : vector<1x32xf32> to vector<48x32xf32>
    %700 = arith.mulf %698, %699 : vector<48x32xf32>
    %701 = vector.broadcast %680 : vector<1x32xf32> to vector<48x32xf32>
    %702 = arith.addf %700, %701 : vector<48x32xf32>
    %c0_404 = arith.constant 0 : index
    %c0_405 = arith.constant 0 : index
    %c0_406 = arith.constant 0 : index
    %703 = vector.load %arg42[%c0_404, %c0_405, %c0_406] : memref<1x32x128xbf16, #tpu.memory_space<vmem>>, vector<1x32x128xbf16>
    %704 = vector.shape_cast %703 : vector<1x32x128xbf16> to vector<32x128xbf16>
    %c0_407 = arith.constant 0 : index
    %c0_408 = arith.constant 0 : index
    %c0_409 = arith.constant 0 : index
    %705 = vector.load %arg43[%c0_407, %c0_408, %c0_409] : memref<1x1x128xf32, #tpu.memory_space<vmem>>, vector<1x1x128xf32>
    %706 = vector.shape_cast %705 : vector<1x1x128xf32> to vector<1x128xf32>
    %c0_410 = arith.constant 0 : index
    %c0_411 = arith.constant 0 : index
    %c0_412 = arith.constant 0 : index
    %707 = vector.load %arg44[%c0_410, %c0_411, %c0_412] : memref<1x128x32xbf16, #tpu.memory_space<vmem>>, vector<1x128x32xbf16>
    %708 = vector.shape_cast %707 : vector<1x128x32xbf16> to vector<128x32xbf16>
    %c0_413 = arith.constant 0 : index
    %c0_414 = arith.constant 0 : index
    %c0_415 = arith.constant 0 : index
    %709 = vector.load %arg45[%c0_413, %c0_414, %c0_415] : memref<1x1x32xf32, #tpu.memory_space<vmem>>, vector<1x1x32xf32>
    %710 = vector.shape_cast %709 : vector<1x1x32xf32> to vector<1x32xf32>
    %711 = arith.truncf %702 : vector<48x32xf32> to vector<48x32xbf16>
    %cst_416 = arith.constant dense<0.000000e+00> : vector<48x128xf32>
    %712 = tpu.matmul %711, %704, %cst_416 {dimension_numbers = #tpu.dot_dimension_numbers<[1], [0], [0], [1], [0, 0, 1, 1], [], []>} : vector<48x32xbf16>, vector<32x128xbf16>, vector<48x128xf32> -> vector<48x128xf32>
    %713 = vector.broadcast %706 : vector<1x128xf32> to vector<48x128xf32>
    %714 = arith.addf %712, %713 : vector<48x128xf32>
    %cst_417 = arith.constant 0.000000e+00 : f32
    %715 = vector.broadcast %cst_417 : f32 to vector<48x128xf32>
    %716 = arith.maximumf %714, %715 : vector<48x128xf32>
    %717 = arith.truncf %716 : vector<48x128xf32> to vector<48x128xbf16>
    %cst_418 = arith.constant dense<0.000000e+00> : vector<48x32xf32>
    %718 = tpu.matmul %717, %708, %cst_418 {dimension_numbers = #tpu.dot_dimension_numbers<[1], [0], [0], [1], [0, 0, 1, 1], [], []>} : vector<48x128xbf16>, vector<128x32xbf16>, vector<48x32xf32> -> vector<48x32xf32>
    %719 = vector.broadcast %710 : vector<1x32xf32> to vector<48x32xf32>
    %720 = arith.addf %718, %719 : vector<48x32xf32>
    %721 = arith.addf %702, %720 : vector<48x32xf32>
    %c0_419 = arith.constant 0 : index
    %c0_420 = arith.constant 0 : index
    %c0_421 = arith.constant 0 : index
    %722 = vector.load %arg46[%c0_419, %c0_420, %c0_421] : memref<1x1x32xf32, #tpu.memory_space<vmem>>, vector<1x1x32xf32>
    %723 = vector.shape_cast %722 : vector<1x1x32xf32> to vector<1x32xf32>
    %c0_422 = arith.constant 0 : index
    %c0_423 = arith.constant 0 : index
    %c0_424 = arith.constant 0 : index
    %724 = vector.load %arg47[%c0_422, %c0_423, %c0_424] : memref<1x1x32xf32, #tpu.memory_space<vmem>>, vector<1x1x32xf32>
    %725 = vector.shape_cast %724 : vector<1x1x32xf32> to vector<1x32xf32>
    %cst_425 = arith.constant dense<0.000000e+00> : vector<48xf32>
    %726 = vector.multi_reduction <add>, %721, %cst_425 [1] : vector<48x32xf32> to vector<48xf32>
    %727 = vector.shape_cast %726 : vector<48xf32> to vector<48x1xf32>
    %cst_426 = arith.constant 3.200000e+01 : f32
    %728 = vector.broadcast %cst_426 : f32 to vector<48x1xf32>
    %729 = arith.divf %727, %728 : vector<48x1xf32>
    %730 = vector.broadcast %729 : vector<48x1xf32> to vector<48x32xf32>
    %731 = arith.subf %721, %730 : vector<48x32xf32>
    %732 = arith.mulf %731, %731 : vector<48x32xf32>
    %cst_427 = arith.constant dense<0.000000e+00> : vector<48xf32>
    %733 = vector.multi_reduction <add>, %732, %cst_427 [1] : vector<48x32xf32> to vector<48xf32>
    %734 = vector.shape_cast %733 : vector<48xf32> to vector<48x1xf32>
    %cst_428 = arith.constant 3.200000e+01 : f32
    %735 = vector.broadcast %cst_428 : f32 to vector<48x1xf32>
    %736 = arith.divf %734, %735 : vector<48x1xf32>
    %737 = vector.broadcast %729 : vector<48x1xf32> to vector<48x32xf32>
    %738 = arith.subf %721, %737 : vector<48x32xf32>
    %cst_429 = arith.constant 9.99999974E-6 : f32
    %739 = vector.broadcast %cst_429 : f32 to vector<48x1xf32>
    %740 = arith.addf %736, %739 : vector<48x1xf32>
    %741 = math.rsqrt %740 : vector<48x1xf32>
    %742 = vector.broadcast %741 : vector<48x1xf32> to vector<48x32xf32>
    %743 = arith.mulf %738, %742 : vector<48x32xf32>
    %744 = vector.broadcast %723 : vector<1x32xf32> to vector<48x32xf32>
    %745 = arith.mulf %743, %744 : vector<48x32xf32>
    %746 = vector.broadcast %725 : vector<1x32xf32> to vector<48x32xf32>
    %747 = arith.addf %745, %746 : vector<48x32xf32>
    %748 = arith.truncf %747 : vector<48x32xf32> to vector<48x32xbf16>
    %c0_430 = arith.constant 0 : index
    %c0_431 = arith.constant 0 : index
    %749 = vector.load %arg48[%c0_430, %c0_431] : memref<32x128xbf16, #tpu.memory_space<vmem>>, vector<32x128xbf16>
    %cst_432 = arith.constant dense<0.000000e+00> : vector<48x128xf32>
    %750 = tpu.matmul %748, %749, %cst_432 {dimension_numbers = #tpu.dot_dimension_numbers<[1], [0], [0], [1], [0, 0, 1, 1], [], []>} : vector<48x32xbf16>, vector<32x128xbf16>, vector<48x128xf32> -> vector<48x128xf32>
    %c0_433 = arith.constant 0 : index
    %c0_434 = arith.constant 0 : index
    %751 = vector.load %arg49[%c0_433, %c0_434] : memref<1x128xf32, #tpu.memory_space<vmem>>, vector<1x128xf32>
    %752 = vector.broadcast %751 : vector<1x128xf32> to vector<48x128xf32>
    %753 = arith.addf %750, %752 : vector<48x128xf32>
    %c0_435 = arith.constant 0 : index
    %c0_436 = arith.constant 0 : index
    %754 = vector.load %arg50[%c0_435, %c0_436] : memref<48x128xf32, #tpu.memory_space<vmem>>, vector<48x128xf32>
    tpu.vector_store %arg50[%c0_435, %c0_436], %753 {strides = array<i32>} : memref<48x128xf32, #tpu.memory_space<vmem>>, vector<48x128xf32>,
    return
  }
}

</mosaic_0001>

<bundles_post_ra>
// kernel: tpu_custom_call.1
= control target key start
LH: loop header
LB: loop body
LE: loop exit
PB: predicated region body
PF: predicated region fallthrough
CT: control target
= control target key end

     0   :  { %s7605_s6 = smov 1   ;;  %s7606_s10 = smov 2   ;;  %s9288_s0 = inlined_call_operand.smem [shape: u32[51], index: -1, kind: input, shape index: {}] }
   0x1   :  { %s7692_s5 = sld [smem:[%s9288_s0]]   ;;  %s7607_s14 = smov 3  }
   0x2   :  { %s7697_s9 = sld [smem:[%s9288_s0 + %s7605_s6]]   ;;  %s7608_s18 = smov 4  }
   0x3   :  { %s7702_s13 = sld [smem:[%s9288_s0 + %s7606_s10]]   ;;  %s7609_s22 = smov 5  }
   0x4   :  { %s7707_s17 = sld [smem:[%s9288_s0 + %s7607_s14]]   ;;  %s7610_s26 = smov 6  }
   0x5   :  { %s7712_s21 = sld [smem:[%s9288_s0 + %s7608_s18]]   ;;  %s7611_s30 = smov 7  }
   0x6   :  { %s7717_s25 = sld [smem:[%s9288_s0 + %s7609_s22]]   ;;  %s7612_s4 = smov 8  }
   0x7   :  { %s7722_s29 = sld [smem:[%s9288_s0 + %s7610_s26]]   ;;  %s7613_s10 = smov 9  }
   0x8   :  { %s7727_s3 = sld [smem:[%s9288_s0 + %s7611_s30]]   ;;  %s7614_s15 = smov 10  }
   0x9   :  { %9316 = sst [smem:[#allocation47_spill]] %s7702_s13  ;;  %s7615_s20 = smov 11  }
   0xa   :  { %9317 = sst [smem:[#allocation48_spill]] %s7707_s17  ;;  %s7616_s26 = smov 12  }
   0xb   :  { %9318 = sst [smem:[#allocation49_spill]] %s7712_s21  ;;  %s7617_s1 = smov 13  }
   0xc   :  { %9319 = sst [smem:[#allocation50_spill]] %s7717_s25  ;;  %s7618_s7 = smov 14  }
   0xd   :  { %9320 = sst [smem:[#allocation51_spill]] %s7722_s29  ;;  %s7620_s22 = smov 16  }
   0xe   :  { %s7732_s8 = sld [smem:[%s9288_s0 + %s7612_s4]]   ;;  %s7621_s28 = smov 17  }
   0xf   :  { %s7737_s14 = sld [smem:[%s9288_s0 + %s7613_s10]]  }
  0x10   :  { %s7742_s19 = sld [smem:[%s9288_s0 + %s7614_s15]]   ;;  %s7619_s15 = smov 15  }
  0x11   :  { %s7747_s24 = sld [smem:[%s9288_s0 + %s7615_s20]]  }
  0x12   :  { %s7752_s30 = sld [smem:[%s9288_s0 + %s7616_s26]]  }
  0x13   :  { %s7757_s6 = sld [smem:[%s9288_s0 + %s7617_s1]]  }
  0x14   :  { %s7762_s12 = sld [smem:[%s9288_s0 + %s7618_s7]]   ;;  %s7622_s7 = smov 18  }
  0x15   :  { %9321 = sst [smem:[#allocation52_spill]] %s7737_s14 }
  0x16   :  { %9322 = sst [smem:[#allocation53_spill]] %s7742_s19 }
  0x17   :  { %s7767_s20 = sld [smem:[%s9288_s0 + %s7619_s15]]   ;;  %s7623_s15 = smov 19  }
  0x18   :  { %s7772_s27 = sld [smem:[%s9288_s0 + %s7620_s22]]   ;;  %s7624_s22 = smov 20  }
  0x19   :  { %9323 = sst [smem:[#allocation54_spill]] %s7757_s6 }
  0x1a   :  { %9324 = sst [smem:[#allocation55_spill]] %s7762_s12 }
  0x1b   :  { %s7777_s4 = sld [smem:[%s9288_s0 + %s7621_s28]]   ;;  %s7625_s28 = smov 21  }
  0x1c   :  { %s7782_s6 = sld [smem:[%s9288_s0 + %s7622_s7]]   ;;  %s7626_s7 = smov 22  }
  0x1d   :  { %9325 = sst [smem:[#allocation56_spill]] %s7767_s20 }
  0x1e   :  { %9326 = sst [smem:[#allocation57_spill]] %s7772_s27 }
  0x1f   :  { %s7787_s12 = sld [smem:[%s9288_s0 + %s7623_s15]]   ;;  %s7627_s15 = smov 23  }
  0x20   :  { %s7792_s17 = sld [smem:[%s9288_s0 + %s7624_s22]]   ;;  %s7628_s22 = smov 24  }
  0x21   :  { %9327 = sst [smem:[#allocation58_spill]] %s7777_s4 }
  0x22   :  { %9328 = sst [smem:[#allocation59_spill]] %s7782_s6 }
  0x23   :  { %s7797_s29 = sld [smem:[%s9288_s0 + %s7625_s28]]   ;;  %s7629_s28 = smov 25  }
  0x24   :  { %s7802_s6 = sld [smem:[%s9288_s0 + %s7626_s7]]   ;;  %s7630_s7 = smov 26  }
  0x25   :  { %s7807_s4 = sld [smem:[%s9288_s0 + %s7627_s15]]   ;;  %s7631_s15 = smov 27  }
  0x26   :  { %s7812_s27 = sld [smem:[%s9288_s0 + %s7628_s22]]   ;;  %s7632_s22 = smov 28  }
  0x27   :  { %s7817_s20 = sld [smem:[%s9288_s0 + %s7629_s28]]   ;;  %s7633_s28 = smov 29  }
  0x28   :  { %s7827_s25 = sld [smem:[%s9288_s0 + %s7631_s15]]   ;;  %s7635_s15 = smov 31  }
  0x29   :  { %s7837_s14 = sld [smem:[%s9288_s0 + %s7633_s28]]   ;;  %s7637_s28 = smov 33  }
  0x2a   :  { %9329 = sst [smem:[#allocation60_spill]] %s7802_s6 }
  0x2b   :  { %s7822_s6 = sld [smem:[%s9288_s0 + %s7630_s7]]   ;;  %s7634_s7 = smov 30  }
  0x2c   :  { %9330 = sst [smem:[#allocation61_spill]] %s7812_s27 }
  0x2d   :  { %s7832_s27 = sld [smem:[%s9288_s0 + %s7632_s22]]   ;;  %s7636_s22 = smov 32  }
  0x2e   :  { %9331 = sst [smem:[#allocation62_spill]] %s7827_s25 }
  0x2f   :  { %9333 = sst [smem:[#allocation64_spill]] %s7837_s14 }
  0x30   :  { %s7842_s19 = sld [smem:[%s9288_s0 + %s7634_s7]]   ;;  %s7638_s7 = smov 34  }
  0x31   :  { %s7847_s21 = sld [smem:[%s9288_s0 + %s7635_s15]]   ;;  %s7639_s15 = smov 35  }
  0x32   :  { %s7857_s14 = sld [smem:[%s9288_s0 + %s7637_s28]]   ;;  %s7641_s28 = smov 37  }
  0x33   :  { %9332 = sst [smem:[#allocation63_spill]] %s7832_s27 }
  0x34   :  { %s7852_s27 = sld [smem:[%s9288_s0 + %s7636_s22]]   ;;  %s7640_s22 = smov 36  }
  0x35   :  { %s7872_s13 = sld [smem:[%s9288_s0 + %s7640_s22]]   ;;  %s7644_s22 = smov 40  }
  0x36   :  { %9334 = sst [smem:[#allocation65_spill]] %s7842_s19 }
  0x37   :  { %9335 = sst [smem:[#allocation66_spill]] %s7847_s21 }
  0x38   :  { %9336 = sst [smem:[#allocation67_spill]] %s7857_s14 }
  0x39   :  { %s7862_s19 = sld [smem:[%s9288_s0 + %s7638_s7]]   ;;  %s7642_s7 = smov 38  }
  0x3a   :  { %s7867_s21 = sld [smem:[%s9288_s0 + %s7639_s15]]   ;;  %s7643_s15 = smov 39  }
  0x3b   :  { %9338 = sst [smem:[#allocation69_spill]] %s7872_s13 }
  0x3c   :  { %s7877_s14 = sld [smem:[%s9288_s0 + %s7641_s28]]   ;;  %s7645_s28 = smov 41  }
  0x3d   :  { %s7882_s25 = sld [smem:[%s9288_s0 + %s7642_s7]]   ;;  %s7646_s7 = smov 42  }
  0x3e   :  { %s7892_s13 = sld [smem:[%s9288_s0 + %s7644_s22]]   ;;  %s7648_s22 = smov 44  }
  0x40   :  { %9337 = sst [smem:[#allocation68_spill]] %s7867_s21 }
  0x41   :  { %s7887_s21 = sld [smem:[%s9288_s0 + %s7643_s15]]   ;;  %s7647_s15 = smov 43  }
  0x42   :  { %9339 = sst [smem:[#allocation70_spill]] %s7877_s14 }
  0x43   :  { %9340 = sst [smem:[#allocation71_spill]] %s7882_s25 }
  0x44   :  { %9342 = sst [smem:[#allocation73_spill]] %s7892_s13 }
  0x45   :  { %s7897_s14 = sld [smem:[%s9288_s0 + %s7645_s28]]   ;;  %s7649_s28 = smov 45  }
  0x46   :  { %s7902_s25 = sld [smem:[%s9288_s0 + %s7646_s7]]   ;;  %s7650_s7 = smov 46  }
  0x47   :  { %9341 = sst [smem:[#allocation72_spill]] %s7887_s21 }
  0x48   :  { %s7907_s21 = sld [smem:[%s9288_s0 + %s7647_s15]]   ;;  %s7651_s15 = smov 47  }
  0x49   :  { %s7912_s13 = sld [smem:[%s9288_s0 + %s7648_s22]]   ;;  %s7652_s22 = smov 48  }
  0x4b   :  { %9343 = sst [smem:[#allocation74_spill]] %s7897_s14 }
  0x4c   :  { %9344 = sst [smem:[#allocation75_spill]] %s7902_s25 }
  0x4d   :  { %s7917_s14 = sld [smem:[%s9288_s0 + %s7649_s28]]   ;;  %s7653_s28 = smov 49  }
  0x4e   :  { %9345 = sst [smem:[#allocation76_spill]] %s7907_s21 }
  0x4f   :  { %9346 = sst [smem:[#allocation77_spill]] %s7912_s13 }
  0x50   :  { %s7922_s25 = sld [smem:[%s9288_s0 + %s7650_s7]]   ;;  %s7654_s7 = smov 50  }
  0x51   :  { %s7927_s21 = sld [smem:[%s9288_s0 + %s7651_s15]]  }
  0x52   :  { %s7932_s13 = sld [smem:[%s9288_s0 + %s7652_s22]]  }
  0x53   :  { %9347 = sst [smem:[#allocation78_spill]] %s7917_s14 }
  0x54   :  { %s7937_s14 = sld [smem:[%s9288_s0 + %s7653_s28]]  }
  0x56   :  { %9348 = sst [smem:[#allocation79_spill]] %s7922_s25 }
  0x57   :  { %s7942_s25 = sld [smem:[%s9288_s0 + %s7654_s7]]  }
  0x58   :  { %106 = vsyncpa [#allocation7], 0 }
  0x59   :  { %107 = vsyncpa [#allocation9], 0 }
  0x5a   :  { %108 = vsyncpa [#allocation5], 0 }
  0x5b   :  { %109 = vsyncpa [#allocation12], 0 }
  0x5c   :  { %110 = vsyncpa [#allocation15], 0 }
  0x5d   :  { %111 = vsyncpa [#allocation18], 0 }
  0x5e   :  { %112 = vsyncpa [#allocation21], 0 }
  0x5f   :  { %113 = vsyncpa [#allocation24], 0 }
  0x60   :  { %114 = vsyncpa [#allocation27], 0 }
  0x61   :  { %115 = vsyncpa [#allocation30], 0 }
  0x62   :  { %116 = vsyncpa [#allocation33], 0 }
  0x63   :  { %117 = vsyncpa [#allocation6], 0  ;;  %s7655_s15 = smov [#allocation11]   ;;  %s7656_s18 = smov [#allocation14]  }
  0x64   :  { %s165_s16 = sshll.u32 %s7655_s15, 4  ;;  %s193_s0 = sshll.u32 %s7656_s18, 4  ;;  %s166_s16 = int_to_ptr.vmem [resolvable:$true] %s165_s16  ;;  %s7944_s0 = int_to_ptr.vmem [resolvable:$true] %s193_s0 }
  0x65   :  { %s7183_s22 = scalar_lea.hbm %s7732_s8, 192 }
  0x66   :  { %p7184_p0 = scmp.ne.s32.totalorder %s7732_s8, %s7183_s22  ;;  %p7187_p1 = scmp.lt.u32.totalorder %s7183_s22, %s7732_s8 }
  0x68   :  { %p7189_p2 = pnand %p7187_p1, %p7184_p0 }
  0x6a   :  { %7192 = shalt.err (!%p7189_p2)
}
  0x6b   :  { %s7193_s23 = scalar_lea.vmem %s166_s16, 192  ;;  %p7198_p4 = scmp.lt.s32.totalorder %s166_s16, %s166_s16 }
  0x6c   :  { %p7194_p3 = scmp.ne.s32.totalorder %s166_s16, %s7193_s23  ;;  %p7199_p5 = scmp.lt.s32.totalorder %s7193_s23, %s7193_s23 }
  0x6e   :  { %p7200_p6 = por %p7199_p5, %p7198_p4 }
  0x70   :  { %p7201_p7 = pnand %p7200_p6, %p7194_p3 }
  0x72   :  { %7204 = shalt.err (!%p7201_p7)
}
  0x73   :  { %s7657_s26 = smov 32   ;;  %s7658_s28 = smov 2  }
  0x74   :  { %171 = dma.hbm_to_vmem [thread:$0]  %s7732_s8, 192, %s166_s16, [#allocation12], %s7657_s26, %s7657_s26, %s7658_s28  }
  0x75   :  { %s7205_s1 = scalar_lea.hbm %s7752_s30, 192 }
  0x76   :  { %p7206_p8 = scmp.ne.s32.totalorder %s7752_s30, %s7205_s1  ;;  %p7209_p9 = scmp.lt.u32.totalorder %s7205_s1, %s7752_s30 }
  0x78   :  { %p7211_p10 = pnand %p7209_p9, %p7206_p8 }
  0x7a   :  { %7214 = shalt.err (!%p7211_p10)
}
  0x7b   :  { %s7215_s2 = scalar_lea.vmem %s7944_s0, 192  ;;  %p7220_p12 = scmp.lt.s32.totalorder %s7944_s0, %s7944_s0 }
  0x7c   :  { %p7216_p11 = scmp.ne.s32.totalorder %s7944_s0, %s7215_s2  ;;  %p7221_p13 = scmp.lt.s32.totalorder %s7215_s2, %s7215_s2 }
  0x7e   :  { %p7222_p0 = por %p7221_p13, %p7220_p12 }
  0x80   :  { %p7223_p1 = pnand %p7222_p0, %p7216_p11 }
  0x82   :  { %7226 = shalt.err (!%p7223_p1)
}
  0x83   :  { %199 = dma.hbm_to_vmem [thread:$0]  %s7752_s30, 192, %s7944_s0, [#allocation15], %s7657_s26, %s7657_s26, %s7658_s28  }
  0x84   :  { %s7659_s8 = smov [#allocation17]   ;;  %s7660_s10 = smov [#allocation20]  }
  0x85   :  { %s228_s7 = sshll.u32 %s7659_s8, 4  ;;  %s250_s11 = sshll.u32 %s7660_s10, 4  ;;  %s229_s7 = int_to_ptr.vmem [resolvable:$true] %s228_s7  ;;  %s251_s11 = int_to_ptr.vmem [resolvable:$true] %s250_s11 }
  0x86   :  { %s7227_s15 = scalar_lea.hbm %s7792_s17, 16 }
  0x87   :  { %p7228_p2 = scmp.ne.s32.totalorder %s7792_s17, %s7227_s15  ;;  %p7231_p3 = scmp.lt.u32.totalorder %s7227_s15, %s7792_s17 }
  0x89   :  { %p7233_p4 = pnand %p7231_p3, %p7228_p2 }
  0x8b   :  { %7236 = shalt.err (!%p7233_p4)
}
  0x8c   :  { %s7237_s16 = scalar_lea.vmem %s229_s7, 16  ;;  %s7241_s18 = scalar_lea.vmem %s229_s7, 32 }
  0x8d   :  { %p7238_p5 = scmp.ne.s32.totalorder %s229_s7, %s7237_s16  ;;  %p7242_p6 = scmp.lt.s32.totalorder %s229_s7, %s229_s7 }
  0x8e   :  { %p7243_p7 = scmp.lt.s32.totalorder %s7241_s18, %s7237_s16 }
  0x90   :  { %p7244_p8 = por %p7243_p7, %p7242_p6 }
  0x92   :  { %p7245_p9 = pnand %p7244_p8, %p7238_p5 }
  0x94   :  { %7248 = shalt.err (!%p7245_p9)
}
  0x95   :  { %231 = dma.hbm_to_vmem [thread:$0]  %s7792_s17, 16, %s229_s7, [#allocation18]  }
  0x96   :  { %s7249_s30 = scalar_lea.hbm %s7807_s4, 16 }
  0x97   :  { %p7250_p10 = scmp.ne.s32.totalorder %s7807_s4, %s7249_s30  ;;  %p7253_p11 = scmp.lt.u32.totalorder %s7249_s30, %s7807_s4 }
  0x99   :  { %p7255_p12 = pnand %p7253_p11, %p7250_p10 }
  0x9b   :  { %7258 = shalt.err (!%p7255_p12)
}
  0x9c   :  { %s7259_s0 = scalar_lea.vmem %s251_s11, 16  ;;  %s7263_s22 = scalar_lea.vmem %s251_s11, 32 }
  0x9d   :  { %p7260_p13 = scmp.ne.s32.totalorder %s251_s11, %s7259_s0  ;;  %p7264_p0 = scmp.lt.s32.totalorder %s251_s11, %s251_s11 }
  0x9e   :  { %p7265_p1 = scmp.lt.s32.totalorder %s7263_s22, %s7259_s0 }
  0xa0   :  { %p7266_p2 = por %p7265_p1, %p7264_p0 }
  0xa2   :  { %p7267_p3 = pnand %p7266_p2, %p7260_p13 }
  0xa4   :  { %7270 = shalt.err (!%p7267_p3)
}
  0xa5   :  { %253 = dma.hbm_to_vmem [thread:$0]  %s7807_s4, 16, %s251_s11, [#allocation21]  }
  0xa6   :  { %s7661_s23 = smov [#allocation23]   ;;  %s7662_s1 = smov [#allocation26]  }
  0xa7   :  { %s272_s17 = sshll.u32 %s7661_s23, 4  ;;  %s300_s2 = sshll.u32 %s7662_s1, 4  ;;  %s273_s17 = int_to_ptr.vmem [resolvable:$true] %s272_s17  ;;  %s301_s2 = int_to_ptr.vmem [resolvable:$true] %s300_s2 }
  0xa8   :  { %s7271_s8 = scalar_lea.hbm %s7822_s6, 16 }
  0xa9   :  { %p7272_p4 = scmp.ne.s32.totalorder %s7822_s6, %s7271_s8  ;;  %p7275_p5 = scmp.lt.u32.totalorder %s7271_s8, %s7822_s6 }
  0xab   :  { %p7277_p6 = pnand %p7275_p5, %p7272_p4 }
  0xad   :  { %7280 = shalt.err (!%p7277_p6)
}
  0xae   :  { %s7281_s7 = scalar_lea.vmem %s273_s17, 16  ;;  %s7285_s10 = scalar_lea.vmem %s273_s17, 32 }
  0xaf   :  { %p7282_p7 = scmp.ne.s32.totalorder %s273_s17, %s7281_s7  ;;  %p7286_p8 = scmp.lt.s32.totalorder %s273_s17, %s273_s17 }
  0xb0   :  { %p7287_p9 = scmp.lt.s32.totalorder %s7285_s10, %s7281_s7 }
  0xb2   :  { %p7288_p10 = por %p7287_p9, %p7286_p8 }
  0xb4   :  { %p7289_p11 = pnand %p7288_p10, %p7282_p7 }
  0xb6   :  { %7292 = shalt.err (!%p7289_p11)
}
  0xb7   :  { %275 = dma.hbm_to_vmem [thread:$0]  %s7822_s6, 16, %s273_s17, [#allocation24]  }
  0xb8   :  { %s7293_s4 = scalar_lea.hbm %s7852_s27, 16 }
  0xb9   :  { %p7294_p12 = scmp.ne.s32.totalorder %s7852_s27, %s7293_s4  ;;  %p7297_p13 = scmp.lt.u32.totalorder %s7293_s4, %s7852_s27 }
  0xbb   :  { %p7299_p0 = pnand %p7297_p13, %p7294_p12 }
  0xbd   :  { %7302 = shalt.err (!%p7299_p0)
}
  0xbe   :  { %s7303_s11 = scalar_lea.vmem %s301_s2, 16  ;;  %s7307_s15 = scalar_lea.vmem %s301_s2, 32 }
  0xbf   :  { %p7304_p1 = scmp.ne.s32.totalorder %s301_s2, %s7303_s11  ;;  %p7308_p2 = scmp.lt.s32.totalorder %s301_s2, %s301_s2 }
  0xc0   :  { %p7309_p3 = scmp.lt.s32.totalorder %s7307_s15, %s7303_s11 }
  0xc2   :  { %p7310_p4 = por %p7309_p3, %p7308_p2 }
  0xc4   :  { %p7311_p5 = pnand %p7310_p4, %p7304_p1 }
  0xc6   :  { %7314 = shalt.err (!%p7311_p5)
}
  0xc7   :  { %303 = dma.hbm_to_vmem [thread:$0]  %s7852_s27, 16, %s301_s2, [#allocation27]  }
  0xc8   :  { %s124_s6 = sshll.u32 %s7692_s5, 4  ;;  %s7663_s16 = smov [#allocation29]   ;;  %s125_s6 = int_to_ptr.vmem [resolvable:$true] %s124_s6 }
  0xc9   :  { %s320_s18 = sshll.u32 %s7663_s16, 4  ;;  %s7315_s30 = scalar_lea.hbm %s7862_s19, 16  ;;  %s321_s18 = int_to_ptr.vmem [resolvable:$true] %s320_s18 }
  0xca   :  { %p7316_p6 = scmp.ne.s32.totalorder %s7862_s19, %s7315_s30  ;;  %p7319_p7 = scmp.lt.u32.totalorder %s7315_s30, %s7862_s19 }
  0xcc   :  { %p7321_p8 = pnand %p7319_p7, %p7316_p6 }
  0xce   :  { %7324 = shalt.err (!%p7321_p8)
}
  0xcf   :  { %s7325_s0 = scalar_lea.vmem %s321_s18, 16  ;;  %s7329_s22 = scalar_lea.vmem %s321_s18, 32 }
  0xd0   :  { %p7326_p9 = scmp.ne.s32.totalorder %s321_s18, %s7325_s0  ;;  %p7330_p10 = scmp.lt.s32.totalorder %s321_s18, %s321_s18 }
  0xd1   :  { %p7331_p11 = scmp.lt.s32.totalorder %s7329_s22, %s7325_s0 }
  0xd3   :  { %p7332_p12 = por %p7331_p11, %p7330_p10 }
  0xd5   :  { %p7333_p13 = pnand %p7332_p12, %p7326_p9 }
  0xd7   :  { %7336 = shalt.err (!%p7333_p13)
}
  0xd8   :  { %323 = dma.hbm_to_vmem [thread:$0]  %s7862_s19, 16, %s321_s18, [#allocation30]  }
  0xd9   :  { %s7337_s5 = scalar_lea.vmem %s125_s6, 64  ;;  %p7342_p1 = scmp.lt.s32.totalorder %s125_s6, %s125_s6 }
  0xda   :  { %p7338_p0 = scmp.ne.s32.totalorder %s125_s6, %s7337_s5  ;;  %p7343_p2 = scmp.lt.s32.totalorder %s7337_s5, %s7337_s5 }
  0xdc   :  { %p7344_p3 = por %p7343_p2, %p7342_p1 }
  0xde   :  { %p7345_p4 = pnand %p7344_p3, %p7338_p0 }
  0xe0   :  { %7348 = shalt.err (!%p7345_p4)
}
  0xe1   :  { %s7664_s27 = smov [#allocation4]   ;;  %s134_s23 = sshll.u32 %s7697_s9, 4  ;;  %s135_s23 = int_to_ptr.vmem [resolvable:$true] %s134_s23 }
  0xe2   :  { %127 = dma.vmem_to_smem %s125_s6, 64, %s7664_s27, [#allocation7]  }
  0xe3   :  { %s7349_s17 = scalar_lea.vmem %s135_s23, 64  ;;  %p7354_p6 = scmp.lt.s32.totalorder %s135_s23, %s135_s23 }
  0xe4   :  { %p7350_p5 = scmp.ne.s32.totalorder %s135_s23, %s7349_s17  ;;  %p7355_p7 = scmp.lt.s32.totalorder %s7349_s17, %s7349_s17 }
  0xe6   :  { %p7356_p8 = por %p7355_p7, %p7354_p6 }
  0xe8   :  { %p7357_p9 = pnand %p7356_p8, %p7350_p5 }
  0xea   :  { %7360 = shalt.err (!%p7357_p9)
}
  0xeb   :  { %s7665_s19 = smov [#allocation8]   ;;  %s7666_s1 = smov [#allocation10]  }
  0xec   :  { %137 = dma.vmem_to_smem %s135_s23, 64, %s7665_s19, [#allocation9]  }
  0xed   :  { %s153_s2 = sshll.u32 %s7666_s1, 4  ;;  %s7667_s8 = smov [#allocation13]   ;;  %s154_s2 = int_to_ptr.vmem [resolvable:$true] %s153_s2 }
  0xee   :  { %s181_s7 = sshll.u32 %s7667_s8, 4  ;;  %s7361_s10 = scalar_lea.hbm %s7727_s3, 96  ;;  %s182_s7 = int_to_ptr.vmem [resolvable:$true] %s181_s7 }
  0xef   :  { %p7362_p10 = scmp.ne.s32.totalorder %s7727_s3, %s7361_s10  ;;  %p7365_p11 = scmp.lt.u32.totalorder %s7361_s10, %s7727_s3 }
  0xf1   :  { %p7367_p12 = pnand %p7365_p11, %p7362_p10 }
  0xf3   :  { %7370 = shalt.err (!%p7367_p12)
}
  0xf4   :  { %s7371_s9 = scalar_lea.vmem %s154_s2, 96  ;;  %p7376_p0 = scmp.lt.s32.totalorder %s154_s2, %s154_s2 }
  0xf5   :  { %p7372_p13 = scmp.ne.s32.totalorder %s154_s2, %s7371_s9  ;;  %p7377_p1 = scmp.lt.s32.totalorder %s7371_s9, %s7371_s9 }
  0xf7   :  { %p7378_p2 = por %p7377_p1, %p7376_p0 }
  0xf9   :  { %p7379_p3 = pnand %p7378_p2, %p7372_p13 }
  0xfb   :  { %7382 = shalt.err (!%p7379_p3)
}
  0xfc   :  { %159 = dma.hbm_to_vmem [thread:$0]  %s7727_s3, 96, %s154_s2, [#allocation5], %s7657_s26, %s7657_s26, %s7658_s28  }
  0xfd   :  { %s7383_s4 = scalar_lea.hbm %s7747_s24, 96 }
  0xfe   :  { %p7384_p4 = scmp.ne.s32.totalorder %s7747_s24, %s7383_s4  ;;  %p7387_p5 = scmp.lt.u32.totalorder %s7383_s4, %s7747_s24 }
 0x100   :  { %p7389_p6 = pnand %p7387_p5, %p7384_p4 }
 0x102   :  { %7392 = shalt.err (!%p7389_p6)
}
 0x103   :  { %s7393_s11 = scalar_lea.vmem %s182_s7, 96  ;;  %p7398_p8 = scmp.lt.s32.totalorder %s182_s7, %s182_s7 }
 0x104   :  { %p7394_p7 = scmp.ne.s32.totalorder %s182_s7, %s7393_s11  ;;  %p7399_p9 = scmp.lt.s32.totalorder %s7393_s11, %s7393_s11 }
 0x106   :  { %p7400_p10 = por %p7399_p9, %p7398_p8 }
 0x108   :  { %p7401_p11 = pnand %p7400_p10, %p7394_p7 }
 0x10a   :  { %7404 = shalt.err (!%p7401_p11)
}
 0x10b   :  { %187 = dma.hbm_to_vmem [thread:$0]  %s7747_s24, 96, %s182_s7, [#allocation12], %s7657_s26, %s7657_s26, %s7658_s28  }
 0x10c   :  { %s7668_s3 = smov [#allocation16]   ;;  %s7669_s6 = smov [#allocation19]  }
 0x10d   :  { %s218_s15 = sshll.u32 %s7668_s3, 4  ;;  %s238_s16 = sshll.u32 %s7669_s6, 4  ;;  %s219_s15 = int_to_ptr.vmem [resolvable:$true] %s218_s15  ;;  %s239_s16 = int_to_ptr.vmem [resolvable:$true] %s238_s16 }
 0x10e   :  { %s7405_s18 = scalar_lea.hbm %s7787_s12, 16 }
 0x10f   :  { %p7406_p12 = scmp.ne.s32.totalorder %s7787_s12, %s7405_s18  ;;  %p7409_p13 = scmp.lt.u32.totalorder %s7405_s18, %s7787_s12 }
 0x111   :  { %p7411_p0 = pnand %p7409_p13, %p7406_p12 }
 0x113   :  { %7414 = shalt.err (!%p7411_p0)
}
 0x114   :  { %s7415_s30 = scalar_lea.vmem %s219_s15, 16  ;;  %s7419_s0 = scalar_lea.vmem %s219_s15, 32 }
 0x115   :  { %p7416_p1 = scmp.ne.s32.totalorder %s219_s15, %s7415_s30  ;;  %p7420_p2 = scmp.lt.s32.totalorder %s219_s15, %s219_s15 }
 0x116   :  { %p7421_p3 = scmp.lt.s32.totalorder %s7419_s0, %s7415_s30 }
 0x118   :  { %p7422_p4 = por %p7421_p3, %p7420_p2 }
 0x11a   :  { %p7423_p5 = pnand %p7422_p4, %p7416_p1 }
 0x11c   :  { %7426 = shalt.err (!%p7423_p5)
}
 0x11d   :  { %221 = dma.hbm_to_vmem [thread:$0]  %s7787_s12, 16, %s219_s15, [#allocation15]  }
 0x11e   :  { %s7427_s24 = scalar_lea.hbm %s7797_s29, 16 }
 0x11f   :  { %p7428_p6 = scmp.ne.s32.totalorder %s7797_s29, %s7427_s24  ;;  %p7431_p7 = scmp.lt.u32.totalorder %s7427_s24, %s7797_s29 }
 0x121   :  { %p7433_p8 = pnand %p7431_p7, %p7428_p6 }
 0x123   :  { %7436 = shalt.err (!%p7433_p8)
}
 0x124   :  { %s7437_s26 = scalar_lea.vmem %s239_s16, 16  ;;  %s7441_s28 = scalar_lea.vmem %s239_s16, 32 }
 0x125   :  { %p7438_p9 = scmp.ne.s32.totalorder %s239_s16, %s7437_s26  ;;  %p7442_p10 = scmp.lt.s32.totalorder %s239_s16, %s239_s16 }
 0x126   :  { %p7443_p11 = scmp.lt.s32.totalorder %s7441_s28, %s7437_s26 }
 0x128   :  { %p7444_p12 = por %p7443_p11, %p7442_p10 }
 0x12a   :  { %p7445_p13 = pnand %p7444_p12, %p7438_p9 }
 0x12c   :  { %7448 = shalt.err (!%p7445_p13)
}
 0x12d   :  { %241 = dma.hbm_to_vmem [thread:$0]  %s7797_s29, 16, %s239_s16, [#allocation18]  }
 0x12e   :  { %s7670_s12 = smov [#allocation22]   ;;  %s7671_s5 = smov [#allocation25]  }
 0x12f   :  { %s262_s22 = sshll.u32 %s7670_s12, 4  ;;  %s282_s27 = sshll.u32 %s7671_s5, 4  ;;  %s263_s22 = int_to_ptr.vmem [resolvable:$true] %s262_s22  ;;  %s283_s27 = int_to_ptr.vmem [resolvable:$true] %s282_s27 }
 0x130   :  { %s7449_s23 = scalar_lea.hbm %s7817_s20, 16 }
 0x131   :  { %p7450_p0 = scmp.ne.s32.totalorder %s7817_s20, %s7449_s23  ;;  %p7453_p1 = scmp.lt.u32.totalorder %s7449_s23, %s7817_s20 }
 0x133   :  { %p7455_p2 = pnand %p7453_p1, %p7450_p0 }
 0x135   :  { %7458 = shalt.err (!%p7455_p2)
}
 0x136   :  { %s7459_s17 = scalar_lea.vmem %s263_s22, 16  ;;  %s7463_s19 = scalar_lea.vmem %s263_s22, 32 }
 0x137   :  { %p7460_p3 = scmp.ne.s32.totalorder %s263_s22, %s7459_s17  ;;  %p7464_p4 = scmp.lt.s32.totalorder %s263_s22, %s263_s22 }
 0x138   :  { %p7465_p5 = scmp.lt.s32.totalorder %s7463_s19, %s7459_s17 }
 0x13a   :  { %p7466_p6 = por %p7465_p5, %p7464_p4 }
 0x13c   :  { %p7467_p7 = pnand %p7466_p6, %p7460_p3 }
 0x13e   :  { %7470 = shalt.err (!%p7467_p7)
}
 0x13f   :  { %s9349_s29 = sld [smem:[#allocation62_spill]] }
 0x140   :  { %265 = dma.hbm_to_vmem [thread:$0]  %s7817_s20, 16, %s263_s22, [#allocation21]  }
 0x145   :  { %s7471_s1 = scalar_lea.hbm %s9349_s29, 16 }
 0x146   :  { %p7472_p8 = scmp.ne.s32.totalorder %s9349_s29, %s7471_s1  ;;  %p7475_p9 = scmp.lt.u32.totalorder %s7471_s1, %s9349_s29 }
 0x148   :  { %p7477_p10 = pnand %p7475_p9, %p7472_p8 }
 0x14a   :  { %7480 = shalt.err (!%p7477_p10)
}
 0x14b   :  { %s7481_s2 = scalar_lea.vmem %s283_s27, 16  ;;  %s7485_s8 = scalar_lea.vmem %s283_s27, 32 }
 0x14c   :  { %p7482_p11 = scmp.ne.s32.totalorder %s283_s27, %s7481_s2  ;;  %p7486_p12 = scmp.lt.s32.totalorder %s283_s27, %s283_s27 }
 0x14d   :  { %p7487_p13 = scmp.lt.s32.totalorder %s7485_s8, %s7481_s2 }
 0x14f   :  { %p7488_p0 = por %p7487_p13, %p7486_p12 }
 0x151   :  { %p7489_p1 = pnand %p7488_p0, %p7482_p11 }
 0x153   :  { %7492 = shalt.err (!%p7489_p1)
}
 0x154   :  { %s9350_s7 = sld [smem:[#allocation67_spill]]  ;;  %s7672_s20 = smov [#allocation28]  }
 0x155   :  { %285 = dma.hbm_to_vmem [thread:$0]  %s9349_s29, 16, %s283_s27, [#allocation24]  }
 0x156   :  { %s310_s10 = sshll.u32 %s7672_s20, 4  ;;  %s7673_s9 = smov [#allocation31]   ;;  %s311_s10 = int_to_ptr.vmem [resolvable:$true] %s310_s10 }
 0x157   :  { %s335_s4 = sshll.u32 %s7673_s9, 4  ;;  %s336_s4 = int_to_ptr.vmem [resolvable:$true] %s335_s4 }
 0x15a   :  { %s7493_s11 = scalar_lea.hbm %s9350_s7, 16 }
 0x15b   :  { %p7494_p2 = scmp.ne.s32.totalorder %s9350_s7, %s7493_s11  ;;  %p7497_p3 = scmp.lt.u32.totalorder %s7493_s11, %s9350_s7 }
 0x15d   :  { %p7499_p4 = pnand %p7497_p3, %p7494_p2 }
 0x15f   :  { %7502 = shalt.err (!%p7499_p4)
}
 0x160   :  { %s7503_s3 = scalar_lea.vmem %s311_s10, 16  ;;  %s7507_s15 = scalar_lea.vmem %s311_s10, 32 }
 0x161   :  { %p7504_p5 = scmp.ne.s32.totalorder %s311_s10, %s7503_s3  ;;  %p7508_p6 = scmp.lt.s32.totalorder %s311_s10, %s311_s10 }
 0x162   :  { %p7509_p7 = scmp.lt.s32.totalorder %s7507_s15, %s7503_s3 }
 0x164   :  { %p7510_p8 = por %p7509_p7, %p7508_p6 }
 0x166   :  { %p7511_p9 = pnand %p7510_p8, %p7504_p5 }
 0x168   :  { %7514 = shalt.err (!%p7511_p9)
}
 0x169   :  { %s9351_s6 = sld [smem:[#allocation71_spill]] }
 0x16a   :  { %313 = dma.hbm_to_vmem [thread:$0]  %s9350_s7, 16, %s311_s10, [#allocation27]  }
 0x16f   :  { %s7515_s16 = scalar_lea.hbm %s9351_s6, 256 }
 0x170   :  { %p7516_p10 = scmp.ne.s32.totalorder %s9351_s6, %s7515_s16  ;;  %p7519_p11 = scmp.lt.u32.totalorder %s7515_s16, %s9351_s6 }
 0x172   :  { %p7521_p12 = pnand %p7519_p11, %p7516_p10 }
 0x174   :  { %7524 = shalt.err (!%p7521_p12)
}
 0x175   :  { %s7525_s18 = scalar_lea.vmem %s336_s4, 256  ;;  %p7530_p0 = scmp.lt.s32.totalorder %s336_s4, %s336_s4 }
 0x176   :  { %p7526_p13 = scmp.ne.s32.totalorder %s336_s4, %s7525_s18  ;;  %p7531_p1 = scmp.lt.s32.totalorder %s7525_s18, %s7525_s18 }
 0x178   :  { %p7532_p2 = por %p7531_p1, %p7530_p0 }
 0x17a   :  { %p7533_p3 = pnand %p7532_p2, %p7526_p13 }
 0x17c   :  { %7536 = shalt.err (!%p7533_p3)
}
 0x17d   :  { %s7674_s30 = smov 64   ;;  %s7675_s0 = smov 4  }
 0x17e   :  { %341 = dma.hbm_to_vmem [thread:$0]  %s9351_s6, 256, %s336_s4, [#allocation30], %s7674_s30, %s7674_s30, %s7675_s0  }
 0x17f   :  { %s7676_s24 = smov [#allocation32]   ;;  %s7537_s28 = scalar_lea.hbm %s7927_s21, 16 }
 0x180   :  { %s364_s26 = sshll.u32 %s7676_s24, 4  ;;  %p7538_p4 = scmp.ne.s32.totalorder %s7927_s21, %s7537_s28  ;;  %s365_s26 = int_to_ptr.vmem [resolvable:$true] %s364_s26 }
 0x181   :  { %p7541_p5 = scmp.lt.u32.totalorder %s7537_s28, %s7927_s21 }
 0x183   :  { %p7543_p6 = pnand %p7541_p5, %p7538_p4 }
 0x185   :  { %7546 = shalt.err (!%p7543_p6)
}
 0x186   :  { %s7547_s12 = scalar_lea.vmem %s365_s26, 16  ;;  %s7551_s22 = scalar_lea.vmem %s365_s26, 32 }
 0x187   :  { %p7548_p7 = scmp.ne.s32.totalorder %s365_s26, %s7547_s12  ;;  %p7552_p8 = scmp.lt.s32.totalorder %s365_s26, %s365_s26 }
 0x188   :  { %p7553_p9 = scmp.lt.s32.totalorder %s7551_s22, %s7547_s12 }
 0x18a   :  { %p7554_p10 = por %p7553_p9, %p7552_p8 }
 0x18c   :  { %p7555_p11 = pnand %p7554_p10, %p7548_p7 }
 0x18e   :  { %7558 = shalt.err (!%p7555_p11)
}
 0x18f   :  { %367 = dma.hbm_to_vmem [thread:$0]  %s7927_s21, 16, %s365_s26, [#allocation33]  }
 0x190   :  { %7581 = dma.done.wait [#allocation7], 64  }
 0x191   :  { %7582 = vsyncadd [#allocation7], 4294967232 }
 0x192   :  { %7583 = dma.done.wait [#allocation9], 64  }
 0x193   :  { %7584 = vsyncadd [#allocation9], 4294967232 }
 0x194   :  { %7585 = dma.done.wait [#allocation5], 96  }
 0x195   :  { %7586 = vsyncadd [#allocation5], 4294967200 }
 0x196   :  { %7587 = dma.done.wait [#allocation12], 288  }
 0x197   :  { %7588 = vsyncadd [#allocation12], 4294967008 }
 0x198   :  { %7589 = dma.done.wait [#allocation15], 208  }
 0x199   :  { %7590 = vsyncadd [#allocation15], 4294967088 }
 0x19a   :  { %7591 = dma.done.wait [#allocation18], 32  }
 0x19b   :  { %7592 = vsyncadd [#allocation18], 4294967264 }
 0x19c   :  { %7593 = dma.done.wait [#allocation21], 32  }
 0x19d   :  { %7594 = vsyncadd [#allocation21], 4294967264 }
 0x19e   :  { %7595 = dma.done.wait [#allocation24], 32  }
 0x19f   :  { %7596 = vsyncadd [#allocation24], 4294967264 }
 0x1a0   :  { %7597 = dma.done.wait [#allocation27], 32  }
 0x1a1   :  { %7598 = vsyncadd [#allocation27], 4294967264 }
 0x1a2   :  { %7599 = dma.done.wait [#allocation30], 272  }
 0x1a3   :  { %7600 = vsyncadd [#allocation30], 4294967024 }
 0x1a4   :  { %7601 = dma.done.wait [#allocation33], 16  }
 0x1a5   :  { %7602 = vsyncadd [#allocation33], 4294967280 }
 0x1a6   :  { %426 = sfence }
 0x1a7   :  { %s9352_s21 = sld [smem:[#allocation47_spill]]  ;;  %v7677_v1 = vmov 1   ;;  %v7678_v2 = vmov 0   ;;  %v7679_v6 = vmov 0.0   ;;  %vm7680_vm0 = vmmov 0   ;;  %s9353_s5 = sld [smem:[#allocation49_spill]] }
 0x1a8   :  { %6945 = vset.pattern.permute.xlu1 %v7677_v1  ;;  %6944 = vset.pattern.permute.xlu0 %v7678_v2  ;;  %v450_v7 = vlaneseq  ;;  %v472_v11 = vld [vmem:[#allocation11] sm:$0x3]  ;;  %v541_v12 = vld [vmem:[#allocation11 + $0x2] sm:$0x3]  ;;  %s9354_s27 = sld [smem:[#allocation53_spill]]  ;;  %s9355_s23 = sld [smem:[#allocation52_spill]] }
 0x1a9   :  { %6199 = vmatprep.subr.bf16.mxu1 %v7679_v6  ;;  %6205 = vmatprep.subr.bf16.mxu0 %v7679_v6  ;;  %vm493_vm1 = vcmask 130048   ;;  %v439_v41 = vld [vmem:[#allocation10] sm:$0x3]  ;;  %vm631_vm2 = vcmask 261120   ;;  %s9356_s17 = sld [smem:[#allocation50_spill]]  ;;  %s873_s19 = sld [smem:[#allocation4]] }
 0x1aa   :  { %6201 = vmatprep.mubr.msk.bf16.mxu1 %vm7680_vm0, %v7679_v6  ;;  %6207 = vmatprep.mubr.msk.bf16.mxu0 %vm7680_vm0, %v7679_v6  ;;  %v451_v8 = vshrl.u32 %v450_v7, 7  ;;  %s5719_s29 = sld [smem:[#allocation4 + $0x1]]  ;;  %s5748_s8 = sld [smem:[#allocation4 + $0x80]] }
 0x1ab   :  { %s5750_s7 = sld [smem:[#allocation4 + $0x81]]  ;;  %s9357_s9 = sld [smem:[#allocation56_spill]] }
 0x1ac   :  { %v8046_v9 = vsub.s32 0, %v451_v8  ;;  %v8048_v10 = vsub.s32 1, %v451_v8  ;;  %s9358_s4 = sld [smem:[#allocation57_spill]]  ;;  %s9359_s11 = sld [smem:[#allocation58_spill]] }
 0x1ad   :  { %v437_v0 = vld [vmem:[%s9352_s21] sm:$0xff]  ;;  %v438_v3 = vld [vmem:[%s9352_s21 + $0x8] sm:$0xff]  ;;  %v5721_v4 = vld [vmem:[%s9352_s21 + $0x10] sm:$0xff]  ;;  %s5779_s3 = sld [smem:[#allocation4 + $0x100]]  ;;  %s5781_s15 = sld [smem:[#allocation4 + $0x101]] }
 0x1ae   :  { %457 = vperm.xlu1 %6945, %v437_v0   ;;  %442 = vperm.xlu0 %6944, %v437_v0   ;;  %v5722_v5 = vld [vmem:[%s9352_s21 + $0x18] sm:$0xff]  ;;  %v476_v13 = vrot.slane %v472_v11, %v8046_v9  ;;  %v482_v14 = vrot.slane %v472_v11, %v8048_v10  ;;  %v545_v17 = vrot.slane %v541_v12, %v8046_v9  ;;  %v8055_v35 = vld [vmem:[%s9353_s5] sm:$0xff]   ;;  %v8058_v36 = vld [vmem:[%s9353_s5 + $0x8] sm:$0xff]   ;;  %s9360_s18 = sld [smem:[#allocation51_spill]]  ;;  %s9362_s0 = sld [smem:[#allocation48_spill]] }
 0x1af   :  { %v551_v18 = vrot.slane %v541_v12, %v8048_v10  ;;  %v6963_v37 = vld [vmem:[%s9354_s27] sm:$0xff]   ;;  %v6965_v39 = vld [vmem:[%s9354_s27 + $0x8] sm:$0xff]   ;;  %v453_v42 = vrot.slane %v439_v41, %v8046_v9  ;;  %v467_v43 = vrot.slane %v439_v41, %v8048_v10  ;;  %s874_s1 = scalar_lea.vmem %s9356_s17, %s873_s19  ;;  %s9361_s30 = sld [smem:[#allocation59_spill]] }
 0x1b0   :  { %v6964_v38 = vld [vmem:[%s9355_s23] sm:$0xff]   ;;  %v6966_v40 = vld [vmem:[%s9355_s23 + $0x8] sm:$0xff]   ;;  %s883_s2 = scalar_lea.vmem %s9356_s17, %s5719_s29  ;;  %s1315_s20 = scalar_lea.vmem %s9356_s17, %s5748_s8 }
 0x1b1   :  { %v929_v12 = vld [vmem:[#allocation11 + $0x4] sm:$0x3]  ;;  %s1324_s10 = scalar_lea.vmem %s9356_s17, %s5750_s7  ;;  %s9363_s24 = sld [smem:[#allocation60_spill]] }
 0x1b2   :  { %461 = vperm.xlu1 %6945, %v438_v3   ;;  %447 = vperm.xlu0 %6944, %v438_v3   ;;  %s9364_s26 = sld [smem:[#allocation61_spill]]  ;;  %s9365_s28 = sld [smem:[#allocation55_spill]] }
 0x1b3   :  { %s1756_s6 = scalar_lea.vmem %s9356_s17, %s5779_s3  ;;  %s1765_s16 = scalar_lea.vmem %s9356_s17, %s5781_s15 }
 0x1b4   :  { %s9366_s12 = sld [smem:[#allocation54_spill]]  ;;  %s3117_s22 = sld [smem:[#allocation8]] }
 0x1b5   :  { %s5877_s19 = sld [smem:[#allocation8 + $0x81]]  ;;  %s9368_s8 = sld [smem:[#allocation64_spill]] }
 0x1b6   :  { %6946 = vset.pattern.permute.xlu1 %v7678_v2  ;;  %898 = vperm.xlu0 %6944, %v5721_v4   ;;  %s9369_s7 = sld [smem:[#allocation65_spill]]  ;;  %s9372_s3 = sld [smem:[#allocation68_spill]] }
 0x1b7   :  { %903 = vperm.xlu1 %6946, %v5722_v5   ;;  %s9373_s15 = sld [smem:[#allocation70_spill]] }
 0x1ba   :  { %6947 = vset.pattern.permute.xlu0 %v7677_v1 }
 0x1bb   :  { %6948 = vset.pattern.permute.xlu1 %v7677_v1  ;;  %913 = vperm.xlu0 %6947, %v5721_v4  }
 0x1bc   :  { %917 = vperm.xlu1 %6948, %v5722_v5  }
 0x1bf   :  { %6950 = vset.pattern.permute.xlu0 %v7678_v2 }
 0x1c0   :  { %6949 = vset.pattern.permute.xlu1 %v7678_v2 }
 0x22d   :  { %v458_v15 = vpop.permute.xlu1 %457  ;;  %v443_v16 = vpop.permute.xlu0 %442 }
 0x22e   :  { %v477_v19 = vmul.f32 %v476_v13, %v443_v16  ;;  %v483_v20 = vmul.f32 %v482_v14, %v458_v15  ;;  %v546_v23 = vmul.f32 %v545_v17, %v443_v16  ;;  %v552_v24 = vmul.f32 %v551_v18, %v458_v15 }
 0x22f   :  { %v454_v44 = vmul.f32 %v453_v42, %v443_v16  ;;  %v468_v45 = vmul.f32 %v467_v43, %v458_v15  ;;  %v939_v15 = vrot.slane %v929_v12, %v8048_v10 }
 0x230   :  { %v485_v29 = vadd.f32 %v483_v20, %v477_v19  ;;  %v554_v31 = vadd.f32 %v552_v24, %v546_v23 }
 0x231   :  { %v462_v21 = vpop.permute.xlu1 %461  ;;  %v448_v22 = vpop.permute.xlu0 %447  ;;  %v470_v48 = vadd.f32 %v468_v45, %v454_v44  ;;  %v6972_v44 = vld [vmem:[%s9355_s23 + $0x18] sm:$0xff]   ;;  %v5752_v45 = vld [vmem:[%s9352_s21 + $0x20] sm:$0xff] }
 0x232   :  { %v478_v25 = vmul.f32 %v476_v13, %v448_v22  ;;  %v547_v26 = vmul.f32 %v545_v17, %v448_v22  ;;  %v484_v27 = vmul.f32 %v482_v14, %v462_v21  ;;  %v553_v28 = vmul.f32 %v551_v18, %v462_v21  ;;  %1339 = vperm.xlu1 %6949, %v5752_v45  }
 0x233   :  { %v455_v46 = vmul.f32 %v453_v42, %v448_v22  ;;  %v469_v47 = vmul.f32 %v467_v43, %v462_v21  ;;  %v933_v21 = vrot.slane %v929_v12, %v8046_v9  ;;  %v6967_v22 = vld [vmem:[%s9354_s27 + $0x10] sm:$0xff]  }
 0x234   :  { %v486_v30 = vadd.f32 %v484_v27, %v478_v25  ;;  %v555_v32 = vadd.f32 %v553_v28, %v547_v26  ;;  %v6968_v27 = vld [vmem:[%s9354_s27 + $0x18] sm:$0xff]   ;;  %v989_v28 = vld [vmem:[#allocation11 + $0x6] sm:$0x3]  ;;  %v6970_v43 = vld [vmem:[%s9355_s23 + $0x10] sm:$0xff]  }
 0x235   :  { %v471_v53 = vadd.f32 %v469_v47, %v455_v46  ;;  %v8086_v3 = vpop.permute.xlu0 %898  ;;  %v5753_v46 = vld [vmem:[%s9352_s21 + $0x28] sm:$0xff]  ;;  %s5846_s21 = sld [smem:[#allocation8 + $0x1]] }
 0x236   :  { %v487_v33 = vpack.c.bf16 %v486_v30, %v485_v29  ;;  %v556_v34 = vpack.c.bf16 %v555_v32, %v554_v31  ;;  %v8088_v4 = vpop.permute.xlu1 %903  ;;  %v934_v26 = vmul.f32 %v933_v21, %v8086_v3  ;;  %v999_v29 = vrot.slane %v989_v28, %v8048_v10  ;;  %1344 = vperm.xlu0 %6950, %v5753_v46  }
 0x237   :  { %v935_v23 = vmul.f32 %v933_v21, %v8088_v4  ;;  %v993_v32 = vrot.slane %v989_v28, %v8046_v9  ;;  %6951 = vset.pattern.permute.xlu1 %v7677_v1  ;;  %v5718_v28 = vld [vmem:[%s874_s1] ss:$0 sm:$0xff]  ;;  %s3568_s1 = scalar_lea.vmem %s9356_s17, %s5877_s19 }
 0x238   :  { %6200 = vmatpush3.bf16.msra.mxu1 %v487_v33  ;;  %6206 = vmatpush3.bf16.msra.mxu0 %v556_v34 }
 0x239   :  { %6211 = vmatprep.subr.bf16.mxu1 %v7679_v6  ;;  %6225 = vmatprep.subr.bf16.mxu0 %v7679_v6  ;;  %v995_v33 = vmul.f32 %v993_v32, %v8088_v4 }
 0x23a   :  { %v8095_v19 = vpop.permute.xlu0 %913  ;;  %1354 = vperm.xlu1 %6951, %v5752_v45  }
 0x23b   :  { %6202 = vmatmul.mubr.msk.bf16.vlgmr.msra.gmra.mrb[0].mxu1 %vm493_vm1, %v8055_v35  ;;  %6208 = vmatmul.mubr.msk.bf16.vlgmr.msra.gmra.mrb[0].mxu0 %vm493_vm1, %v8058_v36  ;;  %v8097_v20 = vpop.permute.xlu1 %917  ;;  %v940_v24 = vmul.f32 %v939_v15, %v8095_v19  ;;  %v1000_v34 = vmul.f32 %v999_v29, %v8095_v19 }
 0x23c   :  { %6215 = vmatprep.mubr.msk.bf16.mxu1 %vm7680_vm0, %v7679_v6  ;;  %6229 = vmatprep.mubr.msk.bf16.mxu0 %vm7680_vm0, %v7679_v6  ;;  %v941_v25 = vmul.f32 %v939_v15, %v8097_v20 }
 0x23d   :  { %6212 = vmatpush3.bf16.msra.mxu1 %v6963_v37  ;;  %6226 = vmatpush3.bf16.msra.mxu0 %v6964_v38  ;;  %v942_v30 = vadd.f32 %v940_v24, %v934_v26  ;;  %v1001_v37 = vmul.f32 %v999_v29, %v8097_v20 }
 0x23e   :  { %6213 = vmatprep.subr.bf16.mxu1 %v7679_v6  ;;  %6227 = vmatprep.subr.bf16.mxu0 %v7679_v6  ;;  %v943_v31 = vadd.f32 %v941_v25, %v935_v23 }
 0x23f   :  { %v1003_v41 = vadd.f32 %v1001_v37, %v995_v33  ;;  %1358 = vperm.xlu1 %6951, %v5753_v46  }
 0x240   :  { %v944_v38 = vpack.c.bf16 %v943_v31, %v942_v30 }
 0x241   :  { %6214 = vmatpush3.bf16.msra.mxu1 %v6965_v39  ;;  %6228 = vmatpush3.bf16.msra.mxu0 %v6966_v40  ;;  %v994_v39 = vmul.f32 %v993_v32, %v8086_v3  ;;  %v5720_v32 = vld [vmem:[%s883_s2] ss:$0 sm:$0xff]  ;;  %s9367_s2 = sld [smem:[#allocation63_spill]] }
 0x242   :  { %6219 = vmatprep.subr.bf16.mxu1 %v7679_v6  ;;  %6241 = vmatprep.subr.bf16.mxu0 %v7679_v6 }
 0x243   :  { %v1002_v40 = vadd.f32 %v1000_v34, %v994_v39  ;;  %6952 = vset.pattern.permute.xlu1 %v7678_v2  ;;  %v1370_v39 = vld [vmem:[#allocation11 + $0x8] sm:$0x3] }
 0x244   :  { %v1374_v46 = vrot.slane %v1370_v39, %v8046_v9 }
 0x245   :  { %v1004_v42 = vpack.c.bf16 %v1003_v41, %v1002_v40 }
 0x30e   :  { %v531_v49 = vpop.f32.mrb[0].mxu1  ;;  %v599_v51 = vpop.f32.mrb[0].mxu0 }
 0x30f   :  { %v538_v50 = vadd.f32 %v531_v49, %v470_v48  ;;  %v6203_v52 = vpop.f32.mrb[1].mxu1  ;;  %v6209_v54 = vpop.f32.mrb[1].mxu0 }
 0x310   :  { %v534_v55 = vpop.f32.mrb[2].mxu1  ;;  %v602_v58 = vpop.f32.mrb[2].mxu0 }
 0x311   :  { %v606_v56 = vadd.f32 %v599_v51, %v538_v50  ;;  %v539_v57 = vadd.f32 %v534_v55, %v471_v53  ;;  %v6204_v59 = vpop.f32.mrb[3].mxu1  ;;  %v6210_v60 = vpop.f32.mrb[3].mxu0 }
 0x312   :  { %v6971_v59 = vld [vmem:[%s9354_s27 + $0x28] sm:$0xff]   ;;  %v895_v60 = vld [vmem:[#allocation10 + $0x2] sm:$0x3] }
 0x313   :  { %v607_v61 = vadd.f32 %v602_v58, %v539_v57  ;;  %v608_v62 = vmax.f32 %v606_v56, 0.0  ;;  %v6969_v58 = vld [vmem:[%s9354_s27 + $0x20] sm:$0xff]  }
 0x315   :  { %v609_v63 = vmax.f32 %v607_v61, 0.0  ;;  %v923_v61 = vrot.slane %v895_v60, %v8048_v10 }
 0x317   :  { %v610_v0 = vpack.c.bf16 %v609_v63, %v608_v62  ;;  %v909_v62 = vrot.slane %v895_v60, %v8046_v9  ;;  %v924_v63 = vmul.f32 %v923_v61, %v8095_v19 }
 0x319   :  { %6216 = vmatmul.mubr.msk.bf16.vlgmr.msra.gmra.mrb[4].mxu1 %vm631_vm2, %v610_v0  ;;  %6230 = vmatmul.mubr.msk.bf16.vlgmr.msra.gmra.mrb[4].mxu0 %vm631_vm2, %v610_v0 }
 0x31a   :  { %6221 = vmatprep.mubr.msk.bf16.mxu1 %vm7680_vm0, %v7679_v6  ;;  %6243 = vmatprep.mubr.msk.bf16.mxu0 %vm7680_vm0, %v7679_v6 }
 0x3ec   :  { %v669_v5 = vpop.f32.mrb[4].mxu1  ;;  %v8090_v7 = vpop.f32.mrb[4].mxu0 }
 0x3ed   :  { %v6217_v8 = vpop.f32.mrb[5].mxu1  ;;  %v6231_v11 = vpop.f32.mrb[5].mxu0 }
 0x3ee   :  { %v672_v13 = vpop.f32.mrb[6].mxu1  ;;  %v8092_v14 = vpop.f32.mrb[6].mxu0 }
 0x3ef   :  { %v676_v16 = vpack.c.bf16 %v672_v13, %v669_v5  ;;  %v6218_v17 = vpop.f32.mrb[7].mxu1  ;;  %v6232_v18 = vpop.f32.mrb[7].mxu0  ;;  %v925_v5 = vmul.f32 %v923_v61, %v8097_v20 }
 0x3f1   :  { %6220 = vmatpush3.bf16.msra.mxu1 %v676_v16 }
 0x3f2   :  { %6233 = vmatprep.subr.bf16.mxu1 %v7679_v6 }
 0x3f4   :  { %6222 = vmatmul.mubr.msk.bf16.vlgmr.msra.gmra.mrb[8].mxu1 %vm493_vm1, %v8055_v35 }
 0x3f5   :  { %6234 = vmatpush3.bf16.msra.mxu1 %v6967_v22  ;;  %6237 = vmatprep.mubr.msk.bf16.mxu1 %vm7680_vm0, %v7679_v6 }
 0x3f6   :  { %6235 = vmatprep.subr.bf16.mxu1 %v7679_v6 }
 0x3f9   :  { %6236 = vmatpush3.bf16.msra.mxu1 %v6968_v27 }
 0x3fa   :  { %6247 = vmatprep.subr.bf16.mxu1 %v7679_v6 }
 0x3fc   :  { %6238 = vmatmul.mubr.msk.bf16.vlgmr.msra.gmra.mrb[12].mxu1 %vm631_vm2, %v610_v0  ;;  %v910_v0 = vmul.f32 %v909_v62, %v8086_v3  ;;  %v1336_v3 = vld [vmem:[#allocation10 + $0x4] sm:$0x3] }
 0x3fd   :  { %6248 = vmatpush3.bf16.msra.mxu1 %v944_v38  ;;  %6249 = vmatprep.mubr.msk.bf16.mxu1 %vm7680_vm0, %v7679_v6  ;;  %v8168_v19 = vrot.slane %v1336_v3, %v8046_v9  ;;  %v8171_v20 = vrot.slane %v1336_v3, %v8048_v10 }
 0x3fe   :  { %6253 = vmatprep.subr.bf16.mxu1 %v7679_v6  ;;  %v926_v8 = vadd.f32 %v924_v63, %v910_v0 }
 0x404   :  { %6250 = vmatmul.mubr.msk.bf16.vlgmr.msra.gmra.mrb[16].mxu1 %vm493_vm1, %v8055_v35 }
 0x405   :  { %6254 = vmatpush3.bf16.msra.mxu1 %v1004_v42  ;;  %6255 = vmatprep.mubr.msk.bf16.mxu1 %vm7680_vm0, %v7679_v6 }
 0x406   :  { %6273 = vmatprep.subr.bf16.mxu1 %v7679_v6 }
 0x410   :  { %6256 = vmatmul.mubr.msk.bf16.vlgmr.msra.gmra.mrb[16].mxu1 %vm493_vm1, %v8058_v36 }
 0x411   :  { %6277 = vmatprep.mubr.msk.bf16.mxu1 %vm7680_vm0, %v7679_v6  ;;  %6274 = vmatpush3.bf16.msra.mxu1 %v6970_v43 }
 0x412   :  { %6275 = vmatprep.subr.bf16.mxu1 %v7679_v6 }
 0x415   :  { %6276 = vmatpush3.bf16.msra.mxu1 %v6972_v44 }
 0x416   :  { %6289 = vmatprep.subr.bf16.mxu1 %v7679_v6 }
 0x4c7   :  { %v711_v47 = vpop.f32.mrb[8].mxu1 }
 0x4c8   :  { %v765_v48 = vadd.f32 %v8090_v7, %v711_v47  ;;  %v6223_v49 = vpop.f32.mrb[9].mxu1  ;;  %v911_v7 = vmul.f32 %v909_v62, %v8088_v4  ;;  %v1340_v4 = vpop.permute.xlu1 %1339  ;;  %v1380_v47 = vrot.slane %v1370_v39, %v8048_v10 }
 0x4c9   :  { %v714_v50 = vpop.f32.mrb[10].mxu1  ;;  %v1351_v24 = vmul.f32 %v8168_v19, %v1340_v4 }
 0x4ca   :  { %v768_v51 = vadd.f32 %v8092_v14, %v714_v50  ;;  %v6224_v52 = vpop.f32.mrb[11].mxu1  ;;  %v927_v14 = vadd.f32 %v925_v5, %v911_v7 }
 0x4cb   :  { %v8185_v52 = vpop.permute.xlu0 %1344 }
 0x4cc   :  { %v1355_v23 = vpop.permute.xlu1 %1354 }
 0x4cd   :  { %v1365_v25 = vmul.f32 %v8171_v20, %v1355_v23 }
 0x4cf   :  { %v822_v53 = vpop.f32.mrb[12].mxu1  ;;  %v8175_v26 = vadd.f32 %v1365_v25, %v1351_v24 }
 0x4d0   :  { %v6239_v54 = vpop.f32.mrb[13].mxu1 }
 0x4d1   :  { %v825_v55 = vpop.f32.mrb[14].mxu1  ;;  %v1430_v54 = vld [vmem:[#allocation11 + $0xa] sm:$0x3] }
 0x4d2   :  { %v829_v56 = vpack.c.bf16 %v825_v55, %v822_v53  ;;  %v6240_v57 = vpop.f32.mrb[15].mxu1  ;;  %v6973_v53 = vld [vmem:[%s9354_s27 + $0x30] sm:$0xff]   ;;  %v1375_v55 = vmul.f32 %v1374_v46, %v1340_v4  ;;  %v1434_v60 = vrot.slane %v1430_v54, %v8046_v9  ;;  %v1440_v61 = vrot.slane %v1430_v54, %v8048_v10 }
 0x4d4   :  { %6242 = vmatpush3.bf16.msra.mxu0 %v829_v56  ;;  %v1381_v56 = vmul.f32 %v1380_v47, %v1355_v23  ;;  %v1435_v0 = vmul.f32 %v1434_v60, %v1340_v4  ;;  %v1441_v5 = vmul.f32 %v1440_v61, %v1355_v23 }
 0x4d5   :  { %6259 = vmatprep.subr.bf16.mxu0 %v7679_v6 }
 0x4d6   :  { %v1383_v62 = vadd.f32 %v1381_v56, %v1375_v55 }
 0x4d7   :  { %6244 = vmatmul.mubr.msk.bf16.vlgmr.msra.gmra.mrb[8].mxu0 %vm493_vm1, %v8058_v36 }
 0x4d8   :  { %6260 = vmatpush3.bf16.msra.mxu0 %v6969_v58  ;;  %6263 = vmatprep.mubr.msk.bf16.mxu0 %vm7680_vm0, %v7679_v6  ;;  %v1376_v58 = vmul.f32 %v1374_v46, %v8185_v52 }
 0x4d9   :  { %6261 = vmatprep.subr.bf16.mxu0 %v7679_v6 }
 0x4dc   :  { %6262 = vmatpush3.bf16.msra.mxu0 %v6971_v59  ;;  %v6974_v59 = vld [vmem:[%s9354_s27 + $0x38] sm:$0xff]  }
 0x4dd   :  { %6267 = vmatprep.subr.bf16.mxu0 %v7679_v6 }
 0x4e3   :  { %v1039_v11 = vpop.f32.mrb[16].mxu1 }
 0x4e4   :  { %v6835_v12 = vadd.f32 %v1039_v11, %v926_v8  ;;  %v6257_v13 = vpop.f32.mrb[17].mxu1  ;;  %v1436_v8 = vmul.f32 %v1434_v60, %v8185_v52 }
 0x4e5   :  { %v1042_v15 = vpop.f32.mrb[18].mxu1 }
 0x4e6   :  { %v6836_v16 = vadd.f32 %v1042_v15, %v927_v14  ;;  %v6258_v17 = vpop.f32.mrb[19].mxu1  ;;  %v1048_v18 = vmax.f32 %v6835_v12, 0.0  ;;  %v1443_v12 = vadd.f32 %v1441_v5, %v1435_v0  ;;  %v6976_v15 = vld [vmem:[%s9355_s23 + $0x20] sm:$0xff]   ;;  %v6982_v0 = vld [vmem:[%s9357_s9 + $0x8] sm:$0xff]  }
 0x4e8   :  { %v1049_v21 = vmax.f32 %v6836_v16, 0.0  ;;  %v6978_v16 = vld [vmem:[%s9355_s23 + $0x28] sm:$0xff]   ;;  %s5875_s23 = sld [smem:[#allocation8 + $0x80]] }
 0x4ea   :  { %v8157_v22 = vpack.c.bf16 %v1049_v21, %v1048_v18 }
 0x4ec   :  { %6264 = vmatmul.mubr.msk.bf16.vlgmr.msra.gmra.mrb[12].mxu0 %vm631_vm2, %v8157_v22  ;;  %6278 = vmatmul.mubr.msk.bf16.vlgmr.msra.gmra.mrb[20].mxu1 %vm631_vm2, %v8157_v22 }
 0x4ed   :  { %6269 = vmatprep.mubr.msk.bf16.mxu0 %vm7680_vm0, %v7679_v6  ;;  %6291 = vmatprep.mubr.msk.bf16.mxu1 %vm7680_vm0, %v7679_v6 }
 0x4ee   :  { %s3559_s29 = scalar_lea.vmem %s9356_s17, %s5875_s23 }
 0x5aa   :  { %v864_v27 = vpop.f32.mrb[8].mxu0 }
 0x5ab   :  { %v871_v29 = vadd.f32 %v864_v27, %v765_v48  ;;  %v6245_v30 = vpop.f32.mrb[9].mxu0 }
 0x5ac   :  { %v867_v31 = vpop.f32.mrb[10].mxu0  ;;  %v6977_v30 = vld [vmem:[%s9354_s27 + $0x48] sm:$0xff]  }
 0x5ad   :  { %v880_v33 = vadd.f32 %v5718_v28, %v871_v29  ;;  %v872_v34 = vadd.f32 %v867_v31, %v768_v51  ;;  %v6246_v37 = vpop.f32.mrb[11].mxu0  ;;  %v8183_v51 = vpop.permute.xlu1 %1358  ;;  %v6975_v29 = vld [vmem:[%s9354_s27 + $0x40] sm:$0xff]  }
 0x5ae   :  { %v1382_v57 = vmul.f32 %v1380_v47, %v8183_v51  ;;  %v1442_v7 = vmul.f32 %v1440_v61, %v8183_v51  ;;  %v1366_v31 = vmul.f32 %v8171_v20, %v8183_v51  ;;  %v5749_v20 = vld [vmem:[%s1315_s20] ss:$0 sm:$0xff]  ;;  %v6979_v61 = vld [vmem:[%s9354_s27 + $0x50] sm:$0xff]   ;;  %s5906_s20 = sld [smem:[#allocation8 + $0x100]] }
 0x5af   :  { %881 = vst.msk [vmem:[#allocation2] sm:$0xff] %vm631_vm2, %v880_v33  ;;  %v889_v38 = vadd.f32 %v5720_v32, %v872_v34  ;;  %v1352_v32 = vmul.f32 %v8168_v19, %v8185_v52  ;;  %v5751_v47 = vld [vmem:[%s1324_s10] ss:$0 sm:$0xff]  ;;  %s5908_s10 = sld [smem:[#allocation8 + $0x101]] }
 0x5b0   :  { %v1384_v63 = vadd.f32 %v1382_v57, %v1376_v58  ;;  %v1444_v13 = vadd.f32 %v1442_v7, %v1436_v8 }
 0x5b1   :  { %890 = vst.msk [vmem:[#allocation2 + $0x8] sm:$0xff] %vm631_vm2, %v889_v38  ;;  %v1368_v38 = vadd.f32 %v1366_v31, %v1352_v32 }
 0x5b2   :  { %v1385_v11 = vpack.c.bf16 %v1384_v63, %v1383_v62  ;;  %v1445_v14 = vpack.c.bf16 %v1444_v13, %v1443_v12  ;;  %v6980_v62 = vld [vmem:[%s9354_s27 + $0x58] sm:$0xff]   ;;  %v6981_v63 = vld [vmem:[%s9357_s9] sm:$0xff]   ;;  %s3127_s27 = scalar_lea.vmem %s9356_s17, %s5846_s21 }
 0x5b4   :  { %s4000_s9 = scalar_lea.vmem %s9356_s17, %s5906_s20 }
 0x5b6   :  { %v8261_v5 = vld [vmem:[#allocation2] sm:$0xff] }
 0x5bf   :  { %v1110_v40 = vpop.f32.mrb[12].mxu0  ;;  %v1205_v41 = vpop.f32.mrb[20].mxu1 }
 0x5c0   :  { %v6265_v42 = vpop.f32.mrb[13].mxu0  ;;  %v6279_v43 = vpop.f32.mrb[21].mxu1 }
 0x5c1   :  { %v1113_v44 = vpop.f32.mrb[14].mxu0  ;;  %v1208_v45 = vpop.f32.mrb[22].mxu1 }
 0x5c2   :  { %v1117_v48 = vpack.c.bf16 %v1113_v44, %v1110_v40  ;;  %v6266_v49 = vpop.f32.mrb[15].mxu0  ;;  %v6280_v50 = vpop.f32.mrb[23].mxu1 }
 0x5c4   :  { %6268 = vmatpush3.bf16.msra.mxu0 %v1117_v48 }
 0x5c5   :  { %6281 = vmatprep.subr.bf16.mxu0 %v7679_v6 }
 0x5c7   :  { %6270 = vmatmul.mubr.msk.bf16.vlgmr.msra.gmra.mrb[16].mxu0 %vm493_vm1, %v8055_v35 }
 0x5c8   :  { %6282 = vmatpush3.bf16.msra.mxu0 %v6973_v53  ;;  %6285 = vmatprep.mubr.msk.bf16.mxu0 %vm7680_vm0, %v7679_v6 }
 0x5c9   :  { %6283 = vmatprep.subr.bf16.mxu0 %v7679_v6 }
 0x5cc   :  { %6284 = vmatpush3.bf16.msra.mxu0 %v6974_v59 }
 0x5cd   :  { %6295 = vmatprep.subr.bf16.mxu0 %v7679_v6 }
 0x5cf   :  { %6286 = vmatmul.mubr.msk.bf16.vlgmr.msra.gmra.mrb[20].mxu0 %vm631_vm2, %v8157_v22 }
 0x5d0   :  { %6296 = vmatpush3.bf16.msra.mxu0 %v1385_v11  ;;  %6297 = vmatprep.mubr.msk.bf16.mxu0 %vm7680_vm0, %v7679_v6 }
 0x5d1   :  { %6301 = vmatprep.subr.bf16.mxu0 %v7679_v6 }
 0x5d7   :  { %6298 = vmatmul.mubr.msk.bf16.vlgmr.msra.gmra.mrb[24].mxu0 %vm493_vm1, %v8055_v35 }
 0x5d8   :  { %6302 = vmatpush3.bf16.msra.mxu0 %v1445_v14  ;;  %6303 = vmatprep.mubr.msk.bf16.mxu0 %vm7680_vm0, %v7679_v6 }
 0x5d9   :  { %6321 = vmatprep.subr.bf16.mxu0 %v7679_v6 }
 0x5e3   :  { %6304 = vmatmul.mubr.msk.bf16.vlgmr.msra.gmra.mrb[24].mxu0 %vm493_vm1, %v8058_v36 }
 0x5e4   :  { %6325 = vmatprep.mubr.msk.bf16.mxu0 %vm7680_vm0, %v7679_v6  ;;  %6322 = vmatpush3.bf16.msra.mxu0 %v6976_v15 }
 0x5e5   :  { %6323 = vmatprep.subr.bf16.mxu0 %v7679_v6 }
 0x5e8   :  { %6324 = vmatpush3.bf16.msra.mxu0 %v6978_v16 }
 0x5e9   :  { %6337 = vmatprep.subr.bf16.mxu0 %v7679_v6 }
 0x69a   :  { %v1152_v17 = vpop.f32.mrb[16].mxu0 }
 0x69b   :  { %v1206_v18 = vadd.f32 %v1205_v41, %v1152_v17  ;;  %v6271_v21 = vpop.f32.mrb[17].mxu0 }
 0x69c   :  { %v1155_v22 = vpop.f32.mrb[18].mxu0 }
 0x69d   :  { %v1209_v3 = vadd.f32 %v1208_v45, %v1155_v22  ;;  %v6272_v4 = vpop.f32.mrb[19].mxu0 }
 0x6a2   :  { %v1263_v23 = vpop.f32.mrb[20].mxu0 }
 0x6a3   :  { %v6287_v24 = vpop.f32.mrb[21].mxu0 }
 0x6a4   :  { %v1266_v25 = vpop.f32.mrb[22].mxu0  ;;  %v6983_v24 = vld [vmem:[%s9358_s4] sm:$0xff]  }
 0x6a5   :  { %v1270_v27 = vpack.c.bf16 %v1266_v25, %v1263_v23  ;;  %v6288_v28 = vpop.f32.mrb[23].mxu0 }
 0x6a6   :  { %v6984_v28 = vld [vmem:[%s9358_s4 + $0x8] sm:$0xff]   ;;  %s4009_s4 = scalar_lea.vmem %s9356_s17, %s5908_s10 }
 0x6a7   :  { %6290 = vmatpush3.bf16.msra.mxu1 %v1270_v27 }
 0x6a8   :  { %6307 = vmatprep.subr.bf16.mxu1 %v7679_v6 }
 0x6aa   :  { %6292 = vmatmul.mubr.msk.bf16.vlgmr.msra.gmra.mrb[24].mxu1 %vm493_vm1, %v8058_v36 }
 0x6ab   :  { %6308 = vmatpush3.bf16.msra.mxu1 %v6975_v29  ;;  %6311 = vmatprep.mubr.msk.bf16.mxu1 %vm7680_vm0, %v7679_v6 }
 0x6ac   :  { %6309 = vmatprep.subr.bf16.mxu1 %v7679_v6 }
 0x6af   :  { %6310 = vmatpush3.bf16.msra.mxu1 %v6977_v30 }
 0x6b0   :  { %6315 = vmatprep.subr.bf16.mxu1 %v7679_v6 }
 0x6b6   :  { %v1480_v33 = vpop.f32.mrb[24].mxu0 }
 0x6b7   :  { %v6837_v34 = vadd.f32 %v1480_v33, %v8175_v26  ;;  %v6305_v37 = vpop.f32.mrb[25].mxu0 }
 0x6b8   :  { %v1483_v39 = vpop.f32.mrb[26].mxu0  ;;  %v6986_v37 = vld [vmem:[%s9359_s11 + $0x8] sm:$0xff]  }
 0x6b9   :  { %v6838_v40 = vadd.f32 %v1483_v39, %v1368_v38  ;;  %v6306_v41 = vpop.f32.mrb[27].mxu0  ;;  %v1489_v42 = vmax.f32 %v6837_v34, 0.0  ;;  %v6985_v34 = vld [vmem:[%s9359_s11] sm:$0xff]   ;;  %s9371_s11 = sld [smem:[#allocation69_spill]] }
 0x6ba   :  { %v5780_v39 = vld [vmem:[%s1756_s6] ss:$0 sm:$0xff]  ;;  %s9374_s6 = sld [smem:[#allocation72_spill]] }
 0x6bb   :  { %v1490_v43 = vmax.f32 %v6838_v40, 0.0 }
 0x6bd   :  { %v1491_v44 = vpack.c.bf16 %v1490_v43, %v1489_v42  ;;  %v5782_v43 = vld [vmem:[%s1765_s16] ss:$0 sm:$0xff]  ;;  %s9375_s16 = sld [smem:[#allocation75_spill]] }
 0x6bf   :  { %6312 = vmatmul.mubr.msk.bf16.vlgmr.msra.gmra.mrb[28].mxu1 %vm631_vm2, %v1491_v44  ;;  %6326 = vmatmul.mubr.msk.bf16.vlgmr.msra.gmra.mrb[28].mxu0 %vm631_vm2, %v1491_v44 }
 0x6c0   :  { %6317 = vmatprep.mubr.msk.bf16.mxu1 %vm7680_vm0, %v7679_v6  ;;  %6339 = vmatprep.mubr.msk.bf16.mxu0 %vm7680_vm0, %v7679_v6 }
 0x77d   :  { %v1305_v19 = vpop.f32.mrb[24].mxu1 }
 0x77e   :  { %v1312_v26 = vadd.f32 %v1305_v19, %v1206_v18  ;;  %v6293_v45 = vpop.f32.mrb[25].mxu1 }
 0x77f   :  { %v1308_v46 = vpop.f32.mrb[26].mxu1 }
 0x780   :  { %v1321_v48 = vadd.f32 %v5749_v20, %v1312_v26  ;;  %v1313_v49 = vadd.f32 %v1308_v46, %v1209_v3  ;;  %v6294_v50 = vpop.f32.mrb[27].mxu1 }
 0x782   :  { %1322 = vst.msk [vmem:[#allocation2 + $0x10] sm:$0xff] %vm631_vm2, %v1321_v48  ;;  %v1330_v51 = vadd.f32 %v5751_v47, %v1313_v49 }
 0x784   :  { %1331 = vst.msk [vmem:[#allocation2 + $0x18] sm:$0xff] %vm631_vm2, %v1330_v51 }
 0x789   :  { %v8274_v11 = vld [vmem:[#allocation2 + $0x10] sm:$0xff] }
 0x78b   :  { %v8272_v8 = vld [vmem:[#allocation2 + $0x18] sm:$0xff] }
 0x78c   :  { %v8278_v12 = vpack.c.bf16 %v8272_v8, %v8274_v11 }
 0x792   :  { %v1551_v52 = vpop.f32.mrb[28].mxu1  ;;  %v1646_v53 = vpop.f32.mrb[28].mxu0 }
 0x793   :  { %v6313_v54 = vpop.f32.mrb[29].mxu1  ;;  %v6327_v55 = vpop.f32.mrb[29].mxu0 }
 0x794   :  { %v1554_v56 = vpop.f32.mrb[30].mxu1  ;;  %v1649_v57 = vpop.f32.mrb[30].mxu0 }
 0x795   :  { %v1558_v58 = vpack.c.bf16 %v1554_v56, %v1551_v52  ;;  %v6314_v59 = vpop.f32.mrb[31].mxu1  ;;  %v6328_v60 = vpop.f32.mrb[31].mxu0 }
 0x797   :  { %6316 = vmatpush3.bf16.msra.mxu1 %v1558_v58 }
 0x798   :  { %6329 = vmatprep.subr.bf16.mxu1 %v7679_v6 }
 0x79a   :  { %6318 = vmatmul.mubr.msk.bf16.vlgmr.msra.gmra.mrb[32].mxu1 %vm493_vm1, %v8055_v35  ;;  %v8259_v35 = vld [vmem:[#allocation2 + $0x8] sm:$0xff] }
 0x79b   :  { %6330 = vmatpush3.bf16.msra.mxu1 %v6979_v61  ;;  %6333 = vmatprep.mubr.msk.bf16.mxu1 %vm7680_vm0, %v7679_v6  ;;  %v8265_v7 = vpack.c.bf16 %v8259_v35, %v8261_v5 }
 0x79c   :  { %6331 = vmatprep.subr.bf16.mxu1 %v7679_v6 }
 0x79f   :  { %6332 = vmatpush3.bf16.msra.mxu1 %v6980_v62 }
 0x7a0   :  { %6343 = vmatprep.subr.bf16.mxu1 %v7679_v6 }
 0x7a2   :  { %6334 = vmatmul.mubr.msk.bf16.vlgmr.msra.gmra.mrb[36].mxu1 %vm631_vm2, %v1491_v44 }
 0x7a3   :  { %6344 = vmatpush3.bf16.msra.mxu1 %v6981_v63  ;;  %6347 = vmatprep.mubr.msk.bf16.mxu1 %vm7680_vm0, %v7679_v6 }
 0x7a4   :  { %6345 = vmatprep.subr.bf16.mxu1 %v7679_v6 }
 0x7a7   :  { %6346 = vmatpush3.bf16.msra.mxu1 %v6982_v0 }
 0x7a8   :  { %6375 = vmatprep.subr.bf16.mxu1 %v7679_v6 }
 0x7aa   :  { %6348 = vmatmul.mubr.msk.bf16.vlgmr.msra.gmra.mrb[40].mxu1 %vm631_vm2, %v8265_v7 }
 0x7ab   :  { %6351 = vmatprep.mubr.msk.bf16.mxu1 %vm7680_vm0, %v7679_v6  ;;  %6376 = vmatpush3.bf16.msra.mxu1 %v6985_v34 }
 0x7ac   :  { %6377 = vmatprep.subr.bf16.mxu1 %v7679_v6 }
 0x7af   :  { %6378 = vmatpush3.bf16.msra.mxu1 %v6986_v37 }
 0x7b0   :  { %6407 = vmatprep.subr.bf16.mxu1 %v7679_v6 }
 0x7b2   :  { %6352 = vmatmul.mubr.msk.bf16.gmra.mrb[44].mxu1 %vm631_vm2, %v8278_v12 }
 0x7b3   :  { %6355 = vmatprep.mubr.msk.bf16.mxu1 %vm7680_vm0, %v7679_v6 }
 0x86d   :  { %v1593_v13 = vpop.f32.mrb[32].mxu1 }
 0x86e   :  { %v1647_v14 = vadd.f32 %v1646_v53, %v1593_v13  ;;  %v6319_v15 = vpop.f32.mrb[33].mxu1 }
 0x86f   :  { %v1596_v16 = vpop.f32.mrb[34].mxu1 }
 0x870   :  { %v1650_v17 = vadd.f32 %v1649_v57, %v1596_v16  ;;  %v6320_v18 = vpop.f32.mrb[35].mxu1  ;;  %v6987_v16 = vld [vmem:[%s9360_s18] sm:$0xff]  }
 0x875   :  { %v1704_v21 = vpop.f32.mrb[36].mxu1 }
 0x876   :  { %v6335_v22 = vpop.f32.mrb[37].mxu1 }
 0x877   :  { %v1707_v3 = vpop.f32.mrb[38].mxu1 }
 0x878   :  { %v1711_v4 = vpack.c.bf16 %v1707_v3, %v1704_v21  ;;  %v6336_v23 = vpop.f32.mrb[39].mxu1 }
 0x87a   :  { %6338 = vmatpush3.bf16.msra.mxu0 %v1711_v4 }
 0x87b   :  { %6359 = vmatprep.subr.bf16.mxu0 %v7679_v6 }
 0x87d   :  { %6340 = vmatmul.mubr.msk.bf16.vlgmr.msra.gmra.mrb[32].mxu0 %vm493_vm1, %v8058_v36  ;;  %v1854_v25 = vpop.f32.mrb[40].mxu1 }
 0x87e   :  { %v6349_v27 = vpop.f32.mrb[41].mxu1  ;;  %6360 = vmatpush3.bf16.msra.mxu0 %v6983_v24  ;;  %6363 = vmatprep.mubr.msk.bf16.mxu0 %vm7680_vm0, %v7679_v6 }
 0x87f   :  { %v1857_v29 = vpop.f32.mrb[42].mxu1  ;;  %6361 = vmatprep.subr.bf16.mxu0 %v7679_v6 }
 0x880   :  { %v6350_v30 = vpop.f32.mrb[43].mxu1 }
 0x882   :  { %6362 = vmatpush3.bf16.msra.mxu0 %v6984_v28 }
 0x883   :  { %6391 = vmatprep.subr.bf16.mxu0 %v7679_v6 }
 0x885   :  { %v1862_v31 = vpop.f32.mrb[44].mxu1  ;;  %6364 = vmatmul.mubr.msk.bf16.vlgmr.msra.gmra.mrb[36].mxu0 %vm631_vm2, %v8265_v7 }
 0x886   :  { %v6353_v36 = vpop.f32.mrb[45].mxu1  ;;  %6367 = vmatprep.mubr.msk.bf16.mxu0 %vm7680_vm0, %v7679_v6  ;;  %6392 = vmatpush3.bf16.msra.mxu0 %v6987_v16 }
 0x887   :  { %v1865_v32 = vpop.f32.mrb[46].mxu1  ;;  %6393 = vmatprep.subr.bf16.mxu0 %v7679_v6 }
 0x888   :  { %v6354_v33 = vpop.f32.mrb[47].mxu1 }
 0x88d   :  { %6368 = vmatmul.mubr.msk.bf16.gmra.mrb[40].mxu0 %vm631_vm2, %v8278_v12 }
 0x88e   :  { %6371 = vmatprep.mubr.msk.bf16.mxu0 %vm7680_vm0, %v7679_v6 }
 0x950   :  { %v1746_v38 = vpop.f32.mrb[32].mxu0 }
 0x951   :  { %v1753_v40 = vadd.f32 %v1746_v38, %v1647_v14  ;;  %v6341_v41 = vpop.f32.mrb[33].mxu0 }
 0x952   :  { %v1749_v42 = vpop.f32.mrb[34].mxu0 }
 0x953   :  { %v1762_v44 = vadd.f32 %v5780_v39, %v1753_v40  ;;  %v1754_v19 = vadd.f32 %v1749_v42, %v1650_v17  ;;  %v6342_v20 = vpop.f32.mrb[35].mxu0 }
 0x955   :  { %1763 = vst.msk [vmem:[#allocation2 + $0x20] sm:$0xff] %vm631_vm2, %v1762_v44  ;;  %v1771_v26 = vadd.f32 %v5782_v43, %v1754_v19 }
 0x957   :  { %1772 = vst.msk [vmem:[#allocation2 + $0x28] sm:$0xff] %vm631_vm2, %v1771_v26 }
 0x958   :  { %v1923_v45 = vpop.f32.mrb[36].mxu0 }
 0x959   :  { %v2015_v46 = vmul.f32 %v1923_v45, %v1854_v25  ;;  %v6365_v47 = vpop.f32.mrb[37].mxu0 }
 0x95a   :  { %v1926_v48 = vpop.f32.mrb[38].mxu0 }
 0x95b   :  { %v2021_v49 = vmul.f32 0.17677669, %v2015_v46  ;;  %v2016_v50 = vmul.f32 %v1926_v48, %v1857_v29  ;;  %v6366_v51 = vpop.f32.mrb[39].mxu0 }
 0x95c   :  { %v8310_v54 = vld [vmem:[#allocation2 + $0x20] sm:$0xff] }
 0x95d   :  { %v2022_v52 = vmul.f32 0.17677669, %v2016_v50  ;;  %v2027_v53 = vsel %vm631_vm2, %v2021_v49, -inf }
 0x95e   :  { %2028 = vmax.xlane.f32.xlu0 %v2027_v53  ;;  %v8312_v55 = vld [vmem:[#allocation2 + $0x28] sm:$0xff] }
 0x95f   :  { %v2030_v56 = vsel %vm631_vm2, %v2022_v52, -inf  ;;  %v1798_v57 = vpack.c.bf16 %v8312_v55, %v8310_v54 }
 0x960   :  { %v1931_v58 = vpop.f32.mrb[40].mxu0  ;;  %2031 = vmax.xlane.f32.xlu1 %v2030_v56 }
 0x961   :  { %v2017_v59 = vmul.f32 %v1931_v58, %v1862_v31  ;;  %6356 = vmatmul.mubr.msk.bf16.gmra.mrb[48].mxu1 %vm631_vm2, %v1798_v57  ;;  %v6369_v60 = vpop.f32.mrb[41].mxu0  ;;  %6372 = vmatmul.mubr.msk.bf16.gmra.mrb[44].mxu0 %vm631_vm2, %v1798_v57 }
 0x962   :  { %v1934_v61 = vpop.f32.mrb[42].mxu0  ;;  %6379 = vmatprep.mubr.msk.bf16.mxu1 %vm7680_vm0, %v7679_v6  ;;  %6395 = vmatprep.mubr.msk.bf16.mxu0 %vm7680_vm0, %v7679_v6 }
 0x963   :  { %v2023_v62 = vmul.f32 0.17677669, %v2017_v59  ;;  %v2018_v63 = vmul.f32 %v1934_v61, %v1865_v32  ;;  %v6370_v0 = vpop.f32.mrb[43].mxu0  ;;  %v6989_v61 = vld [vmem:[%s9361_s30] sm:$0xff]  }
 0x965   :  { %v2024_v13 = vmul.f32 0.17677669, %v2018_v63  ;;  %v2033_v14 = vsel %vm631_vm2, %v2023_v62, -inf }
 0x966   :  { %2034 = vmax.xlane.f32.xlu0 %v2033_v14 }
 0x967   :  { %v2036_v15 = vsel %vm631_vm2, %v2024_v13, -inf }
 0x969   :  { %6380 = vmatmul.mubr.msk.bf16.vlgmr.msra.gmra.mrb[52].mxu1 %vm631_vm2, %v8265_v7  ;;  %v6988_v7 = vld [vmem:[%s9360_s18 + $0x8] sm:$0xff]  }
 0x96a   :  { %2037 = vmax.xlane.f32.xlu0 %v2036_v15  ;;  %6383 = vmatprep.mubr.msk.bf16.mxu1 %vm7680_vm0, %v7679_v6 }
 0x96b   :  { %6394 = vmatpush3.bf16.msra.mxu0 %v6988_v7  ;;  %6408 = vmatpush3.bf16.msra.mxu1 %v6989_v61 }
 0x96c   :  { %6423 = vmatprep.subr.bf16.mxu0 %v7679_v6  ;;  %6409 = vmatprep.subr.bf16.mxu1 %v7679_v6 }
 0x971   :  { %6384 = vmatmul.mubr.msk.bf16.gmra.mrb[56].mxu1 %vm631_vm2, %v8278_v12 }
 0x972   :  { %6387 = vmatprep.mubr.msk.bf16.mxu1 %vm7680_vm0, %v7679_v6 }
 0x979   :  { %6388 = vmatmul.mubr.msk.bf16.gmra.mrb[60].mxu1 %vm631_vm2, %v1798_v57 }
 0x97a   :  { %6411 = vmatprep.mubr.msk.bf16.mxu1 %vm7680_vm0, %v7679_v6 }
 0x9eb   :  { %v2029_v17 = vpop.xlane.xlu0 %2028 }
 0x9ec   :  { %v2045_v18 = vsub.f32 %v2021_v49, %v2029_v17 }
 0x9ed   :  { %v2032_v21 = vpop.xlane.xlu1 %2031 }
 0x9ee   :  { %v2051_v12 = vmul.f32 1.442695, %v2045_v18  ;;  %v2046_v22 = vsub.f32 %v2022_v52, %v2032_v21 }
 0x9f0   :  { %v2053_v3 = vmul.f32 1.442695, %v2046_v22  ;;  %7047 = vpow2.f32 %v2051_v12 }
 0x9f2   :  { %7049 = vpow2.f32 %v2053_v3 }
 0x9f3   :  { %v2035_v4 = vpop.xlane.xlu0 %2034 }
 0x9f4   :  { %v2047_v23 = vsub.f32 %v2023_v62, %v2035_v4  ;;  %v6990_v62 = vld [vmem:[%s9361_s30 + $0x8] sm:$0xff]   ;;  %s9377_s30 = sld [smem:[#allocation74_spill]] }
 0x9f5   :  { %6410 = vmatpush3.bf16.msra.mxu1 %v6990_v62 }
 0x9f6   :  { %v2055_v24 = vmul.f32 1.442695, %v2047_v23  ;;  %6439 = vmatprep.subr.bf16.mxu1 %v7679_v6 }
 0x9f7   :  { %v2038_v25 = vpop.xlane.xlu0 %2037 }
 0x9f8   :  { %v2048_v27 = vsub.f32 %v2024_v13, %v2038_v25  ;;  %7051 = vpow2.f32 %v2055_v24 }
 0x9fa   :  { %v2057_v28 = vmul.f32 1.442695, %v2048_v27  ;;  %v8340_v29 = vpop.eup %7047 }
 0x9fc   :  { %v8342_v30 = vpop.eup %7049  ;;  %7053 = vpow2.f32 %v2057_v28 }
 0x9fd   :  { %v2063_v31 = vpack.c.bf16 %v8342_v30, %v8340_v29 }
 0x9ff   :  { %6396 = vmatmul.mubr.msk.bf16.vlgmr.msra.gmra.mrb[48].mxu0 %vm631_vm2, %v2063_v31 }
 0xa00   :  { %6399 = vmatprep.mubr.msk.bf16.mxu0 %vm7680_vm0, %v7679_v6 }
 0xa02   :  { %v8349_v36 = vpop.eup %7051 }
 0xa06   :  { %v8351_v32 = vpop.eup %7053 }
 0xa07   :  { %v2064_v33 = vpack.c.bf16 %v8351_v32, %v8349_v36 }
 0xa09   :  { %6400 = vmatmul.mubr.msk.bf16.gmra.mrb[52].mxu0 %vm631_vm2, %v2064_v33 }
 0xa0a   :  { %6403 = vmatprep.mubr.msk.bf16.mxu0 %vm7680_vm0, %v7679_v6 }
 0xa34   :  { %v1870_v34 = vpop.f32.mrb[48].mxu1  ;;  %v1939_v37 = vpop.f32.mrb[44].mxu0 }
 0xa35   :  { %v2019_v38 = vmul.f32 %v1939_v37, %v1870_v34  ;;  %v6357_v39 = vpop.f32.mrb[49].mxu1  ;;  %v6373_v40 = vpop.f32.mrb[45].mxu0 }
 0xa36   :  { %v1873_v41 = vpop.f32.mrb[50].mxu1  ;;  %v1942_v42 = vpop.f32.mrb[46].mxu0 }
 0xa37   :  { %v2025_v43 = vmul.f32 0.17677669, %v2019_v38  ;;  %v2020_v44 = vmul.f32 %v1942_v42, %v1873_v41  ;;  %v6358_v19 = vpop.f32.mrb[51].mxu1  ;;  %v6374_v20 = vpop.f32.mrb[47].mxu0 }
 0xa39   :  { %v2026_v26 = vmul.f32 0.17677669, %v2020_v44  ;;  %v2039_v45 = vsel %vm631_vm2, %v2025_v43, -inf }
 0xa3a   :  { %2040 = vmax.xlane.f32.xlu1 %v2039_v45  ;;  %v5803_v45 = vld [vmem:[#allocation16] ss:$0 sm:$0xff] }
 0xa3b   :  { %v2042_v46 = vsel %vm631_vm2, %v2026_v26, -inf }
 0xa3c   :  { %2043 = vmax.xlane.f32.xlu0 %v2042_v46  ;;  %v1992_v47 = vpop.f32.mrb[52].mxu1 }
 0xa3d   :  { %v6381_v48 = vpop.f32.mrb[53].mxu1 }
 0xa3e   :  { %v1995_v49 = vpop.f32.mrb[54].mxu1 }
 0xa3f   :  { %v6382_v50 = vpop.f32.mrb[55].mxu1 }
 0xa44   :  { %v2000_v51 = vpop.f32.mrb[56].mxu1 }
 0xa45   :  { %v6385_v52 = vpop.f32.mrb[57].mxu1 }
 0xa46   :  { %v2003_v53 = vpop.f32.mrb[58].mxu1 }
 0xa47   :  { %v6386_v56 = vpop.f32.mrb[59].mxu1 }
 0xa4c   :  { %v8360_v57 = vpop.f32.mrb[60].mxu1 }
 0xa4d   :  { %v6389_v58 = vpop.f32.mrb[61].mxu1 }
 0xa4e   :  { %v8362_v59 = vpop.f32.mrb[62].mxu1 }
 0xa4f   :  { %v6390_v60 = vpop.f32.mrb[63].mxu1 }
 0xac7   :  { %v2041_v63 = vpop.xlane.xlu1 %2040 }
 0xac8   :  { %v2049_v0 = vsub.f32 %v2025_v43, %v2041_v63 }
 0xac9   :  { %v2044_v13 = vpop.xlane.xlu0 %2043 }
 0xaca   :  { %v2059_v14 = vmul.f32 1.442695, %v2049_v0  ;;  %v2050_v15 = vsub.f32 %v2026_v26, %v2044_v13 }
 0xacc   :  { %v2061_v16 = vmul.f32 1.442695, %v2050_v15  ;;  %7055 = vpow2.f32 %v2059_v14 }
 0xace   :  { %7057 = vpow2.f32 %v2061_v16 }
 0xad2   :  { %v2121_v7 = vpop.f32.mrb[48].mxu0 }
 0xad3   :  { %7059 = vrcp.f32 %v2121_v7  ;;  %v6397_v17 = vpop.f32.mrb[49].mxu0 }
 0xad4   :  { %v2124_v18 = vpop.f32.mrb[50].mxu0 }
 0xad5   :  { %7061 = vrcp.f32 %v2124_v18  ;;  %v6398_v21 = vpop.f32.mrb[51].mxu0 }
 0xad6   :  { %v7056_v12 = vpop.eup %7055 }
 0xad8   :  { %v7058_v22 = vpop.eup %7057 }
 0xad9   :  { %v2065_v3 = vpack.c.bf16 %v7058_v22, %v7056_v12 }
 0xadb   :  { %6404 = vmatmul.mubr.msk.bf16.gmra.mrb[56].mxu0 %vm631_vm2, %v2065_v3 }
 0xadc   :  { %v2129_v4 = vpop.f32.mrb[52].mxu0  ;;  %6427 = vmatprep.mubr.msk.bf16.mxu0 %vm7680_vm0, %v7679_v6 }
 0xadd   :  { %v7060_v23 = vpop.eup %7059  ;;  %7063 = vrcp.f32 %v2129_v4  ;;  %v6401_v24 = vpop.f32.mrb[53].mxu0 }
 0xade   :  { %v2150_v25 = vmul.f32 %v7060_v23, %v8340_v29  ;;  %v2132_v27 = vpop.f32.mrb[54].mxu0 }
 0xadf   :  { %v7062_v28 = vpop.eup %7061  ;;  %7065 = vrcp.f32 %v2132_v27  ;;  %v6402_v31 = vpop.f32.mrb[55].mxu0 }
 0xae0   :  { %v2156_v33 = vmul.f32 %v2150_v25, %v1992_v47  ;;  %v2151_v34 = vmul.f32 %v7062_v28, %v8342_v30 }
 0xae2   :  { %v2157_v37 = vmul.f32 %v2151_v34, %v1995_v49 }
 0xae4   :  { %v2162_v38 = vpack.c.bf16 %v2157_v37, %v2156_v33 }
 0xae6   :  { %6412 = vmatmul.mubr.msk.bf16.vlgmr.msra.gmra.mrb[64].mxu1 %vm631_vm2, %v2162_v38 }
 0xae7   :  { %v7064_v39 = vpop.eup %7063  ;;  %6415 = vmatprep.mubr.msk.bf16.mxu1 %vm7680_vm0, %v7679_v6 }
 0xae8   :  { %v2152_v40 = vmul.f32 %v7064_v39, %v8349_v36 }
 0xae9   :  { %v7066_v41 = vpop.eup %7065 }
 0xaea   :  { %v2153_v29 = vmul.f32 %v7066_v41, %v8351_v32  ;;  %v2158_v42 = vmul.f32 %v2152_v40, %v2000_v51 }
 0xaec   :  { %v2159_v43 = vmul.f32 %v2153_v29, %v2003_v53 }
 0xaee   :  { %v2163_v44 = vpack.c.bf16 %v2159_v43, %v2158_v42 }
 0xaf0   :  { %6416 = vmatmul.mubr.msk.bf16.gmra.mrb[68].mxu1 %vm631_vm2, %v2163_v44 }
 0xaf1   :  { %6419 = vmatprep.mubr.msk.bf16.mxu1 %vm7680_vm0, %v7679_v6 }
 0xbae   :  { %v2137_v30 = vpop.f32.mrb[56].mxu0 }
 0xbaf   :  { %7067 = vrcp.f32 %v2137_v30  ;;  %v6405_v19 = vpop.f32.mrb[57].mxu0 }
 0xbb0   :  { %v2140_v20 = vpop.f32.mrb[58].mxu0 }
 0xbb1   :  { %7069 = vrcp.f32 %v2140_v20  ;;  %v6406_v26 = vpop.f32.mrb[59].mxu0 }
 0xbb2   :  { %v2699_v26 = vld [vmem:[%s9362_s0] sm:$0xff] }
 0xbb9   :  { %v7068_v46 = vpop.eup %7067  ;;  %v2226_v36 = vpop.f32.mrb[64].mxu1 }
 0xbba   :  { %v2227_v47 = vadd.f32 %v5803_v45, %v2226_v36  ;;  %v6413_v48 = vpop.f32.mrb[65].mxu1  ;;  %v2154_v32 = vmul.f32 %v7068_v46, %v7056_v12  ;;  %v6992_v46 = vld [vmem:[%s9363_s24 + $0x8] sm:$0xff]  }
 0xbbb   :  { %v7070_v49 = vpop.eup %7069  ;;  %v2229_v50 = vpop.f32.mrb[66].mxu1 }
 0xbbc   :  { %v2230_v51 = vadd.f32 %v5803_v45, %v2229_v50  ;;  %v6414_v52 = vpop.f32.mrb[67].mxu1  ;;  %v2249_v53 = vadd.f32 %v2227_v47, %v8261_v5  ;;  %v2155_v56 = vmul.f32 %v7070_v49, %v7058_v22  ;;  %v2160_v58 = vmul.f32 %v2154_v32, %v8360_v57 }
 0xbbe   :  { %v2257_v60 = vsel %vm631_vm2, %v2249_v53, 0.0  ;;  %v2250_v61 = vadd.f32 %v2230_v51, %v8259_v35  ;;  %v2161_v62 = vmul.f32 %v2155_v56, %v8362_v59 }
 0xbbf   :  { %2258 = vadd.xlane.f32.xlu1 %v2257_v60 }
 0xbc0   :  { %v2260_v63 = vsel %vm631_vm2, %v2250_v61, 0.0  ;;  %v2164_v0 = vpack.c.bf16 %v2161_v62, %v2160_v58 }
 0xbc1   :  { %2261 = vadd.xlane.f32.xlu0 %v2260_v63 }
 0xbc2   :  { %6420 = vmatmul.mubr.msk.bf16.gmra.mrb[72].mxu1 %vm631_vm2, %v2164_v0 }
 0xbc3   :  { %v2234_v13 = vpop.f32.mrb[68].mxu1  ;;  %6455 = vmatprep.mubr.msk.bf16.mxu1 %vm7680_vm0, %v7679_v6 }
 0xbc4   :  { %v2235_v5 = vadd.f32 %v5803_v45, %v2234_v13  ;;  %v6417_v14 = vpop.f32.mrb[69].mxu1 }
 0xbc5   :  { %v2237_v57 = vpop.f32.mrb[70].mxu1 }
 0xbc6   :  { %v2238_v15 = vadd.f32 %v5803_v45, %v2237_v57  ;;  %v6418_v16 = vpop.f32.mrb[71].mxu1  ;;  %v2251_v35 = vadd.f32 %v2235_v5, %v8274_v11 }
 0xbc8   :  { %v2263_v59 = vsel %vm631_vm2, %v2251_v35, 0.0  ;;  %v2252_v7 = vadd.f32 %v2238_v15, %v8272_v8 }
 0xbc9   :  { %2264 = vadd.xlane.f32.xlu1 %v2263_v59  ;;  %v8434_v59 = vld [vmem:[#allocation17] ss:$0 sm:$0xff] }
 0xbca   :  { %v2266_v17 = vsel %vm631_vm2, %v2252_v7, 0.0 }
 0xbcb   :  { %2267 = vadd.xlane.f32.xlu0 %v2266_v17 }
 0xc4c   :  { %v2259_v18 = vpop.xlane.xlu1 %2258 }
 0xc4d   :  { %v2276_v12 = vmul.f32 0.03125, %v2259_v18 }
 0xc4e   :  { %v2262_v21 = vpop.xlane.xlu0 %2261 }
 0xc4f   :  { %v2277_v3 = vmul.f32 0.03125, %v2262_v21  ;;  %v8394_v24 = vsub.f32 %v2249_v53, %v2276_v12 }
 0xc51   :  { %v8396_v31 = vsub.f32 %v2250_v61, %v2277_v3  ;;  %v2288_v41 = vmul.f32 %v8394_v24, %v8394_v24 }
 0xc53   :  { %v2289_v43 = vmul.f32 %v8396_v31, %v8396_v31 }
 0xc55   :  { %v2297_v44 = vsel %vm631_vm2, %v2289_v43, 0.0  ;;  %v6997_v43 = vld [vmem:[%s9364_s26 + $0x20] sm:$0xff]  }
 0xc56   :  { %v2265_v22 = vpop.xlane.xlu1 %2264 }
 0xc57   :  { %v2278_v25 = vmul.f32 0.03125, %v2265_v22  ;;  %v8439_v22 = vld [vmem:[#allocation19] ss:$0 sm:$0xff] }
 0xc58   :  { %v2268_v4 = vpop.xlane.xlu0 %2267 }
 0xc59   :  { %v2279_v8 = vmul.f32 0.03125, %v2268_v4  ;;  %v8399_v38 = vsub.f32 %v2251_v35, %v2278_v25 }
 0xc5b   :  { %v8405_v29 = vsub.f32 %v2252_v7, %v2279_v8 }
 0xc5d   :  { %v2291_v30 = vmul.f32 %v8405_v29, %v8405_v29 }
 0xc5f   :  { %v2303_v20 = vsel %vm631_vm2, %v2291_v30, 0.0 }
 0xc95   :  { %v2242_v23 = vpop.f32.mrb[72].mxu1 }
 0xc96   :  { %v2243_v27 = vadd.f32 %v5803_v45, %v2242_v23  ;;  %v6421_v11 = vpop.f32.mrb[73].mxu1 }
 0xc97   :  { %v2245_v28 = vpop.f32.mrb[74].mxu1  ;;  %v2700_v11 = vld [vmem:[%s9362_s0 + $0x8] sm:$0xff] }
 0xc98   :  { %v2246_v33 = vadd.f32 %v5803_v45, %v2245_v28  ;;  %v6422_v34 = vpop.f32.mrb[75].mxu1  ;;  %v2253_v37 = vadd.f32 %v2243_v27, %v8310_v54  ;;  %v2294_v54 = vsel %vm631_vm2, %v2288_v41, 0.0  ;;  %v6991_v45 = vld [vmem:[%s9363_s24] sm:$0xff]   ;;  %v6994_v41 = vld [vmem:[%s9364_s26 + $0x8] sm:$0xff]   ;;  %s9379_s24 = sld [smem:[#allocation76_spill]] }
 0xc99   :  { %6424 = vmatpush3.bf16.msra.mxu0 %v6991_v45 }
 0xc9a   :  { %v2269_v39 = vsel %vm631_vm2, %v2253_v37, 0.0  ;;  %v2254_v40 = vadd.f32 %v2246_v33, %v8312_v55  ;;  %v2290_v55 = vmul.f32 %v8399_v38, %v8399_v38  ;;  %6425 = vmatprep.subr.bf16.mxu0 %v7679_v6  ;;  %v5849_v33 = vld [vmem:[%s9362_s0 + $0x18] sm:$0xff] }
 0xc9b   :  { %2270 = vadd.xlane.f32.xlu1 %v2269_v39 }
 0xc9c   :  { %v2272_v42 = vsel %vm631_vm2, %v2254_v40, 0.0  ;;  %v2300_v19 = vsel %vm631_vm2, %v2290_v55, 0.0  ;;  %v7000_v55 = vld [vmem:[%s9364_s26 + $0x38] sm:$0xff]  }
 0xc9d   :  { %2273 = vadd.xlane.f32.xlu0 %v2272_v42  ;;  %6426 = vmatpush3.bf16.msra.mxu0 %v6992_v46  ;;  %v6996_v42 = vld [vmem:[%s9364_s26 + $0x18] sm:$0xff]   ;;  %v2734_v46 = vld [vmem:[#allocation14] sm:$0x3] }
 0xc9e   :  { %6467 = vmatprep.subr.bf16.mxu0 %v7679_v6 }
 0xc9f   :  { %2295 = vadd.xlane.f32.xlu1 %v2294_v54  ;;  %v6999_v54 = vld [vmem:[%s9364_s26 + $0x30] sm:$0xff]  }
 0xca1   :  { %2298 = vadd.xlane.f32.xlu0 %v2297_v44 }
 0xca3   :  { %2301 = vadd.xlane.f32.xlu1 %v2300_v19 }
 0xca5   :  { %2304 = vadd.xlane.f32.xlu0 %v2303_v20 }
 0xcb4   :  { %2704 = vperm.xlu1 %6952, %v2699_v26  }
 0xcb8   :  { %6953 = vset.pattern.permute.xlu1 %v7677_v1 }
 0xd28   :  { %v2271_v36 = vpop.xlane.xlu1 %2270 }
 0xd29   :  { %v2280_v47 = vmul.f32 0.03125, %v2271_v36 }
 0xd2a   :  { %v2274_v48 = vpop.xlane.xlu0 %2273 }
 0xd2b   :  { %v8424_v32 = vsub.f32 %v2253_v37, %v2280_v47  ;;  %v2281_v49 = vmul.f32 0.03125, %v2274_v48  ;;  %v5848_v37 = vld [vmem:[%s9362_s0 + $0x10] sm:$0xff]  ;;  %v2744_v48 = vrot.slane %v2734_v46, %v8048_v10 }
 0xd2c   :  { %v2296_v50 = vpop.xlane.xlu1 %2295 }
 0xd2d   :  { %v8426_v51 = vsub.f32 %v2254_v40, %v2281_v49  ;;  %v2312_v52 = vmul.f32 0.03125, %v2296_v50  ;;  %v2292_v53 = vmul.f32 %v8424_v32, %v8424_v32  ;;  %v6993_v40 = vld [vmem:[%s9364_s26] sm:$0xff]   ;;  %v2701_v49 = vld [vmem:[#allocation13] sm:$0x3]  ;;  %v2738_v50 = vrot.slane %v2734_v46, %v8046_v9 }
 0xd2e   :  { %v2299_v56 = vpop.xlane.xlu0 %2298  ;;  %6440 = vmatpush3.bf16.msra.mxu1 %v6993_v40 }
 0xd2f   :  { %v2318_v58 = vadd.f32 1e-05, %v2312_v52  ;;  %v2313_v60 = vmul.f32 0.03125, %v2299_v56  ;;  %v2306_v61 = vsel %vm631_vm2, %v2292_v53, 0.0  ;;  %v2293_v62 = vmul.f32 %v8426_v51, %v8426_v51  ;;  %6441 = vmatprep.subr.bf16.mxu1 %v7679_v6 }
 0xd30   :  { %2307 = vadd.xlane.f32.xlu1 %v2306_v61  ;;  %v2302_v63 = vpop.xlane.xlu1 %2301  ;;  %v8499_v52 = vrot.slane %v2701_v49, %v8048_v10  ;;  %v8502_v56 = vrot.slane %v2701_v49, %v8046_v9 }
 0xd31   :  { %7071 = vrsqrt.f32 %v2318_v58  ;;  %v2319_v0 = vadd.f32 1e-05, %v2313_v60  ;;  %v2314_v13 = vmul.f32 0.03125, %v2302_v63  ;;  %v2309_v5 = vsel %vm631_vm2, %v2293_v62, 0.0 }
 0xd32   :  { %2310 = vadd.xlane.f32.xlu0 %v2309_v5  ;;  %v2305_v14 = vpop.xlane.xlu0 %2304  ;;  %6442 = vmatpush3.bf16.msra.mxu1 %v6994_v41 }
 0xd33   :  { %7073 = vrsqrt.f32 %v2319_v0  ;;  %v2320_v57 = vadd.f32 1e-05, %v2314_v13  ;;  %v2315_v15 = vmul.f32 0.03125, %v2305_v14  ;;  %6443 = vmatprep.subr.bf16.mxu1 %v7679_v6 }
 0xd34   :  { %v8492_v44 = vpop.permute.xlu1 %2704 }
 0xd35   :  { %7075 = vrsqrt.f32 %v2320_v57  ;;  %v2321_v16 = vadd.f32 1e-05, %v2315_v15  ;;  %v2739_v63 = vmul.f32 %v2738_v50, %v8492_v44 }
 0xd37   :  { %7077 = vrsqrt.f32 %v2321_v16 }
 0xd3b   :  { %v7072_v35 = vpop.eup %7071 }
 0xd3c   :  { %v2330_v7 = vmul.f32 %v7072_v35, %v8394_v24 }
 0xd3d   :  { %v7074_v17 = vpop.eup %7073 }
 0xd3e   :  { %v2342_v18 = vmul.f32 %v8434_v59, %v2330_v7  ;;  %v2331_v21 = vmul.f32 %v7074_v17, %v8396_v31 }
 0xd3f   :  { %v7076_v12 = vpop.eup %7075 }
 0xd40   :  { %v2343_v3 = vmul.f32 %v8434_v59, %v2331_v21  ;;  %v8443_v23 = vadd.f32 %v8439_v22, %v2342_v18  ;;  %v2332_v24 = vmul.f32 %v7076_v12, %v8399_v38  ;;  %v2794_v21 = vld [vmem:[#allocation14 + $0x2] sm:$0x3] }
 0xd41   :  { %v7078_v4 = vpop.eup %7077  ;;  %2719 = vperm.xlu1 %6953, %v2699_v26  }
 0xd42   :  { %v8446_v25 = vadd.f32 %v8439_v22, %v2343_v3  ;;  %v2333_v27 = vmul.f32 %v7078_v4, %v8405_v29  ;;  %v2344_v8 = vmul.f32 %v8434_v59, %v2332_v24  ;;  %v6995_v29 = vld [vmem:[%s9364_s26 + $0x10] sm:$0xff]   ;;  %v2804_v24 = vrot.slane %v2794_v21, %v8048_v10 }
 0xd43   :  { %6444 = vmatpush3.bf16.msra.mxu1 %v6995_v29 }
 0xd44   :  { %v2382_v28 = vpack.c.bf16 %v8446_v25, %v8443_v23  ;;  %v2345_v31 = vmul.f32 %v8434_v59, %v2333_v27  ;;  %v8465_v38 = vadd.f32 %v8439_v22, %v2344_v8  ;;  %6445 = vmatprep.subr.bf16.mxu1 %v7679_v6 }
 0xd45   :  { %2723 = vperm.xlu1 %6953, %v2700_v11  }
 0xd46   :  { %6428 = vmatmul.mubr.msk.bf16.vlgmr.msra.gmra.mrb[60].mxu0 %vm631_vm2, %v2382_v28  ;;  %v8460_v34 = vadd.f32 %v8439_v22, %v2345_v31 }
 0xd47   :  { %6431 = vmatprep.mubr.msk.bf16.mxu0 %vm7680_vm0, %v7679_v6  ;;  %6446 = vmatpush3.bf16.msra.mxu1 %v6996_v42 }
 0xd48   :  { %2709 = vperm.xlu0 %6950, %v2700_v11   ;;  %v2383_v39 = vpack.c.bf16 %v8460_v34, %v8465_v38  ;;  %6447 = vmatprep.subr.bf16.mxu1 %v7679_v6 }
 0xd49   :  { %6954 = vset.pattern.permute.xlu1 %v7678_v2 }
 0xd4a   :  { %3147 = vperm.xlu1 %6954, %v5849_v33  }
 0xd4b   :  { %6448 = vmatpush3.bf16.msra.mxu1 %v6997_v43 }
 0xd4c   :  { %3142 = vperm.xlu0 %6950, %v5848_v37   ;;  %6449 = vmatprep.subr.bf16.mxu1 %v7679_v6 }
 0xd4e   :  { %6432 = vmatmul.mubr.msk.bf16.gmra.mrb[64].mxu0 %vm631_vm2, %v2383_v39  ;;  %6956 = vset.pattern.permute.xlu1 %v7677_v1  ;;  %v5811_v39 = vld [vmem:[#allocation20] ss:$0 sm:$0xff] }
 0xd4f   :  { %3161 = vperm.xlu1 %6956, %v5849_v33   ;;  %6435 = vmatprep.mubr.msk.bf16.mxu0 %vm7680_vm0, %v7679_v6  ;;  %v8531_v33 = vld [vmem:[%s9353_s5] sm:$0xff]  }
 0xd50   :  { %6955 = vset.pattern.permute.xlu0 %v7677_v1 }
 0xd51   :  { %3157 = vperm.xlu0 %6955, %v5848_v37   ;;  %v8539_v37 = vld [vmem:[%s9353_s5 + $0x8] sm:$0xff]   ;;  %s3118_s5 = scalar_lea.vmem %s9356_s17, %s3117_s22  ;;  %s9370_s17 = sld [smem:[#allocation66_spill]] }
 0xd53   :  { %6957 = vset.pattern.permute.xlu1 %v7678_v2 }
 0xd55   :  { %6958 = vset.pattern.permute.xlu0 %v7678_v2  ;;  %v6998_v2 = vld [vmem:[%s9364_s26 + $0x28] sm:$0xff]   ;;  %s9380_s26 = sld [smem:[#allocation78_spill]] }
 0xd56   :  { %6450 = vmatpush3.bf16.msra.mxu1 %v6998_v2 }
 0xd57   :  { %6451 = vmatprep.subr.bf16.mxu1 %v7679_v6 }
 0xd5a   :  { %6452 = vmatpush3.bf16.msra.mxu1 %v6999_v54 }
 0xd5b   :  { %6453 = vmatprep.subr.bf16.mxu1 %v7679_v6 }
 0xd5e   :  { %6454 = vmatpush3.bf16.msra.mxu1 %v7000_v55 }
 0xd5f   :  { %6493 = vmatprep.subr.bf16.mxu1 %v7679_v6 }
 0xdbd   :  { %v2308_v30 = vpop.xlane.xlu1 %2307 }
 0xdbe   :  { %v2316_v19 = vmul.f32 0.03125, %v2308_v30 }
 0xdbf   :  { %v2311_v20 = vpop.xlane.xlu0 %2310 }
 0xdc0   :  { %v2322_v26 = vadd.f32 1e-05, %v2316_v19  ;;  %v2317_v45 = vmul.f32 0.03125, %v2311_v20 }
 0xdc1   :  { %v8494_v36 = vpop.permute.xlu1 %2719 }
 0xdc2   :  { %7079 = vrsqrt.f32 %v2322_v26  ;;  %v2323_v47 = vadd.f32 1e-05, %v2317_v45  ;;  %v2745_v58 = vmul.f32 %v2744_v48, %v8494_v36 }
 0xdc4   :  { %7081 = vrsqrt.f32 %v2323_v47  ;;  %v2747_v5 = vadd.f32 %v2745_v58, %v2739_v63  ;;  %v7002_v58 = vld [vmem:[%s9366_s12] sm:$0xff]  }
 0xdc5   :  { %v2724_v53 = vpop.permute.xlu1 %2723 }
 0xdc6   :  { %v2746_v60 = vmul.f32 %v2744_v48, %v2724_v53  ;;  %v2731_v61 = vmul.f32 %v8499_v52, %v2724_v53  ;;  %v2806_v27 = vmul.f32 %v2804_v24, %v2724_v53  ;;  %v7001_v53 = vld [vmem:[%s9365_s28] sm:$0xff]  }
 0xdc7   :  { %v2710_v62 = vpop.permute.xlu0 %2709 }
 0xdc8   :  { %v2717_v0 = vmul.f32 %v8502_v56, %v2710_v62  ;;  %v2740_v13 = vmul.f32 %v2738_v50, %v2710_v62 }
 0xdca   :  { %v2748_v14 = vadd.f32 %v2746_v60, %v2740_v13  ;;  %v8508_v57 = vadd.f32 %v2731_v61, %v2717_v0  ;;  %v7003_v60 = vld [vmem:[%s9365_s28 + $0x8] sm:$0xff]  }
 0xdcb   :  { %v7004_v61 = vld [vmem:[%s9366_s12 + $0x8] sm:$0xff]  }
 0xdcc   :  { %v7080_v15 = vpop.eup %7079  ;;  %v2749_v16 = vpack.c.bf16 %v2748_v14, %v2747_v5 }
 0xdcd   :  { %v2334_v35 = vmul.f32 %v7080_v15, %v8424_v32  ;;  %v2798_v32 = vrot.slane %v2794_v21, %v8046_v9 }
 0xdce   :  { %v7082_v7 = vpop.eup %7081  ;;  %6468 = vmatpush3.bf16.msra.mxu0 %v2749_v16 }
 0xdcf   :  { %v2335_v17 = vmul.f32 %v7082_v7, %v8426_v51  ;;  %6473 = vmatprep.subr.bf16.mxu0 %v7679_v6  ;;  %v2346_v18 = vmul.f32 %v8434_v59, %v2334_v35  ;;  %v2800_v11 = vmul.f32 %v2798_v32, %v2710_v62  ;;  %v2730_v7 = vmul.f32 %v8499_v52, %v8494_v36 }
 0xdd1   :  { %v2347_v12 = vmul.f32 %v8434_v59, %v2335_v17  ;;  %v8516_v3 = vadd.f32 %v8439_v22, %v2346_v18  ;;  %v2805_v59 = vmul.f32 %v2804_v24, %v8494_v36  ;;  %v2808_v28 = vadd.f32 %v2806_v27, %v2800_v11 }
 0xdd2   :  { %v2716_v17 = vmul.f32 %v8502_v56, %v8492_v44 }
 0xdd3   :  { %v8519_v4 = vadd.f32 %v8439_v22, %v2347_v12  ;;  %v2799_v22 = vmul.f32 %v2798_v32, %v8492_v44 }
 0xdd4   :  { %v2732_v18 = vadd.f32 %v2730_v7, %v2716_v17 }
 0xdd5   :  { %v2384_v51 = vpack.c.bf16 %v8519_v4, %v8516_v3  ;;  %v2807_v31 = vadd.f32 %v2805_v59, %v2799_v22 }
 0xdd7   :  { %6436 = vmatmul.mubr.msk.bf16.gmra.mrb[68].mxu0 %vm631_vm2, %v2384_v51  ;;  %v2809_v8 = vpack.c.bf16 %v2808_v28, %v2807_v31 }
 0xdd8   :  { %6469 = vmatprep.mubr.msk.bf16.mxu0 %vm7680_vm0, %v7679_v6 }
 0xddf   :  { %6470 = vmatmul.mubr.msk.bf16.vlgmr.msra.gmra.mrb[72].mxu0 %vm493_vm1, %v8531_v33 }
 0xde0   :  { %6474 = vmatpush3.bf16.msra.mxu0 %v2809_v8  ;;  %6475 = vmatprep.mubr.msk.bf16.mxu0 %vm7680_vm0, %v7679_v6 }
 0xde1   :  { %6479 = vmatprep.subr.bf16.mxu0 %v7679_v6 }
 0xdeb   :  { %6476 = vmatmul.mubr.msk.bf16.vlgmr.msra.gmra.mrb[72].mxu0 %vm493_vm1, %v8539_v37 }
 0xdec   :  { %6483 = vmatprep.mubr.msk.bf16.mxu0 %vm7680_vm0, %v7679_v6  ;;  %6480 = vmatpush3.bf16.msra.mxu0 %v7001_v53 }
 0xded   :  { %6481 = vmatprep.subr.bf16.mxu0 %v7679_v6 }
 0xdf0   :  { %6482 = vmatpush3.bf16.msra.mxu0 %v7003_v60 }
 0xdf1   :  { %6487 = vmatprep.subr.bf16.mxu0 %v7679_v6 }
 0xe19   :  { %v2446_v40 = vpop.f32.mrb[60].mxu0 }
 0xe1a   :  { %v2447_v41 = vadd.f32 %v5811_v39, %v2446_v40  ;;  %v6429_v29 = vpop.f32.mrb[61].mxu0 }
 0xe1b   :  { %v2449_v42 = vpop.f32.mrb[62].mxu0 }
 0xe1c   :  { %v2450_v43 = vadd.f32 %v5811_v39, %v2449_v42  ;;  %v6430_v2 = vpop.f32.mrb[63].mxu0  ;;  %v2469_v54 = vmax.f32 %v2447_v41, 0.0  ;;  %v8582_v42 = vpop.permute.xlu0 %3142 }
 0xe1e   :  { %v2470_v55 = vmax.f32 %v2450_v43, 0.0  ;;  %v8584_v43 = vpop.permute.xlu1 %3147 }
 0xe20   :  { %v2475_v30 = vpack.c.bf16 %v2470_v55, %v2469_v54 }
 0xe21   :  { %v2454_v19 = vpop.f32.mrb[64].mxu0 }
 0xe22   :  { %v2455_v20 = vadd.f32 %v5811_v39, %v2454_v19  ;;  %v6433_v26 = vpop.f32.mrb[65].mxu0  ;;  %6456 = vmatmul.mubr.bf16.vlgmr.msra.gmra.mrb[76].mxu1 %v2475_v30  ;;  %v3173_v19 = vld [vmem:[#allocation14 + $0x4] sm:$0x3] }
 0xe23   :  { %v2457_v45 = vpop.f32.mrb[66].mxu0  ;;  %6459 = vmatprep.mubr.msk.bf16.mxu1 %vm7680_vm0, %v7679_v6  ;;  %6494 = vmatpush3.bf16.msra.mxu1 %v7002_v58  ;;  %v3177_v53 = vrot.slane %v3173_v19, %v8046_v9  ;;  %v7005_v58 = vld [vmem:[%s9365_s28 + $0x10] sm:$0xff]  }
 0xe24   :  { %v2458_v46 = vadd.f32 %v5811_v39, %v2457_v45  ;;  %v6434_v47 = vpop.f32.mrb[67].mxu0  ;;  %v2471_v48 = vmax.f32 %v2455_v20, 0.0  ;;  %6495 = vmatprep.subr.bf16.mxu1 %v7679_v6  ;;  %v3183_v45 = vrot.slane %v3173_v19, %v8048_v10 }
 0xe25   :  { %v3179_v60 = vmul.f32 %v3177_v53, %v8584_v43 }
 0xe26   :  { %v2472_v49 = vmax.f32 %v2458_v46, 0.0 }
 0xe27   :  { %6496 = vmatpush3.bf16.msra.mxu1 %v7004_v61 }
 0xe28   :  { %v2476_v50 = vpack.c.bf16 %v2472_v49, %v2471_v48  ;;  %6509 = vmatprep.subr.bf16.mxu1 %v7679_v6  ;;  %v8591_v49 = vpop.permute.xlu1 %3161 }
 0xe29   :  { %v3185_v61 = vmul.f32 %v3183_v45, %v8591_v49 }
 0xe2a   :  { %6460 = vmatmul.mubr.bf16.gmra.mrb[80].mxu1 %v2476_v50  ;;  %v8593_v50 = vpop.permute.xlu0 %3157 }
 0xe2b   :  { %6463 = vmatprep.mubr.msk.bf16.mxu1 %vm7680_vm0, %v7679_v6 }
 0xeaa   :  { %v2462_v62 = vpop.f32.mrb[68].mxu0 }
 0xeab   :  { %v2463_v63 = vadd.f32 %v5811_v39, %v2462_v62  ;;  %v6437_v0 = vpop.f32.mrb[69].mxu0  ;;  %v3184_v62 = vmul.f32 %v3183_v45, %v8593_v50 }
 0xeac   :  { %v2465_v13 = vpop.f32.mrb[70].mxu0  ;;  %v7006_v0 = vld [vmem:[%s9365_s28 + $0x18] sm:$0xff]  }
 0xead   :  { %v2466_v5 = vadd.f32 %v5811_v39, %v2465_v13  ;;  %v6438_v14 = vpop.f32.mrb[71].mxu0  ;;  %v2473_v15 = vmax.f32 %v2463_v63, 0.0  ;;  %v3178_v63 = vmul.f32 %v3177_v53, %v8582_v42  ;;  %v3233_v13 = vld [vmem:[#allocation14 + $0x6] sm:$0x3] }
 0xeae   :  { %v3187_v14 = vadd.f32 %v3185_v61, %v3179_v60 }
 0xeaf   :  { %v2474_v16 = vmax.f32 %v2466_v5, 0.0  ;;  %v3243_v5 = vrot.slane %v3233_v13, %v8048_v10 }
 0xeb1   :  { %v2477_v35 = vpack.c.bf16 %v2474_v16, %v2473_v15  ;;  %v3186_v15 = vadd.f32 %v3184_v62, %v3178_v63  ;;  %v3237_v16 = vrot.slane %v3233_v13, %v8046_v9  ;;  %v3245_v7 = vmul.f32 %v3243_v5, %v8591_v49 }
 0xeb2   :  { %v3244_v17 = vmul.f32 %v3243_v5, %v8593_v50 }
 0xeb3   :  { %6464 = vmatmul.mubr.bf16.gmra.mrb[84].mxu1 %v2477_v35  ;;  %v3239_v35 = vmul.f32 %v3237_v16, %v8584_v43 }
 0xeb4   :  { %6497 = vmatprep.mubr.msk.bf16.mxu1 %vm7680_vm0, %v7679_v6 }
 0xebe   :  { %v2844_v21 = vpop.f32.mrb[72].mxu0 }
 0xebf   :  { %v6839_v12 = vadd.f32 %v2844_v21, %v2732_v18  ;;  %v6477_v32 = vpop.f32.mrb[73].mxu0  ;;  %v3188_v18 = vpack.c.bf16 %v3187_v14, %v3186_v15  ;;  %v3238_v21 = vmul.f32 %v3237_v16, %v8582_v42 }
 0xec0   :  { %v2847_v24 = vpop.f32.mrb[74].mxu0 }
 0xec1   :  { %v6840_v51 = vadd.f32 %v2847_v24, %v8508_v57  ;;  %v6478_v27 = vpop.f32.mrb[75].mxu0  ;;  %v2853_v11 = vmax.f32 %v6839_v12, 0.0  ;;  %v3247_v12 = vadd.f32 %v3245_v7, %v3239_v35  ;;  %v3246_v32 = vadd.f32 %v3244_v17, %v3238_v21 }
 0xec2   :  { %v7010_v27 = vld [vmem:[%s9366_s12 + $0x18] sm:$0xff]  }
 0xec3   :  { %v2854_v59 = vmax.f32 %v6840_v51, 0.0  ;;  %v3248_v24 = vpack.c.bf16 %v3247_v12, %v3246_v32  ;;  %v7008_v51 = vld [vmem:[%s9366_s12 + $0x10] sm:$0xff]   ;;  %v5845_v12 = vld [vmem:[%s3118_s5] ss:$0 sm:$0xff] }
 0xec5   :  { %v2855_v22 = vpack.c.bf16 %v2854_v59, %v2853_v11  ;;  %v5879_v11 = vld [vmem:[%s9362_s0 + $0x20] sm:$0xff]  ;;  %v5880_v59 = vld [vmem:[%s9362_s0 + $0x28] sm:$0xff]  ;;  %s9378_s0 = sld [smem:[#allocation77_spill]] }
 0xec6   :  { %3583 = vperm.xlu1 %6957, %v5879_v11   ;;  %3588 = vperm.xlu0 %6958, %v5880_v59  }
 0xec7   :  { %6484 = vmatmul.mubr.msk.bf16.vlgmr.msra.gmra.mrb[76].mxu0 %vm631_vm2, %v2855_v22  ;;  %6498 = vmatmul.mubr.msk.bf16.vlgmr.msra.gmra.mrb[88].mxu1 %vm631_vm2, %v2855_v22 }
 0xec8   :  { %6489 = vmatprep.mubr.msk.bf16.mxu0 %vm7680_vm0, %v7679_v6  ;;  %6511 = vmatprep.mubr.msk.bf16.mxu1 %vm7680_vm0, %v7679_v6 }
 0xeca   :  { %6959 = vset.pattern.permute.xlu1 %v7677_v1  ;;  %6960 = vset.pattern.permute.xlu0 %v7677_v1  ;;  %v7009_v1 = vld [vmem:[%s9365_s28 + $0x28] sm:$0xff]  }
 0xecb   :  { %3598 = vperm.xlu1 %6959, %v5879_v11  }
 0xecf   :  { %3602 = vperm.xlu1 %6959, %v5880_v59  }
 0xef5   :  { %v8570_v44 = vpop.f32.mrb[76].mxu1 }
 0xef6   :  { %v6457_v36 = vpop.f32.mrb[77].mxu1 }
 0xef7   :  { %v8572_v52 = vpop.f32.mrb[78].mxu1 }
 0xef8   :  { %v6458_v56 = vpop.f32.mrb[79].mxu1 }
 0xefd   :  { %v8574_v57 = vpop.f32.mrb[80].mxu1 }
 0xefe   :  { %v6461_v28 = vpop.f32.mrb[81].mxu1 }
 0xeff   :  { %v8576_v31 = vpop.f32.mrb[82].mxu1 }
 0xf00   :  { %v6462_v8 = vpop.f32.mrb[83].mxu1 }
 0xf86   :  { %v8578_v39 = vpop.f32.mrb[84].mxu1 }
 0xf87   :  { %v6465_v40 = vpop.f32.mrb[85].mxu1 }
 0xf88   :  { %v8580_v41 = vpop.f32.mrb[86].mxu1 }
 0xf89   :  { %v6466_v29 = vpop.f32.mrb[87].mxu1 }
 0xf9a   :  { %v2913_v2 = vpop.f32.mrb[76].mxu0  ;;  %v8586_v54 = vpop.f32.mrb[88].mxu1 }
 0xf9b   :  { %v6485_v55 = vpop.f32.mrb[77].mxu0  ;;  %v6499_v30 = vpop.f32.mrb[89].mxu1 }
 0xf9c   :  { %v2916_v20 = vpop.f32.mrb[78].mxu0  ;;  %v8588_v26 = vpop.f32.mrb[90].mxu1 }
 0xf9d   :  { %v2920_v46 = vpack.c.bf16 %v2916_v20, %v2913_v2  ;;  %v6486_v47 = vpop.f32.mrb[79].mxu0  ;;  %v6500_v48 = vpop.f32.mrb[91].mxu1  ;;  %v7007_v20 = vld [vmem:[%s9365_s28 + $0x20] sm:$0xff]  }
 0xf9f   :  { %6488 = vmatpush3.bf16.msra.mxu0 %v2920_v46 }
 0xfa0   :  { %6501 = vmatprep.subr.bf16.mxu0 %v7679_v6 }
 0xfa2   :  { %6490 = vmatmul.mubr.msk.bf16.vlgmr.msra.gmra.mrb[80].mxu0 %vm493_vm1, %v8531_v33 }
 0xfa3   :  { %6502 = vmatpush3.bf16.msra.mxu0 %v7005_v58  ;;  %6505 = vmatprep.mubr.msk.bf16.mxu0 %vm7680_vm0, %v7679_v6 }
 0xfa4   :  { %6503 = vmatprep.subr.bf16.mxu0 %v7679_v6 }
 0xfa7   :  { %6504 = vmatpush3.bf16.msra.mxu0 %v7006_v0 }
 0xfa8   :  { %6515 = vmatprep.subr.bf16.mxu0 %v7679_v6 }
 0xfaa   :  { %6506 = vmatmul.mubr.msk.bf16.vlgmr.msra.gmra.mrb[84].mxu0 %vm631_vm2, %v2855_v22 }
 0xfab   :  { %6516 = vmatpush3.bf16.msra.mxu0 %v3188_v18  ;;  %6517 = vmatprep.mubr.msk.bf16.mxu0 %vm7680_vm0, %v7679_v6 }
 0xfac   :  { %6521 = vmatprep.subr.bf16.mxu0 %v7679_v6 }
 0xfb2   :  { %6518 = vmatmul.mubr.msk.bf16.vlgmr.msra.gmra.mrb[88].mxu0 %vm493_vm1, %v8531_v33 }
 0xfb3   :  { %6522 = vmatpush3.bf16.msra.mxu0 %v3248_v24  ;;  %6523 = vmatprep.mubr.msk.bf16.mxu0 %vm7680_vm0, %v7679_v6 }
 0xfb4   :  { %6541 = vmatprep.subr.bf16.mxu0 %v7679_v6 }
 0xfbe   :  { %6524 = vmatmul.mubr.msk.bf16.vlgmr.msra.gmra.mrb[88].mxu0 %vm493_vm1, %v8539_v37 }
 0xfbf   :  { %6545 = vmatprep.mubr.msk.bf16.mxu0 %vm7680_vm0, %v7679_v6  ;;  %6542 = vmatpush3.bf16.msra.mxu0 %v7008_v51 }
 0xfc0   :  { %6543 = vmatprep.subr.bf16.mxu0 %v7679_v6 }
 0xfc3   :  { %6544 = vmatpush3.bf16.msra.mxu0 %v7010_v27  ;;  %v5847_v27 = vld [vmem:[%s3127_s27] ss:$0 sm:$0xff] }
 0xfc4   :  { %6557 = vmatprep.subr.bf16.mxu0 %v7679_v6 }
0x1075   :  { %v2955_v22 = vpop.f32.mrb[80].mxu0 }
0x1076   :  { %v3009_v36 = vadd.f32 %v8586_v54, %v2955_v22  ;;  %v6491_v56 = vpop.f32.mrb[81].mxu0  ;;  %v3139_v54 = vld [vmem:[#allocation13 + $0x2] sm:$0x3] }
0x1077   :  { %v2958_v28 = vpop.f32.mrb[82].mxu0  ;;  %v3153_v45 = vrot.slane %v3139_v54, %v8046_v9 }
0x1078   :  { %v3012_v8 = vadd.f32 %v8588_v26, %v2958_v28  ;;  %v6492_v40 = vpop.f32.mrb[83].mxu0  ;;  %v3167_v26 = vrot.slane %v3139_v54, %v8048_v10  ;;  %v3614_v28 = vld [vmem:[#allocation14 + $0x8] sm:$0x3] }
0x1079   :  { %v3154_v47 = vmul.f32 %v3153_v45, %v8582_v42  ;;  %v3155_v48 = vmul.f32 %v3153_v45, %v8584_v43  ;;  %v3580_v42 = vld [vmem:[#allocation13 + $0x4] sm:$0x3]  ;;  %v3584_v43 = vpop.permute.xlu1 %3583  ;;  %v8681_v45 = vpop.permute.xlu0 %3588 }
0x107a   :  { %v3168_v46 = vmul.f32 %v3167_v26, %v8593_v50  ;;  %v3169_v53 = vmul.f32 %v3167_v26, %v8591_v49  ;;  %v8664_v49 = vrot.slane %v3580_v42, %v8046_v9  ;;  %v8667_v50 = vrot.slane %v3580_v42, %v8048_v10 }
0x107c   :  { %v3170_v58 = vadd.f32 %v3168_v46, %v3154_v47  ;;  %v3171_v63 = vadd.f32 %v3169_v53, %v3155_v48  ;;  %v3595_v7 = vmul.f32 %v8664_v49, %v3584_v43  ;;  %v7011_v46 = vld [vmem:[%s9365_s28 + $0x30] sm:$0xff]   ;;  %v3674_v47 = vld [vmem:[#allocation14 + $0xa] sm:$0x3] }
0x107d   :  { %v3066_v29 = vpop.f32.mrb[84].mxu0  ;;  %v3599_v35 = vpop.permute.xlu1 %3598 }
0x107e   :  { %v6507_v2 = vpop.f32.mrb[85].mxu0  ;;  %v3609_v17 = vmul.f32 %v8667_v50, %v3599_v35 }
0x107f   :  { %v3069_v55 = vpop.f32.mrb[86].mxu0 }
0x1080   :  { %v3073_v30 = vpack.c.bf16 %v3069_v55, %v3066_v29  ;;  %v6508_v19 = vpop.f32.mrb[87].mxu0  ;;  %v8671_v18 = vadd.f32 %v3609_v17, %v3595_v7 }
0x1081   :  { %v8679_v26 = vpop.permute.xlu1 %3602 }
0x1082   :  { %6510 = vmatpush3.bf16.msra.mxu1 %v3073_v30 }
0x1083   :  { %6527 = vmatprep.subr.bf16.mxu1 %v7679_v6 }
0x1085   :  { %6512 = vmatmul.mubr.msk.bf16.vlgmr.msra.gmra.mrb[92].mxu1 %vm493_vm1, %v8539_v37 }
0x1086   :  { %6528 = vmatpush3.bf16.msra.mxu1 %v7007_v20  ;;  %6531 = vmatprep.mubr.msk.bf16.mxu1 %vm7680_vm0, %v7679_v6 }
0x1087   :  { %6529 = vmatprep.subr.bf16.mxu1 %v7679_v6 }
0x108a   :  { %6530 = vmatpush3.bf16.msra.mxu1 %v7009_v1 }
0x108b   :  { %6535 = vmatprep.subr.bf16.mxu1 %v7679_v6 }
0x1091   :  { %v3283_v60 = vpop.f32.mrb[88].mxu0 }
0x1092   :  { %v6841_v61 = vadd.f32 %v3283_v60, %v3170_v58  ;;  %v6525_v62 = vpop.f32.mrb[89].mxu0 }
0x1093   :  { %v3286_v0 = vpop.f32.mrb[90].mxu0  ;;  %v3678_v62 = vrot.slane %v3674_v47, %v8046_v9 }
0x1094   :  { %v6842_v13 = vadd.f32 %v3286_v0, %v3171_v63  ;;  %v6526_v5 = vpop.f32.mrb[91].mxu0  ;;  %v3292_v14 = vmax.f32 %v6841_v61, 0.0  ;;  %v7012_v61 = vld [vmem:[%s9365_s28 + $0x38] sm:$0xff]   ;;  %v3684_v63 = vrot.slane %v3674_v47, %v8048_v10 }
0x1095   :  { %v3679_v5 = vmul.f32 %v3678_v62, %v3584_v43  ;;  %v3680_v42 = vmul.f32 %v3678_v62, %v8681_v45 }
0x1096   :  { %v3293_v15 = vmax.f32 %v6842_v13, 0.0 }
0x1098   :  { %v8653_v16 = vpack.c.bf16 %v3293_v15, %v3292_v14  ;;  %v3685_v14 = vmul.f32 %v3684_v63, %v3599_v35  ;;  %v3686_v15 = vmul.f32 %v3684_v63, %v8679_v26 }
0x109a   :  { %6532 = vmatmul.mubr.msk.bf16.vlgmr.msra.gmra.mrb[96].mxu1 %vm631_vm2, %v8653_v16  ;;  %6546 = vmatmul.mubr.msk.bf16.vlgmr.msra.gmra.mrb[92].mxu0 %vm631_vm2, %v8653_v16 }
0x109b   :  { %6537 = vmatprep.mubr.msk.bf16.mxu1 %vm7680_vm0, %v7679_v6  ;;  %6559 = vmatprep.mubr.msk.bf16.mxu0 %vm7680_vm0, %v7679_v6 }
0x1158   :  { %v3108_v21 = vpop.f32.mrb[92].mxu1 }
0x1159   :  { %v3115_v32 = vadd.f32 %v3108_v21, %v3009_v36  ;;  %v6513_v24 = vpop.f32.mrb[93].mxu1  ;;  %v3618_v36 = vrot.slane %v3614_v28, %v8046_v9  ;;  %v3687_v9 = vadd.f32 %v3685_v14, %v3679_v5 }
0x115a   :  { %v3111_v51 = vpop.f32.mrb[94].mxu1 }
0x115b   :  { %v3124_v11 = vadd.f32 %v5845_v12, %v3115_v32  ;;  %v3116_v59 = vadd.f32 %v3111_v51, %v3012_v8  ;;  %v6514_v22 = vpop.f32.mrb[95].mxu1  ;;  %v3624_v8 = vrot.slane %v3614_v28, %v8048_v10  ;;  %v3619_v48 = vmul.f32 %v3618_v36, %v3584_v43  ;;  %v7013_v28 = vld [vmem:[%s9365_s28 + $0x40] sm:$0xff]  }
0x115c   :  { %v3620_v60 = vmul.f32 %v3618_v36, %v8681_v45  ;;  %v3688_v10 = vadd.f32 %v3686_v15, %v3680_v42 }
0x115d   :  { %3125 = vst.msk [vmem:[#allocation3] sm:$0xff] %vm631_vm2, %v3124_v11  ;;  %v3133_v56 = vadd.f32 %v5847_v27, %v3116_v59  ;;  %v3625_v53 = vmul.f32 %v3624_v8, %v3599_v35  ;;  %v3626_v58 = vmul.f32 %v3624_v8, %v8679_v26  ;;  %v7016_v35 = vld [vmem:[%s9366_s12 + $0x28] sm:$0xff]  }
0x115e   :  { %v3689_v43 = vpack.c.bf16 %v3688_v10, %v3687_v9  ;;  %v7017_v9 = vld [vmem:[%s9365_s28 + $0x50] sm:$0xff]   ;;  %v7018_v10 = vld [vmem:[%s9365_s28 + $0x58] sm:$0xff]  }
0x115f   :  { %3134 = vst.msk [vmem:[#allocation3 + $0x8] sm:$0xff] %vm631_vm2, %v3133_v56  ;;  %v3627_v0 = vadd.f32 %v3625_v53, %v3619_v48  ;;  %v3628_v13 = vadd.f32 %v3626_v58, %v3620_v60  ;;  %v5878_v48 = vld [vmem:[%s3568_s1] ss:$0 sm:$0xff] }
0x1161   :  { %v3629_v7 = vpack.c.bf16 %v3628_v13, %v3627_v0 }
0x116d   :  { %v3354_v40 = vpop.f32.mrb[96].mxu1  ;;  %v3449_v29 = vpop.f32.mrb[92].mxu0 }
0x116e   :  { %v6533_v2 = vpop.f32.mrb[97].mxu1  ;;  %v6547_v55 = vpop.f32.mrb[93].mxu0 }
0x116f   :  { %v3357_v30 = vpop.f32.mrb[98].mxu1  ;;  %v3452_v19 = vpop.f32.mrb[94].mxu0  ;;  %v3596_v2 = vmul.f32 %v8664_v49, %v8681_v45 }
0x1170   :  { %v3361_v20 = vpack.c.bf16 %v3357_v30, %v3354_v40  ;;  %v6534_v1 = vpop.f32.mrb[99].mxu1  ;;  %v6548_v54 = vpop.f32.mrb[95].mxu0  ;;  %v7015_v40 = vld [vmem:[%s9365_s28 + $0x48] sm:$0xff]   ;;  %s9381_s28 = sld [smem:[#allocation79_spill]] }
0x1172   :  { %6536 = vmatpush3.bf16.msra.mxu1 %v3361_v20 }
0x1173   :  { %6549 = vmatprep.subr.bf16.mxu1 %v7679_v6 }
0x1175   :  { %6538 = vmatmul.mubr.msk.bf16.vlgmr.msra.gmra.mrb[100].mxu1 %vm493_vm1, %v8531_v33 }
0x1176   :  { %6550 = vmatpush3.bf16.msra.mxu1 %v7011_v46  ;;  %6553 = vmatprep.mubr.msk.bf16.mxu1 %vm7680_vm0, %v7679_v6 }
0x1177   :  { %6551 = vmatprep.subr.bf16.mxu1 %v7679_v6 }
0x117a   :  { %6552 = vmatpush3.bf16.msra.mxu1 %v7012_v61 }
0x117b   :  { %6563 = vmatprep.subr.bf16.mxu1 %v7679_v6 }
0x117d   :  { %6554 = vmatmul.mubr.msk.bf16.vlgmr.msra.gmra.mrb[104].mxu1 %vm631_vm2, %v8653_v16  ;;  %v7014_v16 = vld [vmem:[%s9366_s12 + $0x20] sm:$0xff]  }
0x117e   :  { %6564 = vmatpush3.bf16.msra.mxu1 %v3629_v7  ;;  %6565 = vmatprep.mubr.msk.bf16.mxu1 %vm7680_vm0, %v7679_v6 }
0x117f   :  { %6569 = vmatprep.subr.bf16.mxu1 %v7679_v6 }
0x1185   :  { %6566 = vmatmul.mubr.msk.bf16.vlgmr.msra.gmra.mrb[108].mxu1 %vm493_vm1, %v8531_v33 }
0x1186   :  { %6570 = vmatpush3.bf16.msra.mxu1 %v3689_v43  ;;  %6571 = vmatprep.mubr.msk.bf16.mxu1 %vm7680_vm0, %v7679_v6  ;;  %v7019_v43 = vld [vmem:[%s9367_s2] sm:$0xff]  }
0x1187   :  { %6589 = vmatprep.subr.bf16.mxu1 %v7679_v6 }
0x1191   :  { %6572 = vmatmul.mubr.msk.bf16.vlgmr.msra.gmra.mrb[108].mxu1 %vm493_vm1, %v8539_v37 }
0x1192   :  { %6593 = vmatprep.mubr.msk.bf16.mxu1 %vm7680_vm0, %v7679_v6  ;;  %6590 = vmatpush3.bf16.msra.mxu1 %v7014_v16  ;;  %v7020_v16 = vld [vmem:[%s9367_s2 + $0x8] sm:$0xff]  }
0x1193   :  { %6591 = vmatprep.subr.bf16.mxu1 %v7679_v6 }
0x1196   :  { %6592 = vmatpush3.bf16.msra.mxu1 %v7016_v35  ;;  %v8757_v35 = vld [vmem:[#allocation3] sm:$0xff] }
0x1197   :  { %6605 = vmatprep.subr.bf16.mxu1 %v7679_v6 }
0x1248   :  { %v3396_v17 = vpop.f32.mrb[100].mxu1 }
0x1249   :  { %v3450_v21 = vadd.f32 %v3449_v29, %v3396_v17  ;;  %v6539_v12 = vpop.f32.mrb[101].mxu1  ;;  %v3610_v29 = vmul.f32 %v8667_v50, %v8679_v26  ;;  %v5876_v50 = vld [vmem:[%s3559_s29] ss:$0 sm:$0xff] }
0x124a   :  { %v3399_v32 = vpop.f32.mrb[102].mxu1 }
0x124b   :  { %v3453_v24 = vadd.f32 %v3452_v19, %v3399_v32  ;;  %v6540_v51 = vpop.f32.mrb[103].mxu1  ;;  %v3612_v36 = vadd.f32 %v3610_v29, %v3596_v2 }
0x1250   :  { %v3507_v27 = vpop.f32.mrb[104].mxu1 }
0x1251   :  { %v6555_v11 = vpop.f32.mrb[105].mxu1 }
0x1252   :  { %v3510_v59 = vpop.f32.mrb[106].mxu1 }
0x1253   :  { %v3514_v22 = vpack.c.bf16 %v3510_v59, %v3507_v27  ;;  %v6556_v56 = vpop.f32.mrb[107].mxu1 }
0x1255   :  { %6558 = vmatpush3.bf16.msra.mxu0 %v3514_v22 }
0x1256   :  { %6575 = vmatprep.subr.bf16.mxu0 %v7679_v6 }
0x1258   :  { %6560 = vmatmul.mubr.msk.bf16.vlgmr.msra.gmra.mrb[96].mxu0 %vm493_vm1, %v8539_v37 }
0x1259   :  { %6576 = vmatpush3.bf16.msra.mxu0 %v7013_v28  ;;  %6579 = vmatprep.mubr.msk.bf16.mxu0 %vm7680_vm0, %v7679_v6 }
0x125a   :  { %6577 = vmatprep.subr.bf16.mxu0 %v7679_v6 }
0x125d   :  { %6578 = vmatpush3.bf16.msra.mxu0 %v7015_v40 }
0x125e   :  { %6583 = vmatprep.subr.bf16.mxu0 %v7679_v6 }
0x1264   :  { %v3724_v55 = vpop.f32.mrb[108].mxu1 }
0x1265   :  { %v6843_v30 = vadd.f32 %v3724_v55, %v8671_v18  ;;  %v6573_v19 = vpop.f32.mrb[109].mxu1  ;;  %v7021_v55 = vld [vmem:[%s9368_s8] sm:$0xff]  }
0x1266   :  { %v3727_v20 = vpop.f32.mrb[110].mxu1 }
0x1267   :  { %v6844_v8 = vadd.f32 %v3727_v20, %v3612_v36  ;;  %v6574_v1 = vpop.f32.mrb[111].mxu1  ;;  %v3733_v54 = vmax.f32 %v6843_v30, 0.0  ;;  %v7022_v36 = vld [vmem:[%s9368_s8 + $0x8] sm:$0xff]  }
0x1269   :  { %v3734_v46 = vmax.f32 %v6844_v8, 0.0 }
0x126b   :  { %v3735_v47 = vpack.c.bf16 %v3734_v46, %v3733_v54  ;;  %v8794_v54 = vld [vmem:[%s9360_s18] sm:$0xff]  }
0x126d   :  { %6580 = vmatmul.mubr.msk.bf16.vlgmr.msra.gmra.mrb[100].mxu0 %vm631_vm2, %v3735_v47  ;;  %6594 = vmatmul.mubr.msk.bf16.vlgmr.msra.gmra.mrb[112].mxu1 %vm631_vm2, %v3735_v47 }
0x126e   :  { %6585 = vmatprep.mubr.msk.bf16.mxu0 %vm7680_vm0, %v7679_v6  ;;  %6607 = vmatprep.mubr.msk.bf16.mxu1 %vm7680_vm0, %v7679_v6 }
0x132b   :  { %v3549_v49 = vpop.f32.mrb[96].mxu0 }
0x132c   :  { %v3556_v18 = vadd.f32 %v3549_v49, %v3450_v21  ;;  %v6561_v26 = vpop.f32.mrb[97].mxu0  ;;  %v8799_v49 = vld [vmem:[%s9360_s18 + $0x8] sm:$0xff]   ;;  %s9376_s18 = sld [smem:[#allocation73_spill]] }
0x132d   :  { %v3552_v45 = vpop.f32.mrb[98].mxu0 }
0x132e   :  { %v3565_v53 = vadd.f32 %v5876_v50, %v3556_v18  ;;  %v3557_v58 = vadd.f32 %v3552_v45, %v3453_v24  ;;  %v6562_v60 = vpop.f32.mrb[99].mxu0  ;;  %v7023_v50 = vld [vmem:[%s9369_s7] sm:$0xff]   ;;  %v7024_v18 = vld [vmem:[%s9369_s7 + $0x8] sm:$0xff]  }
0x132f   :  { %v5907_v45 = vld [vmem:[%s4000_s9] ss:$0 sm:$0xff] }
0x1330   :  { %3566 = vst.msk [vmem:[#allocation3 + $0x10] sm:$0xff] %vm631_vm2, %v3565_v53  ;;  %v3574_v61 = vadd.f32 %v5878_v48, %v3557_v58  ;;  %v5909_v60 = vld [vmem:[%s4009_s4] ss:$0 sm:$0xff] }
0x1332   :  { %3575 = vst.msk [vmem:[#allocation3 + $0x18] sm:$0xff] %vm631_vm2, %v3574_v61 }
0x1337   :  { %v8770_v12 = vld [vmem:[#allocation3 + $0x10] sm:$0xff] }
0x1339   :  { %v8768_v21 = vld [vmem:[#allocation3 + $0x18] sm:$0xff] }
0x133a   :  { %v8774_v32 = vpack.c.bf16 %v8768_v21, %v8770_v12 }
0x1340   :  { %v3795_v62 = vpop.f32.mrb[100].mxu0  ;;  %v3890_v63 = vpop.f32.mrb[112].mxu1 }
0x1341   :  { %v6581_v0 = vpop.f32.mrb[101].mxu0  ;;  %v6595_v13 = vpop.f32.mrb[113].mxu1 }
0x1342   :  { %v3798_v5 = vpop.f32.mrb[102].mxu0  ;;  %v3893_v14 = vpop.f32.mrb[114].mxu1 }
0x1343   :  { %v3802_v15 = vpack.c.bf16 %v3798_v5, %v3795_v62  ;;  %v6582_v42 = vpop.f32.mrb[103].mxu0  ;;  %v6596_v7 = vpop.f32.mrb[115].mxu1 }
0x1345   :  { %6584 = vmatpush3.bf16.msra.mxu0 %v3802_v15 }
0x1346   :  { %6597 = vmatprep.subr.bf16.mxu0 %v7679_v6 }
0x1348   :  { %6586 = vmatmul.mubr.msk.bf16.vlgmr.msra.gmra.mrb[104].mxu0 %vm493_vm1, %v8531_v33  ;;  %v8755_v33 = vld [vmem:[#allocation3 + $0x8] sm:$0xff] }
0x1349   :  { %6598 = vmatpush3.bf16.msra.mxu0 %v7017_v9  ;;  %6601 = vmatprep.mubr.msk.bf16.mxu0 %vm7680_vm0, %v7679_v6  ;;  %v8761_v17 = vpack.c.bf16 %v8755_v33, %v8757_v35 }
0x134a   :  { %6599 = vmatprep.subr.bf16.mxu0 %v7679_v6 }
0x134d   :  { %6600 = vmatpush3.bf16.msra.mxu0 %v7018_v10 }
0x134e   :  { %6611 = vmatprep.subr.bf16.mxu0 %v7679_v6 }
0x1350   :  { %6602 = vmatmul.mubr.msk.bf16.vlgmr.msra.gmra.mrb[108].mxu0 %vm631_vm2, %v3735_v47 }
0x1351   :  { %6612 = vmatpush3.bf16.msra.mxu0 %v7019_v43  ;;  %6615 = vmatprep.mubr.msk.bf16.mxu0 %vm7680_vm0, %v7679_v6 }
0x1352   :  { %6613 = vmatprep.subr.bf16.mxu0 %v7679_v6 }
0x1355   :  { %6614 = vmatpush3.bf16.msra.mxu0 %v7020_v16 }
0x1356   :  { %6643 = vmatprep.subr.bf16.mxu0 %v7679_v6 }
0x1358   :  { %6616 = vmatmul.mubr.msk.bf16.vlgmr.msra.gmra.mrb[112].mxu0 %vm631_vm2, %v8761_v17 }
0x1359   :  { %6619 = vmatprep.mubr.msk.bf16.mxu0 %vm7680_vm0, %v7679_v6  ;;  %6644 = vmatpush3.bf16.msra.mxu0 %v7023_v50 }
0x135a   :  { %6645 = vmatprep.subr.bf16.mxu0 %v7679_v6 }
0x135d   :  { %6646 = vmatpush3.bf16.msra.mxu0 %v7024_v18 }
0x135e   :  { %6675 = vmatprep.subr.bf16.mxu0 %v7679_v6 }
0x1360   :  { %6620 = vmatmul.mubr.msk.bf16.gmra.mrb[116].mxu0 %vm631_vm2, %v8774_v32 }
0x1361   :  { %6623 = vmatprep.mubr.msk.bf16.mxu0 %vm7680_vm0, %v7679_v6 }
0x141b   :  { %v3837_v24 = vpop.f32.mrb[104].mxu0 }
0x141c   :  { %v3891_v51 = vadd.f32 %v3890_v63, %v3837_v24  ;;  %v6587_v27 = vpop.f32.mrb[105].mxu0 }
0x141d   :  { %v3840_v11 = vpop.f32.mrb[106].mxu0 }
0x141e   :  { %v3894_v59 = vadd.f32 %v3893_v14, %v3840_v11  ;;  %v6588_v22 = vpop.f32.mrb[107].mxu0 }
0x1423   :  { %v3948_v56 = vpop.f32.mrb[108].mxu0 }
0x1424   :  { %v6603_v28 = vpop.f32.mrb[109].mxu0 }
0x1425   :  { %v3951_v40 = vpop.f32.mrb[110].mxu0 }
0x1426   :  { %v3955_v29 = vpack.c.bf16 %v3951_v40, %v3948_v56  ;;  %v6604_v2 = vpop.f32.mrb[111].mxu0 }
0x1428   :  { %6606 = vmatpush3.bf16.msra.mxu1 %v3955_v29 }
0x1429   :  { %6627 = vmatprep.subr.bf16.mxu1 %v7679_v6 }
0x142b   :  { %6608 = vmatmul.mubr.msk.bf16.vlgmr.msra.gmra.mrb[116].mxu1 %vm493_vm1, %v8539_v37  ;;  %v4098_v30 = vpop.f32.mrb[112].mxu0 }
0x142c   :  { %v6617_v19 = vpop.f32.mrb[113].mxu0  ;;  %6628 = vmatpush3.bf16.msra.mxu1 %v7021_v55  ;;  %6631 = vmatprep.mubr.msk.bf16.mxu1 %vm7680_vm0, %v7679_v6 }
0x142d   :  { %v4101_v20 = vpop.f32.mrb[114].mxu0  ;;  %6629 = vmatprep.subr.bf16.mxu1 %v7679_v6 }
0x142e   :  { %v6618_v8 = vpop.f32.mrb[115].mxu0 }
0x1430   :  { %6630 = vmatpush3.bf16.msra.mxu1 %v7022_v36 }
0x1431   :  { %6659 = vmatprep.subr.bf16.mxu1 %v7679_v6 }
0x1433   :  { %v4106_v1 = vpop.f32.mrb[116].mxu0  ;;  %6632 = vmatmul.mubr.msk.bf16.vlgmr.msra.gmra.mrb[120].mxu1 %vm631_vm2, %v8761_v17 }
0x1434   :  { %v6621_v37 = vpop.f32.mrb[117].mxu0  ;;  %6635 = vmatprep.mubr.msk.bf16.mxu1 %vm7680_vm0, %v7679_v6  ;;  %6660 = vmatpush3.bf16.msra.mxu1 %v8794_v54 }
0x1435   :  { %v4109_v46 = vpop.f32.mrb[118].mxu0  ;;  %6661 = vmatprep.subr.bf16.mxu1 %v7679_v6 }
0x1436   :  { %v6622_v47 = vpop.f32.mrb[119].mxu0 }
0x1438   :  { %6662 = vmatpush3.bf16.msra.mxu1 %v8799_v49 }
0x1439   :  { %6691 = vmatprep.subr.bf16.mxu1 %v7679_v6 }
0x143b   :  { %6636 = vmatmul.mubr.msk.bf16.gmra.mrb[124].mxu1 %vm631_vm2, %v8774_v32 }
0x143c   :  { %6639 = vmatprep.mubr.msk.bf16.mxu1 %vm7680_vm0, %v7679_v6 }
0x14fe   :  { %v3990_v26 = vpop.f32.mrb[116].mxu1 }
0x14ff   :  { %v3997_v48 = vadd.f32 %v3990_v26, %v3891_v51  ;;  %v6609_v53 = vpop.f32.mrb[117].mxu1 }
0x1500   :  { %v3993_v58 = vpop.f32.mrb[118].mxu1 }
0x1501   :  { %v4006_v61 = vadd.f32 %v5907_v45, %v3997_v48  ;;  %v3998_v62 = vadd.f32 %v3993_v58, %v3894_v59  ;;  %v6610_v63 = vpop.f32.mrb[119].mxu1 }
0x1503   :  { %4007 = vst.msk [vmem:[#allocation3 + $0x20] sm:$0xff] %vm631_vm2, %v4006_v61  ;;  %v4015_v0 = vadd.f32 %v5909_v60, %v3998_v62  ;;  %v8860_v61 = vld [vmem:[#allocation22] ss:$0 sm:$0xff] }
0x1505   :  { %4016 = vst.msk [vmem:[#allocation3 + $0x28] sm:$0xff] %vm631_vm2, %v4015_v0  ;;  %v2567_v0 = vadd.f32 %v8860_v61, %v8570_v44 }
0x1506   :  { %v4167_v13 = vpop.f32.mrb[120].mxu1 }
0x1507   :  { %v4259_v5 = vmul.f32 %v4167_v13, %v4098_v30  ;;  %v6633_v14 = vpop.f32.mrb[121].mxu1 }
0x1508   :  { %v4170_v15 = vpop.f32.mrb[122].mxu1 }
0x1509   :  { %v4265_v42 = vmul.f32 0.17677669, %v4259_v5  ;;  %v4260_v7 = vmul.f32 %v4170_v15, %v4101_v20  ;;  %v6634_v9 = vpop.f32.mrb[123].mxu1 }
0x150a   :  { %v8816_v16 = vld [vmem:[#allocation3 + $0x20] sm:$0xff] }
0x150b   :  { %v4266_v10 = vmul.f32 0.17677669, %v4260_v7  ;;  %v4271_v43 = vsel %vm631_vm2, %v4265_v42, -inf  ;;  %v2570_v7 = vadd.f32 %v8860_v61, %v8572_v52 }
0x150c   :  { %4272 = vmax.xlane.f32.xlu0 %v4271_v43  ;;  %v8818_v24 = vld [vmem:[#allocation3 + $0x28] sm:$0xff] }
0x150d   :  { %v4274_v51 = vsel %vm631_vm2, %v4266_v10, -inf  ;;  %v4042_v27 = vpack.c.bf16 %v8818_v24, %v8816_v16 }
0x150e   :  { %4275 = vmax.xlane.f32.xlu1 %v4274_v51  ;;  %v4175_v11 = vpop.f32.mrb[124].mxu1 }
0x150f   :  { %v4261_v59 = vmul.f32 %v4175_v11, %v4106_v1  ;;  %6624 = vmatmul.mubr.msk.bf16.gmra.mrb[120].mxu0 %vm631_vm2, %v4042_v27  ;;  %v6637_v22 = vpop.f32.mrb[125].mxu1  ;;  %6640 = vmatmul.mubr.msk.bf16.gmra.mrb[128].mxu1 %vm631_vm2, %v4042_v27 }
0x1510   :  { %v4178_v56 = vpop.f32.mrb[126].mxu1  ;;  %6647 = vmatprep.mubr.msk.bf16.mxu0 %vm7680_vm0, %v7679_v6  ;;  %6663 = vmatprep.mubr.msk.bf16.mxu1 %vm7680_vm0, %v7679_v6  ;;  %v8872_v22 = vadd.f32 %v2570_v7, %v8446_v25 }
0x1511   :  { %v4267_v28 = vmul.f32 0.17677669, %v4261_v59  ;;  %v4262_v40 = vmul.f32 %v4178_v56, %v4109_v46  ;;  %v6638_v29 = vpop.f32.mrb[127].mxu1  ;;  %v8868_v59 = vadd.f32 %v2567_v0, %v8443_v23 }
0x1512   :  { %v2600_v23 = vsel %vm631_vm2, %v8872_v22, 0.0 }
0x1513   :  { %v4268_v2 = vmul.f32 0.17677669, %v4262_v40  ;;  %v4277_v55 = vsel %vm631_vm2, %v4267_v28, -inf }
0x1514   :  { %4278 = vmax.xlane.f32.xlu0 %v4277_v55 }
0x1515   :  { %v4280_v30 = vsel %vm631_vm2, %v4268_v2, -inf }
0x1517   :  { %6648 = vmatmul.mubr.msk.bf16.vlgmr.msra.gmra.mrb[124].mxu0 %vm631_vm2, %v8761_v17 }
0x1518   :  { %4281 = vmax.xlane.f32.xlu0 %v4280_v30  ;;  %6651 = vmatprep.mubr.msk.bf16.mxu0 %vm7680_vm0, %v7679_v6 }
0x151f   :  { %6652 = vmatmul.mubr.msk.bf16.gmra.mrb[128].mxu0 %vm631_vm2, %v8774_v32 }
0x1520   :  { %6655 = vmatprep.mubr.msk.bf16.mxu0 %vm7680_vm0, %v7679_v6 }
0x1527   :  { %6656 = vmatmul.mubr.msk.bf16.gmra.mrb[132].mxu0 %vm631_vm2, %v4042_v27 }
0x1528   :  { %6679 = vmatprep.mubr.msk.bf16.mxu0 %vm7680_vm0, %v7679_v6 }
0x1599   :  { %v4273_v19 = vpop.xlane.xlu0 %4272 }
0x159a   :  { %v4289_v36 = vsub.f32 %v4265_v42, %v4273_v19 }
0x159b   :  { %v4276_v17 = vpop.xlane.xlu1 %4275 }
0x159c   :  { %v4295_v20 = vmul.f32 1.442695, %v4289_v36  ;;  %v4290_v8 = vsub.f32 %v4266_v10, %v4276_v17 }
0x159e   :  { %v4297_v1 = vmul.f32 1.442695, %v4290_v8  ;;  %7083 = vpow2.f32 %v4295_v20  ;;  %v7025_v8 = vld [vmem:[%s9370_s17] sm:$0xff]  }
0x159f   :  { %6676 = vmatpush3.bf16.msra.mxu0 %v7025_v8 }
0x15a0   :  { %7085 = vpow2.f32 %v4297_v1  ;;  %6677 = vmatprep.subr.bf16.mxu0 %v7679_v6  ;;  %v7026_v1 = vld [vmem:[%s9370_s17 + $0x8] sm:$0xff]  }
0x15a1   :  { %v4279_v37 = vpop.xlane.xlu0 %4278 }
0x15a2   :  { %v4291_v46 = vsub.f32 %v4267_v28, %v4279_v37  ;;  %v2597_v28 = vsel %vm631_vm2, %v8868_v59, 0.0 }
0x15a3   :  { %6678 = vmatpush3.bf16.msra.mxu0 %v7026_v1 }
0x15a4   :  { %v4299_v47 = vmul.f32 1.442695, %v4291_v46  ;;  %6707 = vmatprep.subr.bf16.mxu0 %v7679_v6 }
0x15a5   :  { %v4282_v32 = vpop.xlane.xlu0 %4281 }
0x15a6   :  { %v4292_v50 = vsub.f32 %v4268_v2, %v4282_v32  ;;  %7087 = vpow2.f32 %v4299_v47 }
0x15a8   :  { %v4301_v18 = vmul.f32 1.442695, %v4292_v50  ;;  %v8842_v26 = vpop.eup %7083 }
0x15aa   :  { %v8844_v45 = vpop.eup %7085  ;;  %7089 = vpow2.f32 %v4301_v18 }
0x15ab   :  { %v4307_v48 = vpack.c.bf16 %v8844_v45, %v8842_v26 }
0x15ad   :  { %6664 = vmatmul.mubr.msk.bf16.vlgmr.msra.gmra.mrb[132].mxu1 %vm631_vm2, %v4307_v48 }
0x15ae   :  { %6667 = vmatprep.mubr.msk.bf16.mxu1 %vm7680_vm0, %v7679_v6 }
0x15b0   :  { %v8851_v53 = vpop.eup %7087 }
0x15b4   :  { %v8853_v58 = vpop.eup %7089 }
0x15b5   :  { %v4308_v60 = vpack.c.bf16 %v8853_v58, %v8851_v53 }
0x15b7   :  { %6668 = vmatmul.mubr.msk.bf16.gmra.mrb[136].mxu1 %vm631_vm2, %v4308_v60 }
0x15b8   :  { %6671 = vmatprep.mubr.msk.bf16.mxu1 %vm7680_vm0, %v7679_v6 }
0x15e2   :  { %v4114_v62 = vpop.f32.mrb[120].mxu0  ;;  %v4183_v63 = vpop.f32.mrb[128].mxu1 }
0x15e3   :  { %v4263_v13 = vmul.f32 %v4183_v63, %v4114_v62  ;;  %v6625_v5 = vpop.f32.mrb[121].mxu0  ;;  %v6641_v14 = vpop.f32.mrb[129].mxu1 }
0x15e4   :  { %v4117_v15 = vpop.f32.mrb[122].mxu0  ;;  %v4186_v42 = vpop.f32.mrb[130].mxu1 }
0x15e5   :  { %v4269_v9 = vmul.f32 0.17677669, %v4263_v13  ;;  %v4264_v10 = vmul.f32 %v4186_v42, %v4117_v15  ;;  %v6626_v43 = vpop.f32.mrb[123].mxu0  ;;  %v6642_v51 = vpop.f32.mrb[131].mxu1 }
0x15e7   :  { %v4270_v27 = vmul.f32 0.17677669, %v4264_v10  ;;  %v4283_v11 = vsel %vm631_vm2, %v4269_v9, -inf }
0x15e8   :  { %4284 = vmax.xlane.f32.xlu1 %v4283_v11 }
0x15e9   :  { %v4286_v44 = vsel %vm631_vm2, %v4270_v27, -inf }
0x15ea   :  { %v4236_v56 = vpop.f32.mrb[124].mxu0  ;;  %4287 = vmax.xlane.f32.xlu0 %v4286_v44 }
0x15eb   :  { %v6649_v52 = vpop.f32.mrb[125].mxu0 }
0x15ec   :  { %v4239_v40 = vpop.f32.mrb[126].mxu0  ;;  %2598 = vadd.xlane.f32.xlu1 %v2597_v28 }
0x15ed   :  { %v6650_v29 = vpop.f32.mrb[127].mxu0 }
0x15ee   :  { %2601 = vadd.xlane.f32.xlu0 %v2600_v23 }
0x15f2   :  { %v4244_v2 = vpop.f32.mrb[128].mxu0 }
0x15f3   :  { %v6653_v55 = vpop.f32.mrb[129].mxu0 }
0x15f4   :  { %v4247_v30 = vpop.f32.mrb[130].mxu0 }
0x15f5   :  { %v6654_v25 = vpop.f32.mrb[131].mxu0 }
0x15fa   :  { %v8878_v19 = vpop.f32.mrb[132].mxu0 }
0x15fb   :  { %v6657_v36 = vpop.f32.mrb[133].mxu0 }
0x15fc   :  { %v8880_v17 = vpop.f32.mrb[134].mxu0 }
0x15fd   :  { %v6658_v20 = vpop.f32.mrb[135].mxu0 }
0x15fe   :  { %v8899_v20 = vld [vmem:[#allocation26] ss:$0 sm:$0xff] }
0x1675   :  { %v4285_v37 = vpop.xlane.xlu1 %4284 }
0x1676   :  { %v4293_v46 = vsub.f32 %v4269_v9, %v4285_v37 }
0x1677   :  { %v4288_v47 = vpop.xlane.xlu0 %4287 }
0x1678   :  { %v4303_v32 = vmul.f32 1.442695, %v4293_v46  ;;  %v4294_v50 = vsub.f32 %v4270_v27, %v4288_v47  ;;  %v2578_v46 = vadd.f32 %v8860_v61, %v8576_v31 }
0x167a   :  { %v4305_v18 = vmul.f32 1.442695, %v4294_v50  ;;  %7091 = vpow2.f32 %v4303_v32 }
0x167c   :  { %7093 = vpow2.f32 %v4305_v18 }
0x1680   :  { %v4353_v48 = vpop.f32.mrb[132].mxu1 }
0x1681   :  { %7095 = vrcp.f32 %v4353_v48  ;;  %v6665_v60 = vpop.f32.mrb[133].mxu1 }
0x1682   :  { %v4356_v62 = vpop.f32.mrb[134].mxu1 }
0x1683   :  { %7097 = vrcp.f32 %v4356_v62  ;;  %v6666_v63 = vpop.f32.mrb[135].mxu1 }
0x1684   :  { %v7092_v0 = vpop.eup %7091 }
0x1686   :  { %v7094_v13 = vpop.eup %7093 }
0x1687   :  { %v4309_v5 = vpack.c.bf16 %v7094_v13, %v7092_v0 }
0x1689   :  { %6672 = vmatmul.mubr.msk.bf16.gmra.mrb[140].mxu1 %vm631_vm2, %v4309_v5 }
0x168a   :  { %v4361_v14 = vpop.f32.mrb[136].mxu1  ;;  %6695 = vmatprep.mubr.msk.bf16.mxu1 %vm7680_vm0, %v7679_v6 }
0x168b   :  { %v7096_v15 = vpop.eup %7095  ;;  %7099 = vrcp.f32 %v4361_v14  ;;  %v6669_v42 = vpop.f32.mrb[137].mxu1  ;;  %v8917_v14 = vadd.f32 %v2578_v46, %v8460_v34 }
0x168c   :  { %v4382_v7 = vmul.f32 %v7096_v15, %v8842_v26  ;;  %v4364_v9 = vpop.f32.mrb[138].mxu1  ;;  %v2586_v15 = vadd.f32 %v8860_v61, %v8580_v41 }
0x168d   :  { %v7098_v10 = vpop.eup %7097  ;;  %7101 = vrcp.f32 %v4364_v9  ;;  %v6670_v43 = vpop.f32.mrb[139].mxu1  ;;  %v2606_v34 = vsel %vm631_vm2, %v8917_v14, 0.0 }
0x168e   :  { %v4388_v51 = vmul.f32 %v4382_v7, %v4236_v56  ;;  %v4383_v27 = vmul.f32 %v7098_v10, %v8844_v45 }
0x1690   :  { %v4389_v11 = vmul.f32 %v4383_v27, %v4239_v40  ;;  %v8940_v27 = vadd.f32 %v2586_v15, %v8519_v4 }
0x1692   :  { %v4394_v44 = vpack.c.bf16 %v4389_v11, %v4388_v51 }
0x1694   :  { %6680 = vmatmul.mubr.msk.bf16.vlgmr.msra.gmra.mrb[136].mxu0 %vm631_vm2, %v4394_v44 }
0x1695   :  { %v7100_v52 = vpop.eup %7099  ;;  %6683 = vmatprep.mubr.msk.bf16.mxu0 %vm7680_vm0, %v7679_v6 }
0x1696   :  { %v4384_v28 = vmul.f32 %v7100_v52, %v8851_v53 }
0x1697   :  { %v7102_v29 = vpop.eup %7101 }
0x1698   :  { %v4385_v26 = vmul.f32 %v7102_v29, %v8853_v58  ;;  %v4390_v23 = vmul.f32 %v4384_v28, %v4244_v2  ;;  %v2575_v58 = vadd.f32 %v8860_v61, %v8574_v57 }
0x169a   :  { %v4391_v55 = vmul.f32 %v4385_v26, %v4247_v30 }
0x169c   :  { %v4395_v25 = vpack.c.bf16 %v4391_v55, %v4390_v23 }
0x169e   :  { %6684 = vmatmul.mubr.msk.bf16.gmra.mrb[140].mxu0 %vm631_vm2, %v4395_v25 }
0x169f   :  { %6687 = vmatprep.mubr.msk.bf16.mxu0 %vm7680_vm0, %v7679_v6 }
0x175c   :  { %v4369_v45 = vpop.f32.mrb[140].mxu1 }
0x175d   :  { %7103 = vrcp.f32 %v4369_v45  ;;  %v6673_v56 = vpop.f32.mrb[141].mxu1 }
0x175e   :  { %v4372_v40 = vpop.f32.mrb[142].mxu1 }
0x175f   :  { %7105 = vrcp.f32 %v4372_v40  ;;  %v6674_v36 = vpop.f32.mrb[143].mxu1 }
0x1767   :  { %v7104_v53 = vpop.eup %7103  ;;  %v4458_v8 = vpop.f32.mrb[136].mxu0 }
0x1768   :  { %v4459_v2 = vadd.f32 %v8899_v20, %v4458_v8  ;;  %v6681_v30 = vpop.f32.mrb[137].mxu0  ;;  %v4386_v1 = vmul.f32 %v7104_v53, %v7092_v0  ;;  %v8913_v0 = vadd.f32 %v2575_v58, %v8465_v38  ;;  %v2583_v38 = vadd.f32 %v8860_v61, %v8578_v39  ;;  %v2599_v61 = vpop.xlane.xlu1 %2598 }
0x1769   :  { %v7106_v37 = vpop.eup %7105  ;;  %v4461_v47 = vpop.f32.mrb[138].mxu0 }
0x176a   :  { %v4462_v32 = vadd.f32 %v8899_v20, %v4461_v47  ;;  %v6682_v50 = vpop.f32.mrb[139].mxu0  ;;  %v4481_v18 = vadd.f32 %v4459_v2, %v8757_v35  ;;  %v4387_v48 = vmul.f32 %v7106_v37, %v7094_v13  ;;  %v4392_v60 = vmul.f32 %v4386_v1, %v8878_v19 }
0x176b   :  { %v2603_v35 = vsel %vm631_vm2, %v8913_v0, 0.0  ;;  %v8936_v43 = vadd.f32 %v2583_v38, %v8516_v3  ;;  %v2615_v3 = vmul.f32 0.03125, %v2599_v61  ;;  %v7028_v61 = vld [vmem:[%s9372_s3] sm:$0xff]  }
0x176c   :  { %v4489_v62 = vsel %vm631_vm2, %v4481_v18, 0.0  ;;  %v4482_v57 = vadd.f32 %v4462_v32, %v8755_v33  ;;  %v4393_v63 = vmul.f32 %v4387_v48, %v8880_v17  ;;  %6692 = vmatpush3.bf16.msra.mxu1 %v7028_v61 }
0x176d   :  { %4490 = vadd.xlane.f32.xlu1 %v4489_v62  ;;  %v2609_v41 = vsel %vm631_vm2, %v8936_v43, 0.0  ;;  %v8947_v28 = vsub.f32 %v8868_v59, %v2615_v3  ;;  %6693 = vmatprep.subr.bf16.mxu1 %v7679_v6 }
0x176e   :  { %v4492_v31 = vsel %vm631_vm2, %v4482_v57, 0.0  ;;  %v4396_v5 = vpack.c.bf16 %v4393_v63, %v4392_v60 }
0x176f   :  { %4493 = vadd.xlane.f32.xlu0 %v4492_v31  ;;  %v2627_v58 = vmul.f32 %v8947_v28, %v8947_v28 }
0x1770   :  { %6688 = vmatmul.mubr.msk.bf16.gmra.mrb[144].mxu0 %vm631_vm2, %v4396_v5 }
0x1771   :  { %2604 = vadd.xlane.f32.xlu1 %v2603_v35  ;;  %v4466_v33 = vpop.f32.mrb[140].mxu0  ;;  %6711 = vmatprep.mubr.msk.bf16.mxu0 %vm7680_vm0, %v7679_v6 }
0x1772   :  { %v4467_v19 = vadd.f32 %v8899_v20, %v4466_v33  ;;  %v6685_v17 = vpop.f32.mrb[141].mxu0 }
0x1773   :  { %2607 = vadd.xlane.f32.xlu0 %v2606_v34  ;;  %v4469_v13 = vpop.f32.mrb[142].mxu0 }
0x1774   :  { %v4470_v42 = vadd.f32 %v8899_v20, %v4469_v13  ;;  %v6686_v7 = vpop.f32.mrb[143].mxu0  ;;  %v4483_v9 = vadd.f32 %v4467_v19, %v8770_v12  ;;  %v2612_v12 = vsel %vm631_vm2, %v8940_v27, 0.0 }
0x1776   :  { %v4495_v10 = vsel %vm631_vm2, %v4483_v9, 0.0  ;;  %v4484_v39 = vadd.f32 %v4470_v42, %v8768_v21  ;;  %v2602_v21 = vpop.xlane.xlu0 %2601 }
0x1777   :  { %4496 = vadd.xlane.f32.xlu1 %v4495_v10  ;;  %v2616_v52 = vmul.f32 0.03125, %v2602_v21  ;;  %v7029_v21 = vld [vmem:[%s9371_s11 + $0x8] sm:$0xff]  }
0x1778   :  { %v4498_v51 = vsel %vm631_vm2, %v4484_v39, 0.0 }
0x1779   :  { %4499 = vadd.xlane.f32.xlu0 %v4498_v51  ;;  %v8951_v56 = vsub.f32 %v8872_v22, %v2616_v52 }
0x177b   :  { %2610 = vadd.xlane.f32.xlu1 %v2609_v41  ;;  %v2628_v47 = vmul.f32 %v8951_v56, %v8951_v56 }
0x177d   :  { %2613 = vadd.xlane.f32.xlu0 %v2612_v12  ;;  %v7027_v12 = vld [vmem:[%s9371_s11] sm:$0xff]  }
0x177e   :  { %6708 = vmatpush3.bf16.msra.mxu0 %v7027_v12 }
0x177f   :  { %6709 = vmatprep.subr.bf16.mxu0 %v7679_v6 }
0x1782   :  { %6710 = vmatpush3.bf16.msra.mxu0 %v7029_v21 }
0x1783   :  { %6739 = vmatprep.subr.bf16.mxu0 %v7679_v6 }
0x17fa   :  { %v4491_v11 = vpop.xlane.xlu1 %4490 }
0x17fb   :  { %v4507_v26 = vmul.f32 0.03125, %v4491_v11  ;;  %v7030_v11 = vld [vmem:[%s9372_s3 + $0x8] sm:$0xff]  }
0x17fc   :  { %v4494_v44 = vpop.xlane.xlu0 %4493  ;;  %6694 = vmatpush3.bf16.msra.mxu1 %v7030_v11 }
0x17fd   :  { %v4508_v40 = vmul.f32 0.03125, %v4494_v44  ;;  %v8959_v2 = vsub.f32 %v4481_v18, %v4507_v26  ;;  %v2633_v18 = vsel %vm631_vm2, %v2627_v58, 0.0  ;;  %6723 = vmatprep.subr.bf16.mxu1 %v7679_v6 }
0x17fe   :  { %v2605_v4 = vpop.xlane.xlu1 %2604 }
0x17ff   :  { %v2617_v30 = vmul.f32 0.03125, %v2605_v4 }
0x1800   :  { %v2608_v25 = vpop.xlane.xlu0 %2607 }
0x1801   :  { %v2618_v46 = vmul.f32 0.03125, %v2608_v25  ;;  %v8973_v32 = vsub.f32 %v8913_v0, %v2617_v30 }
0x1803   :  { %v8979_v60 = vsub.f32 %v8917_v14, %v2618_v46  ;;  %v2629_v33 = vmul.f32 %v8973_v32, %v8973_v32 }
0x1804   :  { %v4497_v59 = vpop.xlane.xlu1 %4496 }
0x1805   :  { %v4509_v50 = vmul.f32 0.03125, %v4497_v59  ;;  %v2630_v17 = vmul.f32 %v8979_v60, %v8979_v60  ;;  %v2639_v13 = vsel %vm631_vm2, %v2629_v33, 0.0 }
0x1806   :  { %v4500_v37 = vpop.xlane.xlu0 %4499 }
0x1807   :  { %v4510_v62 = vmul.f32 0.03125, %v4500_v37  ;;  %v8984_v0 = vsub.f32 %v4483_v9, %v4509_v50  ;;  %v2642_v7 = vsel %vm631_vm2, %v2630_v17, 0.0 }
0x1808   :  { %v2611_v48 = vpop.xlane.xlu1 %2610 }
0x1809   :  { %v2619_v5 = vmul.f32 0.03125, %v2611_v48  ;;  %v8989_v38 = vsub.f32 %v4484_v39, %v4510_v62  ;;  %v4521_v15 = vmul.f32 %v8984_v0, %v8984_v0 }
0x180a   :  { %v2614_v31 = vpop.xlane.xlu0 %2613 }
0x180b   :  { %v2620_v14 = vmul.f32 0.03125, %v2614_v31  ;;  %v8995_v34 = vsub.f32 %v8936_v43, %v2619_v5  ;;  %v4522_v9 = vmul.f32 %v8989_v38, %v8989_v38  ;;  %v4531_v10 = vsel %vm631_vm2, %v4521_v15, 0.0 }
0x180d   :  { %v9001_v42 = vsub.f32 %v8940_v27, %v2620_v14  ;;  %v2631_v39 = vmul.f32 %v8995_v34, %v8995_v34  ;;  %v4534_v43 = vsel %vm631_vm2, %v4522_v9, 0.0  ;;  %v5827_v9 = vld [vmem:[#allocation25] ss:$0 sm:$0xff] }
0x180f   :  { %v2632_v51 = vmul.f32 %v9001_v42, %v9001_v42  ;;  %v2645_v27 = vsel %vm631_vm2, %v2631_v39, 0.0 }
0x1811   :  { %v2648_v41 = vsel %vm631_vm2, %v2632_v51, 0.0 }
0x1843   :  { %v4474_v29 = vpop.f32.mrb[144].mxu0 }
0x1844   :  { %v4475_v23 = vadd.f32 %v8899_v20, %v4474_v29  ;;  %v6689_v55 = vpop.f32.mrb[145].mxu0 }
0x1845   :  { %v4477_v45 = vpop.f32.mrb[146].mxu0 }
0x1846   :  { %v4478_v36 = vadd.f32 %v8899_v20, %v4477_v45  ;;  %v6690_v53 = vpop.f32.mrb[147].mxu0  ;;  %v8955_v8 = vadd.f32 %v4475_v23, %v8816_v16  ;;  %v8966_v20 = vsub.f32 %v4482_v57, %v4508_v40  ;;  %v2636_v57 = vsel %vm631_vm2, %v2628_v47, 0.0 }
0x1848   :  { %v4501_v1 = vsel %vm631_vm2, %v8955_v8, 0.0  ;;  %v8964_v22 = vadd.f32 %v4478_v36, %v8818_v24  ;;  %v4519_v24 = vmul.f32 %v8959_v2, %v8959_v2  ;;  %v4520_v63 = vmul.f32 %v8966_v20, %v8966_v20 }
0x1849   :  { %4502 = vadd.xlane.f32.xlu1 %v4501_v1 }
0x184a   :  { %v4504_v16 = vsel %vm631_vm2, %v8964_v22, 0.0  ;;  %v4525_v35 = vsel %vm631_vm2, %v4519_v24, 0.0  ;;  %v4528_v19 = vsel %vm631_vm2, %v4520_v63, 0.0 }
0x184b   :  { %4505 = vadd.xlane.f32.xlu0 %v4504_v16 }
0x184d   :  { %2634 = vadd.xlane.f32.xlu1 %v2633_v18 }
0x184f   :  { %2637 = vadd.xlane.f32.xlu0 %v2636_v57 }
0x1851   :  { %4526 = vadd.xlane.f32.xlu1 %v4525_v35  ;;  %v9034_v35 = vld [vmem:[#allocation23] ss:$0 sm:$0xff] }
0x1853   :  { %4529 = vadd.xlane.f32.xlu0 %v4528_v19 }
0x1855   :  { %2640 = vadd.xlane.f32.xlu1 %v2639_v13 }
0x1857   :  { %2643 = vadd.xlane.f32.xlu0 %v2642_v7 }
0x1859   :  { %4532 = vadd.xlane.f32.xlu1 %v4531_v10 }
0x185b   :  { %4535 = vadd.xlane.f32.xlu0 %v4534_v43 }
0x185d   :  { %2646 = vadd.xlane.f32.xlu1 %v2645_v27  ;;  %v9039_v27 = vld [vmem:[#allocation28] ss:$0 sm:$0xff] }
0x185f   :  { %2649 = vadd.xlane.f32.xlu0 %v2648_v41 }
0x18d6   :  { %v4503_v3 = vpop.xlane.xlu1 %4502 }
0x18d7   :  { %v4511_v44 = vmul.f32 0.03125, %v4503_v3 }
0x18d8   :  { %v4506_v52 = vpop.xlane.xlu0 %4505 }
0x18d9   :  { %v9023_v4 = vsub.f32 %v8955_v8, %v4511_v44  ;;  %v4512_v29 = vmul.f32 0.03125, %v4506_v52 }
0x18da   :  { %v2635_v26 = vpop.xlane.xlu1 %2634 }
0x18db   :  { %v9026_v23 = vsub.f32 %v8964_v22, %v4512_v29  ;;  %v2651_v55 = vmul.f32 0.03125, %v2635_v26  ;;  %v4523_v25 = vmul.f32 %v9023_v4, %v9023_v4  ;;  %v9045_v26 = vld [vmem:[#allocation29] ss:$0 sm:$0xff] }
0x18dc   :  { %v2638_v45 = vpop.xlane.xlu0 %2637 }
0x18dd   :  { %v2657_v40 = vadd.f32 1e-05, %v2651_v55  ;;  %v2652_v36 = vmul.f32 0.03125, %v2638_v45  ;;  %v4537_v53 = vsel %vm631_vm2, %v4523_v25, 0.0  ;;  %v4524_v59 = vmul.f32 %v9026_v23, %v9026_v23 }
0x18de   :  { %4538 = vadd.xlane.f32.xlu1 %v4537_v53  ;;  %v4527_v8 = vpop.xlane.xlu1 %4526 }
0x18df   :  { %7107 = vrsqrt.f32 %v2657_v40  ;;  %v2658_v58 = vadd.f32 1e-05, %v2652_v36  ;;  %v4543_v30 = vmul.f32 0.03125, %v4527_v8  ;;  %v4540_v1 = vsel %vm631_vm2, %v4524_v59, 0.0 }
0x18e0   :  { %4541 = vadd.xlane.f32.xlu0 %v4540_v1  ;;  %v4530_v22 = vpop.xlane.xlu0 %4529 }
0x18e1   :  { %7109 = vrsqrt.f32 %v2658_v58  ;;  %v4549_v37 = vadd.f32 1e-05, %v4543_v30  ;;  %v4544_v46 = vmul.f32 0.03125, %v4530_v22 }
0x18e2   :  { %v2641_v16 = vpop.xlane.xlu1 %2640 }
0x18e3   :  { %7111 = vrsqrt.f32 %v4549_v37  ;;  %v4550_v47 = vadd.f32 1e-05, %v4544_v46  ;;  %v2653_v50 = vmul.f32 0.03125, %v2641_v16 }
0x18e4   :  { %v2644_v18 = vpop.xlane.xlu0 %2643 }
0x18e5   :  { %7113 = vrsqrt.f32 %v4550_v47  ;;  %v2659_v24 = vadd.f32 1e-05, %v2653_v50  ;;  %v2654_v48 = vmul.f32 0.03125, %v2644_v18 }
0x18e6   :  { %v4533_v62 = vpop.xlane.xlu1 %4532 }
0x18e7   :  { %7115 = vrsqrt.f32 %v2659_v24  ;;  %v2660_v57 = vadd.f32 1e-05, %v2654_v48  ;;  %v4545_v63 = vmul.f32 0.03125, %v4533_v62 }
0x18e8   :  { %v4536_v31 = vpop.xlane.xlu0 %4535 }
0x18e9   :  { %v7108_v5 = vpop.eup %7107  ;;  %7117 = vrsqrt.f32 %v2660_v57  ;;  %v4551_v33 = vadd.f32 1e-05, %v4545_v63  ;;  %v4546_v14 = vmul.f32 0.03125, %v4536_v31  ;;  %v7031_v57 = vld [vmem:[%s9373_s15] sm:$0xff]   ;;  %v7032_v63 = vld [vmem:[%s9373_s15 + $0x8] sm:$0xff]  }
0x18ea   :  { %v2669_v19 = vmul.f32 %v7108_v5, %v8947_v28  ;;  %v2647_v17 = vpop.xlane.xlu1 %2646 }
0x18eb   :  { %v7110_v13 = vpop.eup %7109  ;;  %7119 = vrsqrt.f32 %v4551_v33  ;;  %v4552_v15 = vadd.f32 1e-05, %v4546_v14  ;;  %v2655_v7 = vmul.f32 0.03125, %v2647_v17 }
0x18ec   :  { %v2681_v10 = vmul.f32 %v9034_v35, %v2669_v19  ;;  %v2670_v39 = vmul.f32 %v7110_v13, %v8951_v56  ;;  %v2650_v43 = vpop.xlane.xlu0 %2649 }
0x18ed   :  { %v7112_v51 = vpop.eup %7111  ;;  %7121 = vrsqrt.f32 %v4552_v15  ;;  %v2661_v41 = vadd.f32 1e-05, %v2655_v7  ;;  %v2656_v12 = vmul.f32 0.03125, %v2650_v43 }
0x18ee   :  { %v2682_v61 = vmul.f32 %v9034_v35, %v2670_v39  ;;  %v4561_v28 = vmul.f32 %v7112_v51, %v8959_v2  ;;  %v2693_v3 = vadd.f32 %v5827_v9, %v2681_v10 }
0x18ef   :  { %v7114_v21 = vpop.eup %7113  ;;  %7123 = vrsqrt.f32 %v2661_v41  ;;  %v2662_v11 = vadd.f32 1e-05, %v2656_v12 }
0x18f0   :  { %v2694_v44 = vadd.f32 %v5827_v9, %v2682_v61  ;;  %v4573_v52 = vmul.f32 %v9039_v27, %v4561_v28  ;;  %v4562_v56 = vmul.f32 %v7114_v21, %v8966_v20 }
0x18f1   :  { %v7116_v29 = vpop.eup %7115  ;;  %7125 = vrsqrt.f32 %v2662_v11 }
0x18f2   :  { %v4574_v55 = vmul.f32 %v9039_v27, %v4562_v56  ;;  %v2671_v25 = vmul.f32 %v7116_v29, %v8973_v32  ;;  %v9049_v45 = vpack.c.bf16 %v2694_v44, %v2693_v3  ;;  %v9052_v40 = vadd.f32 %v9045_v26, %v4573_v52 }
0x18f3   :  { %v7118_v2 = vpop.eup %7117 }
0x18f4   :  { %v9055_v36 = vadd.f32 %v9045_v26, %v4574_v55  ;;  %v2672_v53 = vmul.f32 %v7118_v2, %v8979_v60  ;;  %6712 = vmatmul.mubr.msk.bf16.vlgmr.msra.gmra.mrb[148].mxu0 %vm631_vm2, %v9049_v45  ;;  %v2683_v20 = vmul.f32 %v9034_v35, %v2671_v25 }
0x18f5   :  { %v7120_v59 = vpop.eup %7119  ;;  %6715 = vmatprep.mubr.msk.bf16.mxu0 %vm7680_vm0, %v7679_v6  ;;  %6740 = vmatpush3.bf16.msra.mxu0 %v8794_v54 }
0x18f6   :  { %v4563_v32 = vmul.f32 %v7120_v59, %v8984_v0  ;;  %v4608_v8 = vpack.c.bf16 %v9055_v36, %v9052_v40  ;;  %v2684_v58 = vmul.f32 %v9034_v35, %v2672_v53  ;;  %6741 = vmatprep.subr.bf16.mxu0 %v7679_v6  ;;  %v2695_v1 = vadd.f32 %v5827_v9, %v2683_v20 }
0x18f7   :  { %v7122_v60 = vpop.eup %7121 }
0x18f8   :  { %v4564_v30 = vmul.f32 %v7122_v60, %v8989_v38  ;;  %6696 = vmatmul.mubr.msk.bf16.vlgmr.msra.gmra.mrb[144].mxu1 %vm631_vm2, %v4608_v8  ;;  %v2696_v22 = vadd.f32 %v5827_v9, %v2684_v58  ;;  %v4575_v37 = vmul.f32 %v9039_v27, %v4563_v32 }
0x18f9   :  { %v7124_v46 = vpop.eup %7123  ;;  %6699 = vmatprep.mubr.msk.bf16.mxu1 %vm7680_vm0, %v7679_v6  ;;  %6742 = vmatpush3.bf16.msra.mxu0 %v8799_v49 }
0x18fa   :  { %v2673_v54 = vmul.f32 %v7124_v46, %v8995_v34  ;;  %v4612_v0 = vpack.c.bf16 %v2696_v22, %v2695_v1  ;;  %v4576_v16 = vmul.f32 %v9039_v27, %v4564_v30  ;;  %6771 = vmatprep.subr.bf16.mxu0 %v7679_v6  ;;  %v9081_v50 = vadd.f32 %v9045_v26, %v4575_v37 }
0x18fb   :  { %v7126_v38 = vpop.eup %7125  ;;  %6724 = vmatpush3.bf16.msra.mxu1 %v7031_v57 }
0x18fc   :  { %v2674_v47 = vmul.f32 %v7126_v38, %v9001_v42  ;;  %6716 = vmatmul.mubr.msk.bf16.gmra.mrb[152].mxu0 %vm631_vm2, %v4612_v0  ;;  %v9084_v18 = vadd.f32 %v9045_v26, %v4576_v16  ;;  %v2685_v49 = vmul.f32 %v9034_v35, %v2673_v54  ;;  %6725 = vmatprep.subr.bf16.mxu1 %v7679_v6 }
0x18fd   :  { %6719 = vmatprep.mubr.msk.bf16.mxu0 %vm7680_vm0, %v7679_v6 }
0x18fe   :  { %v4609_v34 = vpack.c.bf16 %v9084_v18, %v9081_v50  ;;  %v2686_v24 = vmul.f32 %v9034_v35, %v2674_v47  ;;  %v2697_v42 = vadd.f32 %v5827_v9, %v2685_v49 }
0x18ff   :  { %6726 = vmatpush3.bf16.msra.mxu1 %v7032_v63 }
0x1900   :  { %6700 = vmatmul.mubr.msk.bf16.gmra.mrb[148].mxu1 %vm631_vm2, %v4609_v34  ;;  %v2698_v48 = vadd.f32 %v5827_v9, %v2686_v24  ;;  %6755 = vmatprep.subr.bf16.mxu1 %v7679_v6 }
0x1901   :  { %6703 = vmatprep.mubr.msk.bf16.mxu1 %vm7680_vm0, %v7679_v6 }
0x1902   :  { %v4613_v62 = vpack.c.bf16 %v2698_v48, %v2697_v42 }
0x1904   :  { %6720 = vmatmul.mubr.msk.bf16.gmra.mrb[156].mxu0 %vm631_vm2, %v4613_v62 }
0x1905   :  { %6743 = vmatprep.mubr.msk.bf16.mxu0 %vm7680_vm0, %v7679_v6 }
0x196b   :  { %v4539_v31 = vpop.xlane.xlu1 %4538 }
0x196c   :  { %v4547_v5 = vmul.f32 0.03125, %v4539_v31 }
0x196d   :  { %v4542_v35 = vpop.xlane.xlu0 %4541 }
0x196e   :  { %v4553_v33 = vadd.f32 1e-05, %v4547_v5  ;;  %v4548_v14 = vmul.f32 0.03125, %v4542_v35 }
0x1970   :  { %7127 = vrsqrt.f32 %v4553_v33  ;;  %v4554_v19 = vadd.f32 1e-05, %v4548_v14 }
0x1972   :  { %7129 = vrsqrt.f32 %v4554_v19 }
0x197a   :  { %v7128_v17 = vpop.eup %7127 }
0x197b   :  { %v4565_v13 = vmul.f32 %v7128_v17, %v9023_v4 }
0x197c   :  { %v7130_v15 = vpop.eup %7129 }
0x197d   :  { %v4566_v7 = vmul.f32 %v7130_v15, %v9026_v23  ;;  %v4577_v9 = vmul.f32 %v9039_v27, %v4565_v13 }
0x197f   :  { %v4578_v10 = vmul.f32 %v9039_v27, %v4566_v7  ;;  %v9107_v39 = vadd.f32 %v9045_v26, %v4577_v9 }
0x1981   :  { %v9110_v43 = vadd.f32 %v9045_v26, %v4578_v10 }
0x1983   :  { %v4610_v51 = vpack.c.bf16 %v9110_v43, %v9107_v39 }
0x1985   :  { %6704 = vmatmul.mubr.msk.bf16.gmra.mrb[152].mxu1 %vm631_vm2, %v4610_v51 }
0x1986   :  { %6727 = vmatprep.mubr.msk.bf16.mxu1 %vm7680_vm0, %v7679_v6 }
0x198d   :  { %6728 = vmatmul.mubr.msk.bf16.vlgmr.msra.gmra.mrb[156].mxu1 %vm631_vm2, %v9049_v45 }
0x198e   :  { %6731 = vmatprep.mubr.msk.bf16.mxu1 %vm7680_vm0, %v7679_v6 }
0x1995   :  { %6732 = vmatmul.mubr.msk.bf16.gmra.mrb[160].mxu1 %vm631_vm2, %v4612_v0 }
0x1996   :  { %6735 = vmatprep.mubr.msk.bf16.mxu1 %vm7680_vm0, %v7679_v6 }
0x199d   :  { %6736 = vmatmul.mubr.msk.bf16.gmra.mrb[164].mxu1 %vm631_vm2, %v4613_v62 }
0x199e   :  { %6759 = vmatprep.mubr.msk.bf16.mxu1 %vm7680_vm0, %v7679_v6 }
0x19c7   :  { %v4747_v4 = vpop.f32.mrb[148].mxu0 }
0x19c8   :  { %v6713_v23 = vpop.f32.mrb[149].mxu0 }
0x19c9   :  { %v4750_v27 = vpop.f32.mrb[150].mxu0 }
0x19ca   :  { %v6714_v41 = vpop.f32.mrb[151].mxu0 }
0x19cb   :  { %v4669_v12 = vpop.f32.mrb[144].mxu1 }
0x19cc   :  { %v4839_v61 = vmul.f32 %v4747_v4, %v4669_v12  ;;  %v6697_v28 = vpop.f32.mrb[145].mxu1 }
0x19cd   :  { %v4672_v21 = vpop.f32.mrb[146].mxu1 }
0x19ce   :  { %v4845_v11 = vmul.f32 0.17677669, %v4839_v61  ;;  %v4840_v3 = vmul.f32 %v4750_v27, %v4672_v21  ;;  %v6698_v44 = vpop.f32.mrb[147].mxu1 }
0x19cf   :  { %v4755_v52 = vpop.f32.mrb[152].mxu0 }
0x19d0   :  { %v4846_v56 = vmul.f32 0.17677669, %v4840_v3  ;;  %v6717_v29 = vpop.f32.mrb[153].mxu0  ;;  %v4851_v26 = vsel %vm631_vm2, %v4845_v11, -inf }
0x19d1   :  { %v4758_v55 = vpop.f32.mrb[154].mxu0  ;;  %4852 = vmax.xlane.f32.xlu1 %v4851_v26 }
0x19d2   :  { %v6718_v25 = vpop.f32.mrb[155].mxu0  ;;  %v4854_v45 = vsel %vm631_vm2, %v4846_v56, -inf }
0x19d3   :  { %4855 = vmax.xlane.f32.xlu0 %v4854_v45  ;;  %v4677_v2 = vpop.f32.mrb[148].mxu1  ;;  %v7034_v25 = vld [vmem:[#allocation31 + $0x8] sm:$0xff]  }
0x19d4   :  { %v4841_v53 = vmul.f32 %v4755_v52, %v4677_v2  ;;  %v6701_v20 = vpop.f32.mrb[149].mxu1 }
0x19d5   :  { %v4680_v59 = vpop.f32.mrb[150].mxu1 }
0x19d6   :  { %v4847_v32 = vmul.f32 0.17677669, %v4841_v53  ;;  %v4842_v8 = vmul.f32 %v4758_v55, %v4680_v59  ;;  %v6702_v58 = vpop.f32.mrb[151].mxu1  ;;  %v7033_v55 = vld [vmem:[#allocation31] sm:$0xff]  }
0x19d7   :  { %v4763_v60 = vpop.f32.mrb[156].mxu0  ;;  %6756 = vmatpush3.bf16.msra.mxu1 %v7033_v55 }
0x19d8   :  { %v4848_v30 = vmul.f32 0.17677669, %v4842_v8  ;;  %v6721_v1 = vpop.f32.mrb[157].mxu0  ;;  %v4857_v22 = vsel %vm631_vm2, %v4847_v32, -inf  ;;  %6757 = vmatprep.subr.bf16.mxu1 %v7679_v6 }
0x19d9   :  { %v4766_v37 = vpop.f32.mrb[158].mxu0  ;;  %4858 = vmax.xlane.f32.xlu1 %v4857_v22 }
0x19da   :  { %v6722_v46 = vpop.f32.mrb[159].mxu0  ;;  %v4860_v54 = vsel %vm631_vm2, %v4848_v30, -inf }
0x19db   :  { %4861 = vmax.xlane.f32.xlu0 %v4860_v54  ;;  %6758 = vmatpush3.bf16.msra.mxu1 %v7034_v25 }
0x19dc   :  { %6787 = vmatprep.subr.bf16.mxu1 %v7679_v6 }
0x1a58   :  { %v4685_v0 = vpop.f32.mrb[152].mxu1 }
0x1a59   :  { %v4843_v16 = vmul.f32 %v4763_v60, %v4685_v0  ;;  %v6705_v38 = vpop.f32.mrb[153].mxu1 }
0x1a5a   :  { %v4688_v47 = vpop.f32.mrb[154].mxu1 }
0x1a5b   :  { %v4849_v49 = vmul.f32 0.17677669, %v4843_v16  ;;  %v4844_v34 = vmul.f32 %v4766_v37, %v4688_v47  ;;  %v6706_v24 = vpop.f32.mrb[155].mxu1 }
0x1a5d   :  { %v4850_v42 = vmul.f32 0.17677669, %v4844_v34  ;;  %v4863_v48 = vsel %vm631_vm2, %v4849_v49, -inf }
0x1a5e   :  { %v4853_v62 = vpop.xlane.xlu1 %4852  ;;  %4864 = vmax.xlane.f32.xlu1 %v4863_v48 }
0x1a5f   :  { %v4869_v57 = vsub.f32 %v4845_v11, %v4853_v62  ;;  %v4866_v63 = vsel %vm631_vm2, %v4850_v42, -inf }
0x1a60   :  { %v4856_v31 = vpop.xlane.xlu0 %4855  ;;  %4867 = vmax.xlane.f32.xlu0 %v4866_v63  ;;  %v9133_v5 = vpop.f32.mrb[156].mxu1 }
0x1a61   :  { %v4875_v35 = vmul.f32 1.442695, %v4869_v57  ;;  %v4870_v33 = vsub.f32 %v4846_v56, %v4856_v31  ;;  %v6729_v14 = vpop.f32.mrb[157].mxu1 }
0x1a62   :  { %v9135_v19 = vpop.f32.mrb[158].mxu1 }
0x1a63   :  { %v4877_v17 = vmul.f32 1.442695, %v4870_v33  ;;  %v6730_v13 = vpop.f32.mrb[159].mxu1  ;;  %7131 = vpow2.f32 %v4875_v35 }
0x1a65   :  { %7133 = vpow2.f32 %v4877_v17 }
0x1a66   :  { %v4859_v15 = vpop.xlane.xlu1 %4858 }
0x1a67   :  { %v4871_v7 = vsub.f32 %v4847_v32, %v4859_v15 }
0x1a68   :  { %v4862_v9 = vpop.xlane.xlu0 %4861  ;;  %v9137_v10 = vpop.f32.mrb[160].mxu1 }
0x1a69   :  { %v4879_v51 = vmul.f32 1.442695, %v4871_v7  ;;  %v4872_v4 = vsub.f32 %v4848_v30, %v4862_v9  ;;  %v6733_v23 = vpop.f32.mrb[161].mxu1 }
0x1a6a   :  { %v9139_v27 = vpop.f32.mrb[162].mxu1 }
0x1a6b   :  { %v4881_v41 = vmul.f32 1.442695, %v4872_v4  ;;  %v6734_v12 = vpop.f32.mrb[163].mxu1  ;;  %7135 = vpow2.f32 %v4879_v51 }
0x1a6d   :  { %7137 = vpow2.f32 %v4881_v41  ;;  %v7132_v61 = vpop.eup %7131 }
0x1a6f   :  { %v7134_v28 = vpop.eup %7133 }
0x1a70   :  { %v4887_v21 = vpack.c.bf16 %v7134_v28, %v7132_v61  ;;  %v9141_v11 = vpop.f32.mrb[164].mxu1 }
0x1a71   :  { %v6737_v3 = vpop.f32.mrb[165].mxu1 }
0x1a72   :  { %v9143_v44 = vpop.f32.mrb[166].mxu1  ;;  %6744 = vmatmul.mubr.msk.bf16.vlgmr.msra.gmra.mrb[160].mxu0 %vm631_vm2, %v4887_v21 }
0x1a73   :  { %v6738_v52 = vpop.f32.mrb[167].mxu1  ;;  %6747 = vmatprep.mubr.msk.bf16.mxu0 %vm7680_vm0, %v7679_v6 }
0x1a75   :  { %v7136_v56 = vpop.eup %7135 }
0x1a77   :  { %v7138_v29 = vpop.eup %7137 }
0x1a78   :  { %v4888_v26 = vpack.c.bf16 %v7138_v29, %v7136_v56 }
0x1a7a   :  { %6748 = vmatmul.mubr.msk.bf16.gmra.mrb[164].mxu0 %vm631_vm2, %v4888_v26 }
0x1a7b   :  { %6751 = vmatprep.mubr.msk.bf16.mxu0 %vm7680_vm0, %v7679_v6 }
0x1aeb   :  { %v4865_v45 = vpop.xlane.xlu1 %4864 }
0x1aec   :  { %v4873_v2 = vsub.f32 %v4849_v49, %v4865_v45 }
0x1aed   :  { %v4868_v53 = vpop.xlane.xlu0 %4867 }
0x1aee   :  { %v4883_v20 = vmul.f32 1.442695, %v4873_v2  ;;  %v4874_v59 = vsub.f32 %v4850_v42, %v4868_v53 }
0x1af0   :  { %v4885_v32 = vmul.f32 1.442695, %v4874_v59  ;;  %7139 = vpow2.f32 %v4883_v20 }
0x1af2   :  { %7141 = vpow2.f32 %v4885_v32 }
0x1afa   :  { %v7140_v8 = vpop.eup %7139 }
0x1afc   :  { %v7142_v58 = vpop.eup %7141 }
0x1afd   :  { %v4889_v60 = vpack.c.bf16 %v7142_v58, %v7140_v8 }
0x1aff   :  { %6752 = vmatmul.mubr.msk.bf16.gmra.mrb[168].mxu0 %vm631_vm2, %v4889_v60 }
0x1b00   :  { %6775 = vmatprep.mubr.msk.bf16.mxu0 %vm7680_vm0, %v7679_v6 }
0x1b45   :  { %v4933_v30 = vpop.f32.mrb[160].mxu0 }
0x1b46   :  { %7143 = vrcp.f32 %v4933_v30  ;;  %v6745_v1 = vpop.f32.mrb[161].mxu0 }
0x1b47   :  { %v4936_v22 = vpop.f32.mrb[162].mxu0 }
0x1b48   :  { %7145 = vrcp.f32 %v4936_v22  ;;  %v6746_v37 = vpop.f32.mrb[163].mxu0 }
0x1b4d   :  { %v4941_v46 = vpop.f32.mrb[164].mxu0 }
0x1b4e   :  { %7147 = vrcp.f32 %v4941_v46  ;;  %v6749_v54 = vpop.f32.mrb[165].mxu0 }
0x1b4f   :  { %v4944_v0 = vpop.f32.mrb[166].mxu0 }
0x1b50   :  { %v7144_v16 = vpop.eup %7143  ;;  %7149 = vrcp.f32 %v4944_v0  ;;  %v6750_v38 = vpop.f32.mrb[167].mxu0 }
0x1b51   :  { %v4962_v47 = vmul.f32 %v7144_v16, %v7132_v61 }
0x1b52   :  { %v7146_v49 = vpop.eup %7145 }
0x1b53   :  { %v4968_v34 = vmul.f32 %v4962_v47, %v9133_v5  ;;  %v4963_v24 = vmul.f32 %v7146_v49, %v7134_v28 }
0x1b55   :  { %v4969_v42 = vmul.f32 %v4963_v24, %v9135_v19 }
0x1b57   :  { %v4974_v48 = vpack.c.bf16 %v4969_v42, %v4968_v34 }
0x1b58   :  { %v7148_v62 = vpop.eup %7147 }
0x1b59   :  { %6760 = vmatmul.mubr.msk.bf16.vlgmr.msra.gmra.mrb[168].mxu1 %vm631_vm2, %v4974_v48  ;;  %v4964_v57 = vmul.f32 %v7148_v62, %v7136_v56 }
0x1b5a   :  { %v7150_v63 = vpop.eup %7149  ;;  %6763 = vmatprep.mubr.msk.bf16.mxu1 %vm7680_vm0, %v7679_v6 }
0x1b5b   :  { %v4965_v31 = vmul.f32 %v7150_v63, %v7138_v29  ;;  %v4970_v35 = vmul.f32 %v4964_v57, %v9137_v10 }
0x1b5d   :  { %v4971_v33 = vmul.f32 %v4965_v31, %v9139_v27  ;;  %v5954_v27 = vld [vmem:[%s9374_s6] ss:$0 sm:$0xff] }
0x1b5f   :  { %v4975_v14 = vpack.c.bf16 %v4971_v33, %v4970_v35 }
0x1b61   :  { %6764 = vmatmul.mubr.msk.bf16.gmra.mrb[172].mxu1 %vm631_vm2, %v4975_v14  ;;  %v7035_v14 = vld [vmem:[%s9375_s16] sm:$0xff]  }
0x1b62   :  { %6767 = vmatprep.mubr.msk.bf16.mxu1 %vm7680_vm0, %v7679_v6  ;;  %6772 = vmatpush3.bf16.msra.mxu0 %v7035_v14 }
0x1b63   :  { %6773 = vmatprep.subr.bf16.mxu0 %v7679_v6 }
0x1bd2   :  { %v4949_v5 = vpop.f32.mrb[168].mxu0 }
0x1bd3   :  { %7151 = vrcp.f32 %v4949_v5  ;;  %v6753_v19 = vpop.f32.mrb[169].mxu0  ;;  %v7036_v5 = vld [vmem:[%s9375_s16 + $0x8] sm:$0xff]  }
0x1bd4   :  { %v4952_v17 = vpop.f32.mrb[170].mxu0  ;;  %6774 = vmatpush3.bf16.msra.mxu0 %v7036_v5 }
0x1bd5   :  { %7153 = vrcp.f32 %v4952_v17  ;;  %v6754_v13 = vpop.f32.mrb[171].mxu0  ;;  %6815 = vmatprep.subr.bf16.mxu0 %v7679_v6 }
0x1bdd   :  { %v7152_v15 = vpop.eup %7151 }
0x1bde   :  { %v4966_v7 = vmul.f32 %v7152_v15, %v7140_v8 }
0x1bdf   :  { %v7154_v9 = vpop.eup %7153 }
0x1be0   :  { %v4967_v51 = vmul.f32 %v7154_v9, %v7142_v58  ;;  %v4972_v10 = vmul.f32 %v4966_v7, %v9141_v11 }
0x1be2   :  { %v4973_v4 = vmul.f32 %v4967_v51, %v9143_v44 }
0x1be4   :  { %v4976_v23 = vpack.c.bf16 %v4973_v4, %v4972_v10 }
0x1be6   :  { %6768 = vmatmul.mubr.msk.bf16.gmra.mrb[176].mxu1 %vm631_vm2, %v4976_v23 }
0x1be7   :  { %6803 = vmatprep.mubr.msk.bf16.mxu1 %vm7680_vm0, %v7679_v6 }
0x1c2c   :  { %v5038_v41 = vpop.f32.mrb[168].mxu1 }
0x1c2d   :  { %v5039_v12 = vadd.f32 %v5954_v27, %v5038_v41  ;;  %v6761_v61 = vpop.f32.mrb[169].mxu1 }
0x1c2e   :  { %v5041_v28 = vpop.f32.mrb[170].mxu1 }
0x1c2f   :  { %v5042_v21 = vadd.f32 %v5954_v27, %v5041_v28  ;;  %v6762_v3 = vpop.f32.mrb[171].mxu1  ;;  %v5061_v52 = vadd.f32 %v5039_v12, %v9052_v40 }
0x1c31   :  { %v5069_v56 = vsel %vm631_vm2, %v5061_v52, 0.0  ;;  %v5062_v11 = vadd.f32 %v5042_v21, %v9055_v36 }
0x1c32   :  { %5070 = vadd.xlane.f32.xlu1 %v5069_v56 }
0x1c33   :  { %v5072_v44 = vsel %vm631_vm2, %v5062_v11, 0.0 }
0x1c34   :  { %5073 = vadd.xlane.f32.xlu0 %v5072_v44  ;;  %v5046_v29 = vpop.f32.mrb[172].mxu1 }
0x1c35   :  { %v5047_v26 = vadd.f32 %v5954_v27, %v5046_v29  ;;  %v6765_v55 = vpop.f32.mrb[173].mxu1 }
0x1c36   :  { %v5049_v25 = vpop.f32.mrb[174].mxu1  ;;  %v5960_v55 = vld [vmem:[%s9376_s18] ss:$0 sm:$0xff] }
0x1c37   :  { %v5050_v45 = vadd.f32 %v5954_v27, %v5049_v25  ;;  %v6766_v2 = vpop.f32.mrb[175].mxu1  ;;  %v5063_v53 = vadd.f32 %v5047_v26, %v9081_v50 }
0x1c39   :  { %v5075_v20 = vsel %vm631_vm2, %v5063_v53, 0.0  ;;  %v5064_v40 = vadd.f32 %v5050_v45, %v9084_v18 }
0x1c3a   :  { %5076 = vadd.xlane.f32.xlu1 %v5075_v20  ;;  %v5961_v20 = vld [vmem:[%s9377_s30] ss:$0 sm:$0xff] }
0x1c3b   :  { %v5078_v59 = vsel %vm631_vm2, %v5064_v40, 0.0 }
0x1c3c   :  { %5079 = vadd.xlane.f32.xlu0 %v5078_v59 }
0x1cb9   :  { %v5054_v36 = vpop.f32.mrb[176].mxu1 }
0x1cba   :  { %v5055_v32 = vadd.f32 %v5954_v27, %v5054_v36  ;;  %v6769_v8 = vpop.f32.mrb[177].mxu1 }
0x1cbb   :  { %v5057_v58 = vpop.f32.mrb[178].mxu1 }
0x1cbc   :  { %v5058_v60 = vadd.f32 %v5954_v27, %v5057_v58  ;;  %v6770_v30 = vpop.f32.mrb[179].mxu1  ;;  %v5065_v1 = vadd.f32 %v5055_v32, %v9107_v39 }
0x1cbe   :  { %v5081_v22 = vsel %vm631_vm2, %v5065_v1, 0.0  ;;  %v5066_v50 = vadd.f32 %v5058_v60, %v9110_v43 }
0x1cbf   :  { %v5071_v37 = vpop.xlane.xlu1 %5070  ;;  %5082 = vadd.xlane.f32.xlu1 %v5081_v22 }
0x1cc0   :  { %v5087_v46 = vmul.f32 0.03125, %v5071_v37  ;;  %v5084_v18 = vsel %vm631_vm2, %v5066_v50, 0.0 }
0x1cc1   :  { %v5074_v54 = vpop.xlane.xlu0 %5073  ;;  %5085 = vadd.xlane.f32.xlu0 %v5084_v18  ;;  %v7037_v18 = vld [vmem:[%s9378_s0] sm:$0xff]  }
0x1cc2   :  { %v5093_v0 = vsub.f32 %v5061_v52, %v5087_v46  ;;  %v5088_v16 = vmul.f32 0.03125, %v5074_v54  ;;  %6788 = vmatpush3.bf16.msra.mxu1 %v7037_v18  ;;  %v7038_v54 = vld [vmem:[%s9378_s0 + $0x8] sm:$0xff]  }
0x1cc3   :  { %6789 = vmatprep.subr.bf16.mxu1 %v7679_v6 }
0x1cc4   :  { %v5094_v38 = vsub.f32 %v5062_v11, %v5088_v16  ;;  %v5099_v47 = vmul.f32 %v5093_v0, %v5093_v0  ;;  %v7040_v16 = vld [vmem:[%s9378_s0 + $0x18] sm:$0xff]  }
0x1cc6   :  { %v5105_v49 = vsel %vm631_vm2, %v5099_v47, 0.0  ;;  %v5100_v34 = vmul.f32 %v5094_v38, %v5094_v38  ;;  %6790 = vmatpush3.bf16.msra.mxu1 %v7038_v54  ;;  %v7042_v47 = vld [vmem:[%s9378_s0 + $0x28] sm:$0xff]  }
0x1cc7   :  { %v5077_v39 = vpop.xlane.xlu1 %5076  ;;  %5106 = vadd.xlane.f32.xlu1 %v5105_v49  ;;  %6791 = vmatprep.subr.bf16.mxu1 %v7679_v6  ;;  %v7043_v49 = vld [vmem:[%s9378_s0 + $0x30] sm:$0xff]  }
0x1cc8   :  { %v5089_v24 = vmul.f32 0.03125, %v5077_v39  ;;  %v5108_v43 = vsel %vm631_vm2, %v5100_v34, 0.0  ;;  %v7044_v34 = vld [vmem:[%s9378_s0 + $0x38] sm:$0xff]  }
0x1cc9   :  { %v5080_v42 = vpop.xlane.xlu0 %5079  ;;  %5109 = vadd.xlane.f32.xlu0 %v5108_v43 }
0x1cca   :  { %v5095_v48 = vsub.f32 %v5063_v53, %v5089_v24  ;;  %v5090_v62 = vmul.f32 0.03125, %v5080_v42 }
0x1ccc   :  { %v5096_v57 = vsub.f32 %v5064_v40, %v5090_v62  ;;  %v5101_v63 = vmul.f32 %v5095_v48, %v5095_v48 }
0x1cce   :  { %v5111_v31 = vsel %vm631_vm2, %v5101_v63, 0.0  ;;  %v5102_v35 = vmul.f32 %v5096_v57, %v5096_v57 }
0x1ccf   :  { %5112 = vadd.xlane.f32.xlu1 %v5111_v31 }
0x1cd0   :  { %v5114_v33 = vsel %vm631_vm2, %v5102_v35, 0.0 }
0x1cd1   :  { %5115 = vadd.xlane.f32.xlu0 %v5114_v33 }
0x1d4c   :  { %v5083_v19 = vpop.xlane.xlu1 %5082 }
0x1d4d   :  { %v5091_v17 = vmul.f32 0.03125, %v5083_v19 }
0x1d4e   :  { %v5086_v13 = vpop.xlane.xlu0 %5085 }
0x1d4f   :  { %v9192_v15 = vsub.f32 %v5065_v1, %v5091_v17  ;;  %v5092_v7 = vmul.f32 0.03125, %v5086_v13  ;;  %v5962_v13 = vld [vmem:[%s9379_s24] ss:$0 sm:$0xff] }
0x1d51   :  { %v9194_v9 = vsub.f32 %v5066_v50, %v5092_v7  ;;  %v5103_v51 = vmul.f32 %v9192_v15, %v9192_v15 }
0x1d53   :  { %v5117_v10 = vsel %vm631_vm2, %v5103_v51, 0.0  ;;  %v5104_v4 = vmul.f32 %v9194_v9, %v9194_v9 }
0x1d54   :  { %5118 = vadd.xlane.f32.xlu1 %v5117_v10  ;;  %v5107_v23 = vpop.xlane.xlu1 %5106 }
0x1d55   :  { %v5123_v27 = vmul.f32 0.03125, %v5107_v23  ;;  %v5120_v41 = vsel %vm631_vm2, %v5104_v4, 0.0 }
0x1d56   :  { %5121 = vadd.xlane.f32.xlu0 %v5120_v41  ;;  %v5110_v12 = vpop.xlane.xlu0 %5109 }
0x1d57   :  { %v5129_v61 = vadd.f32 1e-05, %v5123_v27  ;;  %v5124_v28 = vmul.f32 0.03125, %v5110_v12 }
0x1d59   :  { %7155 = vrsqrt.f32 %v5129_v61  ;;  %v5130_v21 = vadd.f32 1e-05, %v5124_v28 }
0x1d5b   :  { %7157 = vrsqrt.f32 %v5130_v21 }
0x1d5c   :  { %v5113_v3 = vpop.xlane.xlu1 %5112 }
0x1d5d   :  { %v5125_v52 = vmul.f32 0.03125, %v5113_v3 }
0x1d5e   :  { %v5116_v56 = vpop.xlane.xlu0 %5115 }
0x1d5f   :  { %v5131_v11 = vadd.f32 1e-05, %v5125_v52  ;;  %v5126_v44 = vmul.f32 0.03125, %v5116_v56 }
0x1d61   :  { %7159 = vrsqrt.f32 %v5131_v11  ;;  %v5132_v29 = vadd.f32 1e-05, %v5126_v44 }
0x1d63   :  { %v7156_v26 = vpop.eup %7155  ;;  %7161 = vrsqrt.f32 %v5132_v29 }
0x1d64   :  { %v5141_v25 = vmul.f32 %v7156_v26, %v5093_v0  ;;  %v7039_v0 = vld [vmem:[%s9378_s0 + $0x10] sm:$0xff]  }
0x1d65   :  { %v7158_v45 = vpop.eup %7157  ;;  %6792 = vmatpush3.bf16.msra.mxu1 %v7039_v0 }
0x1d66   :  { %v5153_v2 = vmul.f32 %v5960_v55, %v5141_v25  ;;  %v5142_v53 = vmul.f32 %v7158_v45, %v5094_v38  ;;  %6793 = vmatprep.subr.bf16.mxu1 %v7679_v6  ;;  %v7041_v38 = vld [vmem:[%s9378_s0 + $0x20] sm:$0xff]  }
0x1d68   :  { %v5154_v40 = vmul.f32 %v5960_v55, %v5142_v53  ;;  %v9204_v59 = vadd.f32 %v5961_v20, %v5153_v2 }
0x1d69   :  { %6794 = vmatpush3.bf16.msra.mxu1 %v7040_v16 }
0x1d6a   :  { %v9206_v36 = vadd.f32 %v5961_v20, %v5154_v40  ;;  %6795 = vmatprep.subr.bf16.mxu1 %v7679_v6 }
0x1d6b   :  { %v7160_v32 = vpop.eup %7159 }
0x1d6c   :  { %v5143_v8 = vmul.f32 %v7160_v32, %v5095_v48  ;;  %v5193_v58 = vpack.c.bf16 %v9206_v36, %v9204_v59  ;;  %v5968_v32 = vld [vmem:[%s9380_s26] ss:$0 sm:$0xff] }
0x1d6d   :  { %v7162_v60 = vpop.eup %7161  ;;  %6796 = vmatpush3.bf16.msra.mxu1 %v7041_v38 }
0x1d6e   :  { %v5144_v30 = vmul.f32 %v7162_v60, %v5096_v57  ;;  %6776 = vmatmul.mubr.msk.bf16.vlgmr.msra.gmra.mrb[172].mxu0 %vm631_vm2, %v5193_v58  ;;  %v5155_v1 = vmul.f32 %v5960_v55, %v5143_v8  ;;  %6797 = vmatprep.subr.bf16.mxu1 %v7679_v6 }
0x1d6f   :  { %6779 = vmatprep.mubr.msk.bf16.mxu0 %vm7680_vm0, %v7679_v6 }
0x1d70   :  { %v5156_v22 = vmul.f32 %v5960_v55, %v5144_v30  ;;  %v9213_v50 = vadd.f32 %v5961_v20, %v5155_v1 }
0x1d71   :  { %6798 = vmatpush3.bf16.msra.mxu1 %v7042_v47 }
0x1d72   :  { %v9215_v37 = vadd.f32 %v5961_v20, %v5156_v22  ;;  %6799 = vmatprep.subr.bf16.mxu1 %v7679_v6 }
0x1d74   :  { %v5194_v46 = vpack.c.bf16 %v9215_v37, %v9213_v50 }
0x1d75   :  { %6800 = vmatpush3.bf16.msra.mxu1 %v7043_v49 }
0x1d76   :  { %6780 = vmatmul.mubr.msk.bf16.gmra.mrb[176].mxu0 %vm631_vm2, %v5194_v46  ;;  %6801 = vmatprep.subr.bf16.mxu1 %v7679_v6 }
0x1d77   :  { %6783 = vmatprep.mubr.msk.bf16.mxu0 %vm7680_vm0, %v7679_v6 }
0x1d79   :  { %6802 = vmatpush3.bf16.msra.mxu1 %v7044_v34 }
0x1de1   :  { %v5119_v39 = vpop.xlane.xlu1 %5118 }
0x1de2   :  { %v5127_v24 = vmul.f32 0.03125, %v5119_v39 }
0x1de3   :  { %v5122_v43 = vpop.xlane.xlu0 %5121 }
0x1de4   :  { %v5133_v42 = vadd.f32 1e-05, %v5127_v24  ;;  %v5128_v48 = vmul.f32 0.03125, %v5122_v43 }
0x1de6   :  { %7163 = vrsqrt.f32 %v5133_v42  ;;  %v5134_v62 = vadd.f32 1e-05, %v5128_v48 }
0x1de8   :  { %7165 = vrsqrt.f32 %v5134_v62 }
0x1df0   :  { %v7164_v57 = vpop.eup %7163 }
0x1df1   :  { %v5145_v63 = vmul.f32 %v7164_v57, %v9192_v15 }
0x1df2   :  { %v7166_v31 = vpop.eup %7165 }
0x1df3   :  { %v5146_v35 = vmul.f32 %v7166_v31, %v9194_v9  ;;  %v5157_v33 = vmul.f32 %v5960_v55, %v5145_v63 }
0x1df5   :  { %v5158_v14 = vmul.f32 %v5960_v55, %v5146_v35  ;;  %v9239_v5 = vadd.f32 %v5961_v20, %v5157_v33 }
0x1df7   :  { %v9241_v19 = vadd.f32 %v5961_v20, %v5158_v14 }
0x1df9   :  { %v5195_v17 = vpack.c.bf16 %v9241_v19, %v9239_v5 }
0x1dfb   :  { %6784 = vmatmul.mubr.msk.bf16.gmra.mrb[180].mxu0 %vm631_vm2, %v5195_v17 }
0x1dfc   :  { %6819 = vmatprep.mubr.msk.bf16.mxu0 %vm7680_vm0, %v7679_v6 }
0x1e41   :  { %v5257_v7 = vpop.f32.mrb[172].mxu0 }
0x1e42   :  { %v5258_v15 = vadd.f32 %v5962_v13, %v5257_v7  ;;  %v6777_v51 = vpop.f32.mrb[173].mxu0 }
0x1e43   :  { %v5260_v10 = vpop.f32.mrb[174].mxu0 }
0x1e44   :  { %v5261_v9 = vadd.f32 %v5962_v13, %v5260_v10  ;;  %v6778_v4 = vpop.f32.mrb[175].mxu0  ;;  %v5280_v23 = vmax.f32 %v5258_v15, 0.0 }
0x1e46   :  { %v5281_v27 = vmax.f32 %v5261_v9, 0.0 }
0x1e48   :  { %v5286_v41 = vpack.c.bf16 %v5281_v27, %v5280_v23 }
0x1e49   :  { %v5265_v12 = vpop.f32.mrb[176].mxu0 }
0x1e4a   :  { %v5266_v61 = vadd.f32 %v5962_v13, %v5265_v12  ;;  %v6781_v28 = vpop.f32.mrb[177].mxu0  ;;  %6804 = vmatmul.mubr.bf16.vlgmr.msra.gmra.mrb[180].mxu1 %v5286_v41 }
0x1e4b   :  { %v5268_v21 = vpop.f32.mrb[178].mxu0  ;;  %6807 = vmatprep.mubr.msk.bf16.mxu1 %vm7680_vm0, %v7679_v6 }
0x1e4c   :  { %v5269_v3 = vadd.f32 %v5962_v13, %v5268_v21  ;;  %v6782_v52 = vpop.f32.mrb[179].mxu0  ;;  %v5282_v56 = vmax.f32 %v5266_v61, 0.0 }
0x1e4e   :  { %v5283_v11 = vmax.f32 %v5269_v3, 0.0 }
0x1e50   :  { %v5287_v44 = vpack.c.bf16 %v5283_v11, %v5282_v56  ;;  %v7045_v56 = vld [vmem:[%s7932_s13] sm:$0xff]   ;;  %v7046_v11 = vld [vmem:[%s7932_s13 + $0x8] sm:$0xff]   ;;  %s7681_s13 = smov [#allocation34]  }
0x1e51   :  { %6816 = vmatpush3.bf16.msra.mxu0 %v7045_v56  ;;  %s5613_s12 = sshll.u32 %s7681_s13, 4  ;;  %s5614_s12 = int_to_ptr.vmem [resolvable:$true] %s5613_s12 }
0x1e52   :  { %6808 = vmatmul.mubr.bf16.gmra.mrb[184].mxu1 %v5287_v44  ;;  %6817 = vmatprep.subr.bf16.mxu0 %v7679_v6  ;;  %p7564_p13 = scmp.lt.s32.totalorder %s5614_s12, %s5614_s12 }
0x1e53   :  { %6811 = vmatprep.mubr.msk.bf16.mxu1 %vm7680_vm0, %v7679_v6 }
0x1e55   :  { %6818 = vmatpush3.bf16.msra.mxu0 %v7046_v11 }
0x1ece   :  { %v5273_v29 = vpop.f32.mrb[180].mxu0 }
0x1ecf   :  { %v5274_v26 = vadd.f32 %v5962_v13, %v5273_v29  ;;  %v6785_v55 = vpop.f32.mrb[181].mxu0 }
0x1ed0   :  { %v5276_v25 = vpop.f32.mrb[182].mxu0 }
0x1ed1   :  { %v5277_v45 = vadd.f32 %v5962_v13, %v5276_v25  ;;  %v6786_v2 = vpop.f32.mrb[183].mxu0  ;;  %v5284_v53 = vmax.f32 %v5274_v26, 0.0 }
0x1ed3   :  { %v5285_v20 = vmax.f32 %v5277_v45, 0.0 }
0x1ed5   :  { %v5288_v40 = vpack.c.bf16 %v5285_v20, %v5284_v53 }
0x1ed7   :  { %6812 = vmatmul.mubr.bf16.gmra.mrb[188].mxu1 %v5288_v40 }
0x1f1d   :  { %v5377_v8 = vpop.f32.mrb[180].mxu1 }
0x1f1e   :  { %v5378_v58 = vadd.f32 %v5968_v32, %v5377_v8  ;;  %v6805_v60 = vpop.f32.mrb[181].mxu1 }
0x1f1f   :  { %v5380_v30 = vpop.f32.mrb[182].mxu1 }
0x1f20   :  { %v5381_v1 = vadd.f32 %v5968_v32, %v5380_v30  ;;  %v6806_v22 = vpop.f32.mrb[183].mxu1  ;;  %v5400_v46 = vadd.f32 %v5378_v58, %v9204_v59 }
0x1f22   :  { %v5408_v18 = vsel %vm631_vm2, %v5400_v46, 0.0  ;;  %v5401_v54 = vadd.f32 %v5381_v1, %v9206_v36 }
0x1f23   :  { %5409 = vadd.xlane.f32.xlu1 %v5408_v18 }
0x1f24   :  { %v5411_v0 = vsel %vm631_vm2, %v5401_v54, 0.0 }
0x1f25   :  { %5412 = vadd.xlane.f32.xlu0 %v5411_v0  ;;  %v5385_v16 = vpop.f32.mrb[184].mxu1 }
0x1f26   :  { %v5386_v38 = vadd.f32 %v5968_v32, %v5385_v16  ;;  %v6809_v47 = vpop.f32.mrb[185].mxu1 }
0x1f27   :  { %v5388_v49 = vpop.f32.mrb[186].mxu1  ;;  %v5977_v47 = vld [vmem:[%s9381_s28] ss:$0 sm:$0xff] }
0x1f28   :  { %v5389_v34 = vadd.f32 %v5968_v32, %v5388_v49  ;;  %v6810_v39 = vpop.f32.mrb[187].mxu1  ;;  %v5402_v24 = vadd.f32 %v5386_v38, %v9213_v50 }
0x1f2a   :  { %v5414_v43 = vsel %vm631_vm2, %v5402_v24, 0.0  ;;  %v5403_v59 = vadd.f32 %v5389_v34, %v9215_v37 }
0x1f2b   :  { %5415 = vadd.xlane.f32.xlu1 %v5414_v43  ;;  %v5978_v43 = vld [vmem:[#allocation32] ss:$0 sm:$0xff] }
0x1f2c   :  { %v5417_v42 = vsel %vm631_vm2, %v5403_v59, 0.0 }
0x1f2d   :  { %5418 = vadd.xlane.f32.xlu0 %v5417_v42 }
0x1faa   :  { %v5393_v36 = vpop.f32.mrb[188].mxu1 }
0x1fab   :  { %v5394_v48 = vadd.f32 %v5968_v32, %v5393_v36  ;;  %v6813_v62 = vpop.f32.mrb[189].mxu1 }
0x1fac   :  { %v5396_v57 = vpop.f32.mrb[190].mxu1 }
0x1fad   :  { %v5397_v63 = vadd.f32 %v5968_v32, %v5396_v57  ;;  %v6814_v31 = vpop.f32.mrb[191].mxu1  ;;  %v5404_v35 = vadd.f32 %v5394_v48, %v9239_v5 }
0x1faf   :  { %v5420_v33 = vsel %vm631_vm2, %v5404_v35, 0.0  ;;  %v5405_v50 = vadd.f32 %v5397_v63, %v9241_v19 }
0x1fb0   :  { %v5410_v14 = vpop.xlane.xlu1 %5409  ;;  %5421 = vadd.xlane.f32.xlu1 %v5420_v33 }
0x1fb1   :  { %v5426_v17 = vmul.f32 0.03125, %v5410_v14  ;;  %v5423_v37 = vsel %vm631_vm2, %v5405_v50, 0.0 }
0x1fb2   :  { %v5413_v13 = vpop.xlane.xlu0 %5412  ;;  %5424 = vadd.xlane.f32.xlu0 %v5423_v37 }
0x1fb3   :  { %v5432_v7 = vsub.f32 %v5400_v46, %v5426_v17  ;;  %v5427_v15 = vmul.f32 0.03125, %v5413_v13 }
0x1fb5   :  { %v5433_v51 = vsub.f32 %v5401_v54, %v5427_v15  ;;  %v5438_v10 = vmul.f32 %v5432_v7, %v5432_v7 }
0x1fb7   :  { %v5444_v9 = vsel %vm631_vm2, %v5438_v10, 0.0  ;;  %v5439_v4 = vmul.f32 %v5433_v51, %v5433_v51 }
0x1fb8   :  { %v5416_v5 = vpop.xlane.xlu1 %5415  ;;  %5445 = vadd.xlane.f32.xlu1 %v5444_v9 }
0x1fb9   :  { %v5428_v23 = vmul.f32 0.03125, %v5416_v5  ;;  %v5447_v19 = vsel %vm631_vm2, %v5439_v4, 0.0 }
0x1fba   :  { %v5419_v27 = vpop.xlane.xlu0 %5418  ;;  %5448 = vadd.xlane.f32.xlu0 %v5447_v19 }
0x1fbb   :  { %v5434_v41 = vsub.f32 %v5402_v24, %v5428_v23  ;;  %v5429_v12 = vmul.f32 0.03125, %v5419_v27 }
0x1fbd   :  { %v5435_v61 = vsub.f32 %v5403_v59, %v5429_v12  ;;  %v5440_v28 = vmul.f32 %v5434_v41, %v5434_v41 }
0x1fbf   :  { %v5450_v21 = vsel %vm631_vm2, %v5440_v28, 0.0  ;;  %v5441_v3 = vmul.f32 %v5435_v61, %v5435_v61 }
0x1fc0   :  { %5451 = vadd.xlane.f32.xlu1 %v5450_v21 }
0x1fc1   :  { %v5453_v52 = vsel %vm631_vm2, %v5441_v3, 0.0 }
0x1fc2   :  { %5454 = vadd.xlane.f32.xlu0 %v5453_v52 }
0x203d   :  { %v5422_v44 = vpop.xlane.xlu1 %5421 }
0x203e   :  { %v5430_v29 = vmul.f32 0.03125, %v5422_v44 }
0x203f   :  { %v5425_v26 = vpop.xlane.xlu0 %5424 }
0x2040   :  { %v5436_v55 = vsub.f32 %v5404_v35, %v5430_v29  ;;  %v5431_v25 = vmul.f32 0.03125, %v5425_v26 }
0x2042   :  { %v5437_v45 = vsub.f32 %v5405_v50, %v5431_v25  ;;  %v5442_v2 = vmul.f32 %v5436_v55, %v5436_v55 }
0x2044   :  { %v5456_v53 = vsel %vm631_vm2, %v5442_v2, 0.0  ;;  %v5443_v20 = vmul.f32 %v5437_v45, %v5437_v45 }
0x2045   :  { %5457 = vadd.xlane.f32.xlu1 %v5456_v53  ;;  %v5446_v40 = vpop.xlane.xlu1 %5445 }
0x2046   :  { %v5462_v32 = vmul.f32 0.03125, %v5446_v40  ;;  %v5459_v8 = vsel %vm631_vm2, %v5443_v20, 0.0 }
0x2047   :  { %5460 = vadd.xlane.f32.xlu0 %v5459_v8  ;;  %v5449_v58 = vpop.xlane.xlu0 %5448 }
0x2048   :  { %v5468_v60 = vadd.f32 1e-05, %v5462_v32  ;;  %v5463_v30 = vmul.f32 0.03125, %v5449_v58 }
0x204a   :  { %7167 = vrsqrt.f32 %v5468_v60  ;;  %v5469_v1 = vadd.f32 1e-05, %v5463_v30 }
0x204c   :  { %7169 = vrsqrt.f32 %v5469_v1 }
0x204d   :  { %v5452_v22 = vpop.xlane.xlu1 %5451 }
0x204e   :  { %v5464_v46 = vmul.f32 0.03125, %v5452_v22 }
0x204f   :  { %v5455_v18 = vpop.xlane.xlu0 %5454 }
0x2050   :  { %v5470_v54 = vadd.f32 1e-05, %v5464_v46  ;;  %v5465_v0 = vmul.f32 0.03125, %v5455_v18 }
0x2052   :  { %7171 = vrsqrt.f32 %v5470_v54  ;;  %v5471_v16 = vadd.f32 1e-05, %v5465_v0 }
0x2054   :  { %v7168_v38 = vpop.eup %7167  ;;  %7173 = vrsqrt.f32 %v5471_v16 }
0x2055   :  { %v5480_v49 = vmul.f32 %v7168_v38, %v5432_v7 }
0x2056   :  { %v7170_v34 = vpop.eup %7169 }
0x2057   :  { %v5492_v39 = vmul.f32 %v5977_v47, %v5480_v49  ;;  %v5481_v24 = vmul.f32 %v7170_v34, %v5433_v51 }
0x2059   :  { %v5493_v59 = vmul.f32 %v5977_v47, %v5481_v24  ;;  %v5504_v42 = vadd.f32 %v5978_v43, %v5492_v39 }
0x205b   :  { %v5505_v36 = vadd.f32 %v5978_v43, %v5493_v59 }
0x205c   :  { %v7172_v48 = vpop.eup %7171 }
0x205d   :  { %v5482_v62 = vmul.f32 %v7172_v48, %v5434_v41  ;;  %v5510_v57 = vpack.c.bf16 %v5505_v36, %v5504_v42 }
0x205e   :  { %v7174_v63 = vpop.eup %7173 }
0x205f   :  { %v5483_v31 = vmul.f32 %v7174_v63, %v5435_v61  ;;  %6820 = vmatmul.mubr.msk.bf16.vlgmr.msra.gmra.mrb[184].mxu0 %vm631_vm2, %v5510_v57  ;;  %v5494_v35 = vmul.f32 %v5977_v47, %v5482_v62 }
0x2060   :  { %6823 = vmatprep.mubr.msk.bf16.mxu0 %vm7680_vm0, %v7679_v6 }
0x2061   :  { %v5495_v33 = vmul.f32 %v5977_v47, %v5483_v31  ;;  %v5506_v50 = vadd.f32 %v5978_v43, %v5494_v35 }
0x2063   :  { %v5507_v14 = vadd.f32 %v5978_v43, %v5495_v33 }
0x2065   :  { %v5511_v17 = vpack.c.bf16 %v5507_v14, %v5506_v50 }
0x2067   :  { %6824 = vmatmul.mubr.msk.bf16.gmra.mrb[188].mxu0 %vm631_vm2, %v5511_v17 }
0x2068   :  { %6827 = vmatprep.mubr.msk.bf16.mxu0 %vm7680_vm0, %v7679_v6  ;;  %v5979_v6 = vld [vmem:[%s7937_s14] ss:$0 sm:$0xff]  ;;  %s7559_s14 = scalar_lea.vmem %s5614_s12, 768 }
0x2069   :  { %p7560_p12 = scmp.ne.s32.totalorder %s5614_s12, %s7559_s14  ;;  %p7565_p0 = scmp.lt.s32.totalorder %s7559_s14, %s7559_s14 }
0x206b   :  { %p7566_p1 = por %p7565_p0, %p7564_p13 }
0x206d   :  { %p7567_p2 = pnand %p7566_p1, %p7560_p12 }
0x20d2   :  { %v5458_v37 = vpop.xlane.xlu1 %5457 }
0x20d3   :  { %v5466_v13 = vmul.f32 0.03125, %v5458_v37 }
0x20d4   :  { %v5461_v7 = vpop.xlane.xlu0 %5460 }
0x20d5   :  { %v5472_v15 = vadd.f32 1e-05, %v5466_v13  ;;  %v5467_v51 = vmul.f32 0.03125, %v5461_v7 }
0x20d7   :  { %7175 = vrsqrt.f32 %v5472_v15  ;;  %v5473_v10 = vadd.f32 1e-05, %v5467_v51 }
0x20d9   :  { %7177 = vrsqrt.f32 %v5473_v10 }
0x20e1   :  { %v7176_v9 = vpop.eup %7175 }
0x20e2   :  { %v5484_v4 = vmul.f32 %v7176_v9, %v5436_v55 }
0x20e3   :  { %v7178_v5 = vpop.eup %7177 }
0x20e4   :  { %v5485_v23 = vmul.f32 %v7178_v5, %v5437_v45  ;;  %v5496_v19 = vmul.f32 %v5977_v47, %v5484_v4 }
0x20e6   :  { %v5497_v27 = vmul.f32 %v5977_v47, %v5485_v23  ;;  %v5508_v41 = vadd.f32 %v5978_v43, %v5496_v19 }
0x20e8   :  { %v5509_v12 = vadd.f32 %v5978_v43, %v5497_v27 }
0x20ea   :  { %v5512_v61 = vpack.c.bf16 %v5509_v12, %v5508_v41 }
0x20ec   :  { %6828 = vmatmul.mubr.msk.bf16.gmra.mrb[192].mxu0 %vm631_vm2, %v5512_v61 }
0x2132   :  { %v5579_v28 = vpop.f32.mrb[184].mxu0 }
0x2133   :  { %v5580_v21 = vadd.f32 %v5979_v6, %v5579_v28  ;;  %v6821_v3 = vpop.f32.mrb[185].mxu0 }
0x2134   :  { %v5582_v52 = vpop.f32.mrb[186].mxu0 }
0x2135   :  { %5602 = vst [vmem:[#allocation34] sm:$0xff] %v5580_v21  ;;  %v5583_v56 = vadd.f32 %v5979_v6, %v5582_v52  ;;  %v6822_v11 = vpop.f32.mrb[187].mxu0 }
0x2137   :  { %5603 = vst [vmem:[#allocation34 + $0x8] sm:$0xff] %v5583_v56 }
0x213a   :  { %v5587_v44 = vpop.f32.mrb[188].mxu0 }
0x213b   :  { %v5588_v29 = vadd.f32 %v5979_v6, %v5587_v44  ;;  %v6825_v26 = vpop.f32.mrb[189].mxu0 }
0x213c   :  { %v5590_v55 = vpop.f32.mrb[190].mxu0 }
0x213d   :  { %5604 = vst [vmem:[#allocation34 + $0x10] sm:$0xff] %v5588_v29  ;;  %v5591_v25 = vadd.f32 %v5979_v6, %v5590_v55  ;;  %v6826_v45 = vpop.f32.mrb[191].mxu0 }
0x213f   :  { %5605 = vst [vmem:[#allocation34 + $0x18] sm:$0xff] %v5591_v25 }
0x21bf   :  { %v5595_v2 = vpop.f32.mrb[192].mxu0 }
0x21c0   :  { %v5596_v53 = vadd.f32 %v5979_v6, %v5595_v2  ;;  %v6829_v20 = vpop.f32.mrb[193].mxu0 }
0x21c1   :  { %v5598_v40 = vpop.f32.mrb[194].mxu0 }
0x21c2   :  { %5606 = vst [vmem:[#allocation34 + $0x20] sm:$0xff] %v5596_v53  ;;  %v5599_v32 = vadd.f32 %v5979_v6, %v5598_v40  ;;  %v6830_v8 = vpop.f32.mrb[195].mxu0 }
0x21c4   :  { %5607 = vst [vmem:[#allocation34 + $0x28] sm:$0xff] %v5599_v32 }
0x21c5   :  { %7570 = shalt.err (!%p7567_p2)
}
0x21c6   :  { %s7571_s22 = scalar_lea.hbm %s7942_s25, 768 }
0x21c7   :  { %p7572_p3 = scmp.ne.s32.totalorder %s7942_s25, %s7571_s22  ;;  %p7575_p4 = scmp.lt.u32.totalorder %s7571_s22, %s7942_s25 }
0x21c9   :  { %p7577_p5 = pnand %p7575_p4, %p7572_p3 }
0x21cb   :  { %7580 = shalt.err (!%p7577_p5)
}
0x21cc   :  { %s7682_s21 = smov 128   ;;  %s7683_s5 = smov 8  }
0x21cd   :  { %5619 = dma.vmem_to_hbm [thread:$0]  %s5614_s12, 768, %s7942_s25, [#allocation6], %s7682_s21, %s7682_s21, %s7683_s5  }
0x21ce   :  { %7603 = dma.done.wait [#allocation6], 768  }
0x21cf   :  { %7604 = vsyncadd [#allocation6], 4294966528 }
0x21d0   :  { %5623 = vsyncpa [#allocation5], 1 }
0x21d1   :  { %5624 = vsyncpa [#allocation12], 1 }
0x21d2   :  { %5625 = vsyncpa [#allocation15], 1 }
0x21d3   :  { %5626 = vsyncpa [#allocation18], 1 }
0x21d4   :  { %5627 = vsyncpa [#allocation21], 1 }
0x21d5   :  { %5628 = vsyncpa [#allocation24], 1 }
0x21d6   :  { %5629 = vsyncpa [#allocation27], 1 }
0x21d7   :  { %5630 = vsyncpa [#allocation30], 1 }
0x21d8   :  { %5631 = vsyncpa [#allocation33], 1 }
0x21d9   :  { %5632 = vsyncpa [#allocation6], 1 }
0x21da   :  { %5633 = vsyncpa [#allocation7], 1 }
0x21db   :  { %5634 = vsyncpa [#allocation9], 1 }

</bundles_post_ra>
